<compile_context>
chip_gen: v7x
topology: tpu7x:2x2x1
jax: 0.10.0
libtpu: 0.0.40
codegen_flags: <defaults>
</compile_context>

<pallas_src>
import functools
import math

import jax
import jax.numpy as jnp
from jax.experimental import pallas as pl
from jax.experimental.pallas import tpu as pltpu

BN_EPS = 1e-5
MODRELU_EPS = 1e-9
LANE = 128


def _round_up(x, m):
    return ((x + m - 1) // m) * m


# ----------------------------- kernel helpers (traced inside the kernel) ----

def _batch_norm_packed(x):
    # Training-mode BatchNorm1d (gamma=1, beta=0), per lane.  Two-pass
    # variance (mean of (x - mu)^2, biased) matches the PyTorch reference and
    # avoids E[x^2] - mu^2 cancellation; rsqrt goes to the EUP.
    mu = jnp.mean(x, axis=0, keepdims=True)
    xc = x - mu
    var = jnp.mean(xc * xc, axis=0, keepdims=True)
    return xc * jax.lax.rsqrt(var + BN_EPS)


def _mod_relu_packed(x, b, hidden):
    # x is packed [r | i] (B, 2H); b is the packed modReLU bias [b | b] (1, 2H).
    # Pair r^2 with i^2 by rotating the squared tensor by H lanes (XLU slot).
    sq = x * x
    sq_sum = sq + pltpu.roll(sq, shift=hidden, axis=1) + MODRELU_EPS
    inv = jax.lax.rsqrt(sq_sum)          # 1 / sqrt(r^2 + i^2 + eps)
    mag = sq_sum * inv                   # sqrt(r^2 + i^2 + eps)
    thr = jnp.maximum(mag + b, 0.0)
    return (thr * inv) * x               # (thr / mag) * x, no divide


# --------------------------------- fused CVNN kernel -------------------------

def _make_cvnn_kernel(num_blocks, hidden):
    def kernel(xr_ref, xi_ref, w_in_r_ref, w_in_i_ref, w_blk_ref,
               w_out_ref, b_act_ref, b_out_ref, out_ref):
        # xr_ref/xi_ref : (B, Fin) f32 real / imag inputs
        # w_in_r_ref    : (Fin, 2H) bf16  [Wr^T | Wi^T]
        # w_in_i_ref    : (Fin, 2H) bf16  [-Wi^T | Wr^T]
        # w_blk_ref     : (2*num_blocks, 2H, 2H) bf16 packed block weights
        # w_out_ref     : (2H, out_pad) bf16 (zero-padded to 128-lane multiple)
        # b_act_ref     : (1 + 2*num_blocks, 2H) f32 packed modReLU biases
        # b_out_ref     : (1, out_pad) f32
        #
        # Input complex-linear straight off the unpacked inputs (no wrapper
        # concatenate).  Linear biases before training-mode BN cancel exactly
        # and are omitted.
        xr = xr_ref[...].astype(jnp.bfloat16)
        xi = xi_ref[...].astype(jnp.bfloat16)
        h = (jnp.dot(xr, w_in_r_ref[...], preferred_element_type=jnp.float32)
             + jnp.dot(xi, w_in_i_ref[...], preferred_element_type=jnp.float32))
        h = _batch_norm_packed(h)
        h = _mod_relu_packed(h, b_act_ref[0:1, :], hidden)

        # ---- residual blocks (activations stay packed (B, 2H) f32)
        aidx = 1
        for blk in range(num_blocks):
            res = h
            h = jnp.dot(h.astype(jnp.bfloat16), w_blk_ref[2 * blk],
                        preferred_element_type=jnp.float32)
            h = _batch_norm_packed(h)
            h = _mod_relu_packed(h, b_act_ref[aidx:aidx + 1, :], hidden)
            h = jnp.dot(h.astype(jnp.bfloat16), w_blk_ref[2 * blk + 1],
                        preferred_element_type=jnp.float32)
            h = _batch_norm_packed(h)
            h = h + res
            h = _mod_relu_packed(h, b_act_ref[aidx + 1:aidx + 2, :], hidden)
            aidx += 2

        # ---- output linear into a lane-dense 128-padded slab (single
        #      unmasked store stream; padded columns carry zero weight/bias).
        out_ref[...] = (jnp.dot(h.astype(jnp.bfloat16), w_out_ref[...],
                                preferred_element_type=jnp.float32)
                        + b_out_ref[...])

    return kernel


# --------------------------------- wrapper -----------------------------------

def cvnn_forward_pallas(xr, xi, packed_params, *, num_blocks, hidden_features,
                        output_features):
    w_in_r, w_in_i, w_blk, w_out, b_act, b_out = packed_params
    batch, fin = xr.shape
    h2 = 2 * hidden_features
    out_pad = w_out.shape[1]

    # Advisory cost estimate (bf16 matmuls + rsqrt transcendentals).
    flops = (2 * (2 * batch * fin * h2)
             + num_blocks * 2 * (2 * batch * h2 * h2)
             + 2 * batch * h2 * out_pad)
    n_stages = 1 + 2 * num_blocks
    transcendentals = n_stages * (h2 + batch * h2)
    bytes_accessed = (4 * (xr.size + xi.size + b_act.size + b_out.size
                           + batch * out_pad)
                      + 2 * (w_in_r.size + w_in_i.size + w_blk.size
                             + w_out.size))

    vmem_spec = pl.BlockSpec(memory_space=pltpu.MemorySpace.VMEM)
    kernel = _make_cvnn_kernel(num_blocks, hidden_features)

    out_packed = pl.pallas_call(
        kernel,
        out_shape=jax.ShapeDtypeStruct((batch, out_pad), jnp.float32),
        in_specs=[vmem_spec] * 8,
        out_specs=vmem_spec,
        compiler_params=pltpu.CompilerParams(
            vmem_limit_bytes=32 * 1024 * 1024),
        cost_estimate=pl.CostEstimate(flops=flops,
                                      transcendentals=transcendentals,
                                      bytes_accessed=bytes_accessed),
    )(xr, xi, w_in_r, w_in_i, w_blk, w_out, b_act, b_out)

    return (out_packed[:, :output_features],
            out_packed[:, output_features:2 * output_features])


# --------------------------------- parameter construction -------------------

def _xavier_uniform(key, out_features, in_features):
    # Matches nn.init.xavier_uniform_ on a (out, in) weight (deterministic via
    # PRNGKey, not bit-identical to torch's RNG stream).
    bound = math.sqrt(6.0 / (in_features + out_features))
    return jax.random.uniform(key, (out_features, in_features),
                              dtype=jnp.float32, minval=-bound, maxval=bound)


def init_cvnn_params(key, input_features, hidden_features, output_features,
                     num_blocks):
    """Torch-layout parameters: (out,in) weights, (out,) biases."""
    def clin(k, fin, fout):
        k1, k2 = jax.random.split(k)
        return (_xavier_uniform(k1, fout, fin),
                _xavier_uniform(k2, fout, fin),
                jnp.zeros((fout,), jnp.float32),
                jnp.zeros((fout,), jnp.float32))

    keys = jax.random.split(key, 2 + 2 * num_blocks)
    params = {
        "input_linear": clin(keys[0], input_features, hidden_features),
        "input_act_b": jnp.zeros((hidden_features,), jnp.float32),
        "blocks": [],
        "output_linear": clin(keys[-1], hidden_features, output_features),
    }
    for b in range(num_blocks):
        lin1 = clin(keys[1 + 2 * b], hidden_features, hidden_features)
        lin2 = clin(keys[2 + 2 * b], hidden_features, hidden_features)
        params["blocks"].append(
            (lin1, jnp.zeros((hidden_features,), jnp.float32),
             lin2, jnp.zeros((hidden_features,), jnp.float32)))
    return params


def pack_cvnn_params(params):
    """Pack torch-layout params into the 6 kernel arrays (weights -> bf16)."""
    hidden = params["input_linear"][0].shape[0]

    def pack_w(wr, wi):
        # (out, in) -> packed (2*in, 2*out):  [[Wr^T, Wi^T], [-Wi^T, Wr^T]]
        top = jnp.concatenate([wr.T, wi.T], axis=1)
        bot = jnp.concatenate([-wi.T, wr.T], axis=1)
        return jnp.concatenate([top, bot], axis=0).astype(jnp.bfloat16)

    def pack_w_split(wr, wi):
        # Same packing split into its top / bottom in-feature halves so the
        # kernel can consume xr and xi without a wrapper-side concatenate.
        w_r = jnp.concatenate([wr.T, wi.T], axis=1).astype(jnp.bfloat16)
        w_i = jnp.concatenate([-wi.T, wr.T], axis=1).astype(jnp.bfloat16)
        return w_r, w_i

    def pack_act(b):
        return jnp.concatenate([b, b])[None, :]

    wr, wi, _, _ = params["input_linear"]          # linear bias dead under BN
    w_in_r, w_in_i = pack_w_split(wr, wi)
    act_rows = [pack_act(params["input_act_b"])]

    w_blocks = []
    for lin1, a1, lin2, a2 in params["blocks"]:
        w_blocks.append(pack_w(lin1[0], lin1[1]))  # lin biases dead under BN
        act_rows.append(pack_act(a1))
        w_blocks.append(pack_w(lin2[0], lin2[1]))
        act_rows.append(pack_act(a2))

    wr, wi, br, bi = params["output_linear"]
    w_out = pack_w(wr, wi)                          # (2H, 2*Fout) bf16
    b_out = jnp.concatenate([br, bi])[None, :]      # (1, 2*Fout) f32
    out_pad = max(LANE, _round_up(w_out.shape[1], LANE))
    pad = out_pad - w_out.shape[1]
    if pad:
        w_out = jnp.pad(w_out, ((0, 0), (0, pad)))
        b_out = jnp.pad(b_out, ((0, 0), (0, pad)))

    if w_blocks:
        w_blk = jnp.stack(w_blocks, axis=0)         # (2*nb, 2H, 2H) bf16
    else:
        w_blk = jnp.zeros((1, 2 * hidden, 2 * hidden), jnp.bfloat16)
    b_act = jnp.concatenate(act_rows, axis=0)       # (1 + 2*nb, 2H) f32
    return (w_in_r, w_in_i, w_blk, w_out, b_act, b_out)


# --------------------------------- pure-JAX reference -----------------------
# Direct f32 translation of the PyTorch math (separate r/i, sqrt + divide,
# biases included).

def cvnn_forward_ref(xr, xi, params):
    def clin(ar, ai, p):
        wr, wi, br, bi = p
        return ar @ wr.T - ai @ wi.T + br, ar @ wi.T + ai @ wr.T + bi

    def bn(x):
        mu = jnp.mean(x, axis=0, keepdims=True)
        var = jnp.mean((x - mu) ** 2, axis=0, keepdims=True)
        return (x - mu) / jnp.sqrt(var + BN_EPS)

    def act(r, i, b):
        mag = jnp.sqrt(r * r + i * i + MODRELU_EPS)
        thr = jnp.maximum(mag + b, 0.0)
        s = thr / mag
        return s * r, s * i

    r, i = clin(xr, xi, params["input_linear"])
    r, i = bn(r), bn(i)
    r, i = act(r, i, params["input_act_b"])
    for lin1, a1, lin2, a2 in params["blocks"]:
        rr, ri = r, i
        r, i = clin(r, i, lin1)
        r, i = bn(r), bn(i)
        r, i = act(r, i, a1)
        r, i = clin(r, i, lin2)
        r, i = bn(r), bn(i)
        r, i = r + rr, i + ri
        r, i = act(r, i, a2)
    return clin(r, i, params["output_linear"])


# --------------------------------------- main --------------------------------

if __name__ == "__main__":
    # hidden=64 so the packed activation width (2H = 128) is exactly one lane
    # width (perfect for v5e's 128-wide MXU; half-fills the 256-wide MXU on
    # v6e/v7x — acceptable at this model size); batch=128 fills MXU rows.
    batch = 128
    input_features = 16
    hidden_features = 64
    output_features = 8
    num_residual_blocks = 2

    key = jax.random.PRNGKey(0)
    kx, kp = jax.random.split(key)
    kxr, kxi = jax.random.split(kx)

    xr = jax.random.normal(kxr, (batch, input_features), dtype=jnp.float32)
    xi = jax.random.normal(kxi, (batch, input_features), dtype=jnp.float32)

    params = init_cvnn_params(kp, input_features, hidden_features,
                              output_features, num_residual_blocks)
    packed = pack_cvnn_params(params)

    fwd = jax.jit(functools.partial(cvnn_forward_pallas,
                                    num_blocks=num_residual_blocks,
                                    hidden_features=hidden_features,
                                    output_features=output_features))
    out_r, out_i = fwd(xr, xi, packed)
    jax.block_until_ready((out_r, out_i))

    ref_r, ref_i = cvnn_forward_ref(xr, xi, params)

    assert out_r.shape == (batch, output_features)
    assert out_i.shape == (batch, output_features)
    # Tolerance reflects bf16 MXU operands (f32 accumulation, f32 BN/modReLU).
    assert jnp.allclose(out_r, ref_r, atol=5e-2, rtol=5e-2), (
        float(jnp.max(jnp.abs(out_r - ref_r))))
    assert jnp.allclose(out_i, ref_i, atol=5e-2, rtol=5e-2), (
        float(jnp.max(jnp.abs(out_i - ref_i))))

    print("KERNEL_OK")
</pallas_src>

<mosaic_0001>
module attributes {stable_mosaic.version = 11 : i64} {
  func.func @kernel(%arg0: memref<128x16xf32, #tpu.memory_space<vmem>>, %arg1: memref<128x16xf32, #tpu.memory_space<vmem>>, %arg2: memref<16x128xbf16, #tpu.memory_space<vmem>>, %arg3: memref<16x128xbf16, #tpu.memory_space<vmem>>, %arg4: memref<4x128x128xbf16, #tpu.memory_space<vmem>>, %arg5: memref<128x128xbf16, #tpu.memory_space<vmem>>, %arg6: memref<5x128xf32, #tpu.memory_space<vmem>>, %arg7: memref<1x128xf32, #tpu.memory_space<vmem>>, %arg8: memref<128x128xf32, #tpu.memory_space<vmem>>) attributes {dimension_semantics = [], scalar_prefetch = 0 : i64, scratch_operands = 0 : i64, tpu.core_type = #tpu.core_type<tc>} {
    %c0 = arith.constant 0 : index
    %c0_0 = arith.constant 0 : index
    %0 = vector.load %arg0[%c0, %c0_0] : memref<128x16xf32, #tpu.memory_space<vmem>>, vector<128x16xf32>
    %1 = arith.truncf %0 : vector<128x16xf32> to vector<128x16xbf16>
    %c0_1 = arith.constant 0 : index
    %c0_2 = arith.constant 0 : index
    %2 = vector.load %arg1[%c0_1, %c0_2] : memref<128x16xf32, #tpu.memory_space<vmem>>, vector<128x16xf32>
    %3 = arith.truncf %2 : vector<128x16xf32> to vector<128x16xbf16>
    %c0_3 = arith.constant 0 : index
    %c0_4 = arith.constant 0 : index
    %4 = vector.load %arg2[%c0_3, %c0_4] : memref<16x128xbf16, #tpu.memory_space<vmem>>, vector<16x128xbf16>
    %cst = arith.constant dense<0.000000e+00> : vector<128x128xf32>
    %5 = tpu.matmul %1, %4, %cst {dimension_numbers = #tpu.dot_dimension_numbers<[1], [0], [0], [1], [0, 0, 1, 1], [], []>} : vector<128x16xbf16>, vector<16x128xbf16>, vector<128x128xf32> -> vector<128x128xf32>
    %c0_5 = arith.constant 0 : index
    %c0_6 = arith.constant 0 : index
    %6 = vector.load %arg3[%c0_5, %c0_6] : memref<16x128xbf16, #tpu.memory_space<vmem>>, vector<16x128xbf16>
    %cst_7 = arith.constant dense<0.000000e+00> : vector<128x128xf32>
    %7 = tpu.matmul %3, %6, %cst_7 {dimension_numbers = #tpu.dot_dimension_numbers<[1], [0], [0], [1], [0, 0, 1, 1], [], []>} : vector<128x16xbf16>, vector<16x128xbf16>, vector<128x128xf32> -> vector<128x128xf32>
    %8 = arith.addf %5, %7 : vector<128x128xf32>
    %cst_8 = arith.constant dense<0.000000e+00> : vector<128xf32>
    %9 = vector.multi_reduction <add>, %8, %cst_8 [0] : vector<128x128xf32> to vector<128xf32>
    %10 = vector.shape_cast %9 : vector<128xf32> to vector<1x128xf32>
    %cst_9 = arith.constant 1.280000e+02 : f32
    %11 = vector.broadcast %cst_9 : f32 to vector<1x128xf32>
    %12 = arith.divf %10, %11 : vector<1x128xf32>
    %13 = vector.broadcast %12 : vector<1x128xf32> to vector<128x128xf32>
    %14 = arith.subf %8, %13 : vector<128x128xf32>
    %15 = arith.mulf %14, %14 : vector<128x128xf32>
    %cst_10 = arith.constant dense<0.000000e+00> : vector<128xf32>
    %16 = vector.multi_reduction <add>, %15, %cst_10 [0] : vector<128x128xf32> to vector<128xf32>
    %17 = vector.shape_cast %16 : vector<128xf32> to vector<1x128xf32>
    %cst_11 = arith.constant 1.280000e+02 : f32
    %18 = vector.broadcast %cst_11 : f32 to vector<1x128xf32>
    %19 = arith.divf %17, %18 : vector<1x128xf32>
    %cst_12 = arith.constant 9.99999974E-6 : f32
    %20 = vector.broadcast %cst_12 : f32 to vector<1x128xf32>
    %21 = arith.addf %19, %20 : vector<1x128xf32>
    %22 = math.rsqrt %21 : vector<1x128xf32>
    %23 = vector.broadcast %22 : vector<1x128xf32> to vector<128x128xf32>
    %24 = arith.mulf %14, %23 : vector<128x128xf32>
    %c0_13 = arith.constant 0 : index
    %c0_14 = arith.constant 0 : index
    %25 = vector.load %arg6[%c0_13, %c0_14] : memref<5x128xf32, #tpu.memory_space<vmem>>, vector<1x128xf32>
    %26 = arith.mulf %24, %24 : vector<128x128xf32>
    %c64_i32 = arith.constant 64 : i32
    %27 = tpu.dynamic_rotate %26 by %c64_i32 dim 1 : vector<128x128xf32>, i32 -> vector<128x128xf32>
    %28 = arith.addf %26, %27 : vector<128x128xf32>
    %cst_15 = arith.constant 9.99999971E-10 : f32
    %29 = vector.broadcast %cst_15 : f32 to vector<128x128xf32>
    %30 = arith.addf %28, %29 : vector<128x128xf32>
    %31 = math.rsqrt %30 : vector<128x128xf32>
    %32 = arith.mulf %30, %31 : vector<128x128xf32>
    %33 = vector.broadcast %25 : vector<1x128xf32> to vector<128x128xf32>
    %34 = arith.addf %32, %33 : vector<128x128xf32>
    %cst_16 = arith.constant 0.000000e+00 : f32
    %35 = vector.broadcast %cst_16 : f32 to vector<128x128xf32>
    %36 = arith.maximumf %34, %35 : vector<128x128xf32>
    %37 = arith.mulf %36, %31 : vector<128x128xf32>
    %38 = arith.mulf %37, %24 : vector<128x128xf32>
    %39 = arith.truncf %38 : vector<128x128xf32> to vector<128x128xbf16>
    %c0_17 = arith.constant 0 : index
    %c0_18 = arith.constant 0 : index
    %c0_19 = arith.constant 0 : index
    %40 = vector.load %arg4[%c0_17, %c0_18, %c0_19] : memref<4x128x128xbf16, #tpu.memory_space<vmem>>, vector<1x128x128xbf16>
    %41 = vector.shape_cast %40 : vector<1x128x128xbf16> to vector<128x128xbf16>
    %cst_20 = arith.constant dense<0.000000e+00> : vector<128x128xf32>
    %42 = tpu.matmul %39, %41, %cst_20 {dimension_numbers = #tpu.dot_dimension_numbers<[1], [0], [0], [1], [0, 0, 1, 1], [], []>} : vector<128x128xbf16>, vector<128x128xbf16>, vector<128x128xf32> -> vector<128x128xf32>
    %cst_21 = arith.constant dense<0.000000e+00> : vector<128xf32>
    %43 = vector.multi_reduction <add>, %42, %cst_21 [0] : vector<128x128xf32> to vector<128xf32>
    %44 = vector.shape_cast %43 : vector<128xf32> to vector<1x128xf32>
    %cst_22 = arith.constant 1.280000e+02 : f32
    %45 = vector.broadcast %cst_22 : f32 to vector<1x128xf32>
    %46 = arith.divf %44, %45 : vector<1x128xf32>
    %47 = vector.broadcast %46 : vector<1x128xf32> to vector<128x128xf32>
    %48 = arith.subf %42, %47 : vector<128x128xf32>
    %49 = arith.mulf %48, %48 : vector<128x128xf32>
    %cst_23 = arith.constant dense<0.000000e+00> : vector<128xf32>
    %50 = vector.multi_reduction <add>, %49, %cst_23 [0] : vector<128x128xf32> to vector<128xf32>
    %51 = vector.shape_cast %50 : vector<128xf32> to vector<1x128xf32>
    %cst_24 = arith.constant 1.280000e+02 : f32
    %52 = vector.broadcast %cst_24 : f32 to vector<1x128xf32>
    %53 = arith.divf %51, %52 : vector<1x128xf32>
    %cst_25 = arith.constant 9.99999974E-6 : f32
    %54 = vector.broadcast %cst_25 : f32 to vector<1x128xf32>
    %55 = arith.addf %53, %54 : vector<1x128xf32>
    %56 = math.rsqrt %55 : vector<1x128xf32>
    %57 = vector.broadcast %56 : vector<1x128xf32> to vector<128x128xf32>
    %58 = arith.mulf %48, %57 : vector<128x128xf32>
    %c1 = arith.constant 1 : index
    %c0_26 = arith.constant 0 : index
    %59 = vector.load %arg6[%c1, %c0_26] : memref<5x128xf32, #tpu.memory_space<vmem>>, vector<1x128xf32>
    %60 = arith.mulf %58, %58 : vector<128x128xf32>
    %c64_i32_27 = arith.constant 64 : i32
    %61 = tpu.dynamic_rotate %60 by %c64_i32_27 dim 1 : vector<128x128xf32>, i32 -> vector<128x128xf32>
    %62 = arith.addf %60, %61 : vector<128x128xf32>
    %cst_28 = arith.constant 9.99999971E-10 : f32
    %63 = vector.broadcast %cst_28 : f32 to vector<128x128xf32>
    %64 = arith.addf %62, %63 : vector<128x128xf32>
    %65 = math.rsqrt %64 : vector<128x128xf32>
    %66 = arith.mulf %64, %65 : vector<128x128xf32>
    %67 = vector.broadcast %59 : vector<1x128xf32> to vector<128x128xf32>
    %68 = arith.addf %66, %67 : vector<128x128xf32>
    %cst_29 = arith.constant 0.000000e+00 : f32
    %69 = vector.broadcast %cst_29 : f32 to vector<128x128xf32>
    %70 = arith.maximumf %68, %69 : vector<128x128xf32>
    %71 = arith.mulf %70, %65 : vector<128x128xf32>
    %72 = arith.mulf %71, %58 : vector<128x128xf32>
    %73 = arith.truncf %72 : vector<128x128xf32> to vector<128x128xbf16>
    %c1_30 = arith.constant 1 : index
    %c0_31 = arith.constant 0 : index
    %c0_32 = arith.constant 0 : index
    %74 = vector.load %arg4[%c1_30, %c0_31, %c0_32] : memref<4x128x128xbf16, #tpu.memory_space<vmem>>, vector<1x128x128xbf16>
    %75 = vector.shape_cast %74 : vector<1x128x128xbf16> to vector<128x128xbf16>
    %cst_33 = arith.constant dense<0.000000e+00> : vector<128x128xf32>
    %76 = tpu.matmul %73, %75, %cst_33 {dimension_numbers = #tpu.dot_dimension_numbers<[1], [0], [0], [1], [0, 0, 1, 1], [], []>} : vector<128x128xbf16>, vector<128x128xbf16>, vector<128x128xf32> -> vector<128x128xf32>
    %cst_34 = arith.constant dense<0.000000e+00> : vector<128xf32>
    %77 = vector.multi_reduction <add>, %76, %cst_34 [0] : vector<128x128xf32> to vector<128xf32>
    %78 = vector.shape_cast %77 : vector<128xf32> to vector<1x128xf32>
    %cst_35 = arith.constant 1.280000e+02 : f32
    %79 = vector.broadcast %cst_35 : f32 to vector<1x128xf32>
    %80 = arith.divf %78, %79 : vector<1x128xf32>
    %81 = vector.broadcast %80 : vector<1x128xf32> to vector<128x128xf32>
    %82 = arith.subf %76, %81 : vector<128x128xf32>
    %83 = arith.mulf %82, %82 : vector<128x128xf32>
    %cst_36 = arith.constant dense<0.000000e+00> : vector<128xf32>
    %84 = vector.multi_reduction <add>, %83, %cst_36 [0] : vector<128x128xf32> to vector<128xf32>
    %85 = vector.shape_cast %84 : vector<128xf32> to vector<1x128xf32>
    %cst_37 = arith.constant 1.280000e+02 : f32
    %86 = vector.broadcast %cst_37 : f32 to vector<1x128xf32>
    %87 = arith.divf %85, %86 : vector<1x128xf32>
    %cst_38 = arith.constant 9.99999974E-6 : f32
    %88 = vector.broadcast %cst_38 : f32 to vector<1x128xf32>
    %89 = arith.addf %87, %88 : vector<1x128xf32>
    %90 = math.rsqrt %89 : vector<1x128xf32>
    %91 = vector.broadcast %90 : vector<1x128xf32> to vector<128x128xf32>
    %92 = arith.mulf %82, %91 : vector<128x128xf32>
    %93 = arith.addf %92, %38 : vector<128x128xf32>
    %c2 = arith.constant 2 : index
    %c0_39 = arith.constant 0 : index
    %94 = vector.load %arg6[%c2, %c0_39] : memref<5x128xf32, #tpu.memory_space<vmem>>, vector<1x128xf32>
    %95 = arith.mulf %93, %93 : vector<128x128xf32>
    %c64_i32_40 = arith.constant 64 : i32
    %96 = tpu.dynamic_rotate %95 by %c64_i32_40 dim 1 : vector<128x128xf32>, i32 -> vector<128x128xf32>
    %97 = arith.addf %95, %96 : vector<128x128xf32>
    %cst_41 = arith.constant 9.99999971E-10 : f32
    %98 = vector.broadcast %cst_41 : f32 to vector<128x128xf32>
    %99 = arith.addf %97, %98 : vector<128x128xf32>
    %100 = math.rsqrt %99 : vector<128x128xf32>
    %101 = arith.mulf %99, %100 : vector<128x128xf32>
    %102 = vector.broadcast %94 : vector<1x128xf32> to vector<128x128xf32>
    %103 = arith.addf %101, %102 : vector<128x128xf32>
    %cst_42 = arith.constant 0.000000e+00 : f32
    %104 = vector.broadcast %cst_42 : f32 to vector<128x128xf32>
    %105 = arith.maximumf %103, %104 : vector<128x128xf32>
    %106 = arith.mulf %105, %100 : vector<128x128xf32>
    %107 = arith.mulf %106, %93 : vector<128x128xf32>
    %108 = arith.truncf %107 : vector<128x128xf32> to vector<128x128xbf16>
    %c2_43 = arith.constant 2 : index
    %c0_44 = arith.constant 0 : index
    %c0_45 = arith.constant 0 : index
    %109 = vector.load %arg4[%c2_43, %c0_44, %c0_45] : memref<4x128x128xbf16, #tpu.memory_space<vmem>>, vector<1x128x128xbf16>
    %110 = vector.shape_cast %109 : vector<1x128x128xbf16> to vector<128x128xbf16>
    %cst_46 = arith.constant dense<0.000000e+00> : vector<128x128xf32>
    %111 = tpu.matmul %108, %110, %cst_46 {dimension_numbers = #tpu.dot_dimension_numbers<[1], [0], [0], [1], [0, 0, 1, 1], [], []>} : vector<128x128xbf16>, vector<128x128xbf16>, vector<128x128xf32> -> vector<128x128xf32>
    %cst_47 = arith.constant dense<0.000000e+00> : vector<128xf32>
    %112 = vector.multi_reduction <add>, %111, %cst_47 [0] : vector<128x128xf32> to vector<128xf32>
    %113 = vector.shape_cast %112 : vector<128xf32> to vector<1x128xf32>
    %cst_48 = arith.constant 1.280000e+02 : f32
    %114 = vector.broadcast %cst_48 : f32 to vector<1x128xf32>
    %115 = arith.divf %113, %114 : vector<1x128xf32>
    %116 = vector.broadcast %115 : vector<1x128xf32> to vector<128x128xf32>
    %117 = arith.subf %111, %116 : vector<128x128xf32>
    %118 = arith.mulf %117, %117 : vector<128x128xf32>
    %cst_49 = arith.constant dense<0.000000e+00> : vector<128xf32>
    %119 = vector.multi_reduction <add>, %118, %cst_49 [0] : vector<128x128xf32> to vector<128xf32>
    %120 = vector.shape_cast %119 : vector<128xf32> to vector<1x128xf32>
    %cst_50 = arith.constant 1.280000e+02 : f32
    %121 = vector.broadcast %cst_50 : f32 to vector<1x128xf32>
    %122 = arith.divf %120, %121 : vector<1x128xf32>
    %cst_51 = arith.constant 9.99999974E-6 : f32
    %123 = vector.broadcast %cst_51 : f32 to vector<1x128xf32>
    %124 = arith.addf %122, %123 : vector<1x128xf32>
    %125 = math.rsqrt %124 : vector<1x128xf32>
    %126 = vector.broadcast %125 : vector<1x128xf32> to vector<128x128xf32>
    %127 = arith.mulf %117, %126 : vector<128x128xf32>
    %c3 = arith.constant 3 : index
    %c0_52 = arith.constant 0 : index
    %128 = vector.load %arg6[%c3, %c0_52] : memref<5x128xf32, #tpu.memory_space<vmem>>, vector<1x128xf32>
    %129 = arith.mulf %127, %127 : vector<128x128xf32>
    %c64_i32_53 = arith.constant 64 : i32
    %130 = tpu.dynamic_rotate %129 by %c64_i32_53 dim 1 : vector<128x128xf32>, i32 -> vector<128x128xf32>
    %131 = arith.addf %129, %130 : vector<128x128xf32>
    %cst_54 = arith.constant 9.99999971E-10 : f32
    %132 = vector.broadcast %cst_54 : f32 to vector<128x128xf32>
    %133 = arith.addf %131, %132 : vector<128x128xf32>
    %134 = math.rsqrt %133 : vector<128x128xf32>
    %135 = arith.mulf %133, %134 : vector<128x128xf32>
    %136 = vector.broadcast %128 : vector<1x128xf32> to vector<128x128xf32>
    %137 = arith.addf %135, %136 : vector<128x128xf32>
    %cst_55 = arith.constant 0.000000e+00 : f32
    %138 = vector.broadcast %cst_55 : f32 to vector<128x128xf32>
    %139 = arith.maximumf %137, %138 : vector<128x128xf32>
    %140 = arith.mulf %139, %134 : vector<128x128xf32>
    %141 = arith.mulf %140, %127 : vector<128x128xf32>
    %142 = arith.truncf %141 : vector<128x128xf32> to vector<128x128xbf16>
    %c3_56 = arith.constant 3 : index
    %c0_57 = arith.constant 0 : index
    %c0_58 = arith.constant 0 : index
    %143 = vector.load %arg4[%c3_56, %c0_57, %c0_58] : memref<4x128x128xbf16, #tpu.memory_space<vmem>>, vector<1x128x128xbf16>
    %144 = vector.shape_cast %143 : vector<1x128x128xbf16> to vector<128x128xbf16>
    %cst_59 = arith.constant dense<0.000000e+00> : vector<128x128xf32>
    %145 = tpu.matmul %142, %144, %cst_59 {dimension_numbers = #tpu.dot_dimension_numbers<[1], [0], [0], [1], [0, 0, 1, 1], [], []>} : vector<128x128xbf16>, vector<128x128xbf16>, vector<128x128xf32> -> vector<128x128xf32>
    %cst_60 = arith.constant dense<0.000000e+00> : vector<128xf32>
    %146 = vector.multi_reduction <add>, %145, %cst_60 [0] : vector<128x128xf32> to vector<128xf32>
    %147 = vector.shape_cast %146 : vector<128xf32> to vector<1x128xf32>
    %cst_61 = arith.constant 1.280000e+02 : f32
    %148 = vector.broadcast %cst_61 : f32 to vector<1x128xf32>
    %149 = arith.divf %147, %148 : vector<1x128xf32>
    %150 = vector.broadcast %149 : vector<1x128xf32> to vector<128x128xf32>
    %151 = arith.subf %145, %150 : vector<128x128xf32>
    %152 = arith.mulf %151, %151 : vector<128x128xf32>
    %cst_62 = arith.constant dense<0.000000e+00> : vector<128xf32>
    %153 = vector.multi_reduction <add>, %152, %cst_62 [0] : vector<128x128xf32> to vector<128xf32>
    %154 = vector.shape_cast %153 : vector<128xf32> to vector<1x128xf32>
    %cst_63 = arith.constant 1.280000e+02 : f32
    %155 = vector.broadcast %cst_63 : f32 to vector<1x128xf32>
    %156 = arith.divf %154, %155 : vector<1x128xf32>
    %cst_64 = arith.constant 9.99999974E-6 : f32
    %157 = vector.broadcast %cst_64 : f32 to vector<1x128xf32>
    %158 = arith.addf %156, %157 : vector<1x128xf32>
    %159 = math.rsqrt %158 : vector<1x128xf32>
    %160 = vector.broadcast %159 : vector<1x128xf32> to vector<128x128xf32>
    %161 = arith.mulf %151, %160 : vector<128x128xf32>
    %162 = arith.addf %161, %107 : vector<128x128xf32>
    %c4 = arith.constant 4 : index
    %c0_65 = arith.constant 0 : index
    %163 = vector.load %arg6[%c4, %c0_65] : memref<5x128xf32, #tpu.memory_space<vmem>>, vector<1x128xf32>
    %164 = arith.mulf %162, %162 : vector<128x128xf32>
    %c64_i32_66 = arith.constant 64 : i32
    %165 = tpu.dynamic_rotate %164 by %c64_i32_66 dim 1 : vector<128x128xf32>, i32 -> vector<128x128xf32>
    %166 = arith.addf %164, %165 : vector<128x128xf32>
    %cst_67 = arith.constant 9.99999971E-10 : f32
    %167 = vector.broadcast %cst_67 : f32 to vector<128x128xf32>
    %168 = arith.addf %166, %167 : vector<128x128xf32>
    %169 = math.rsqrt %168 : vector<128x128xf32>
    %170 = arith.mulf %168, %169 : vector<128x128xf32>
    %171 = vector.broadcast %163 : vector<1x128xf32> to vector<128x128xf32>
    %172 = arith.addf %170, %171 : vector<128x128xf32>
    %cst_68 = arith.constant 0.000000e+00 : f32
    %173 = vector.broadcast %cst_68 : f32 to vector<128x128xf32>
    %174 = arith.maximumf %172, %173 : vector<128x128xf32>
    %175 = arith.mulf %174, %169 : vector<128x128xf32>
    %176 = arith.mulf %175, %162 : vector<128x128xf32>
    %177 = arith.truncf %176 : vector<128x128xf32> to vector<128x128xbf16>
    %c0_69 = arith.constant 0 : index
    %c0_70 = arith.constant 0 : index
    %178 = vector.load %arg5[%c0_69, %c0_70] : memref<128x128xbf16, #tpu.memory_space<vmem>>, vector<128x128xbf16>
    %cst_71 = arith.constant dense<0.000000e+00> : vector<128x128xf32>
    %179 = tpu.matmul %177, %178, %cst_71 {dimension_numbers = #tpu.dot_dimension_numbers<[1], [0], [0], [1], [0, 0, 1, 1], [], []>} : vector<128x128xbf16>, vector<128x128xbf16>, vector<128x128xf32> -> vector<128x128xf32>
    %c0_72 = arith.constant 0 : index
    %c0_73 = arith.constant 0 : index
    %180 = vector.load %arg7[%c0_72, %c0_73] : memref<1x128xf32, #tpu.memory_space<vmem>>, vector<1x128xf32>
    %181 = vector.broadcast %180 : vector<1x128xf32> to vector<128x128xf32>
    %182 = arith.addf %179, %181 : vector<128x128xf32>
    %c0_74 = arith.constant 0 : index
    %c0_75 = arith.constant 0 : index
    %183 = vector.load %arg8[%c0_74, %c0_75] : memref<128x128xf32, #tpu.memory_space<vmem>>, vector<128x128xf32>
    tpu.vector_store %arg8[%c0_74, %c0_75], %182 {strides = array<i32>} : memref<128x128xf32, #tpu.memory_space<vmem>>, vector<128x128xf32>,
    return
  }
}

</mosaic_0001>

<bundles_post_ra>
// kernel: cvnn_forward_pallas.1
= control target key start
LH: loop header
LB: loop body
LE: loop exit
PB: predicated region body
PF: predicated region fallthrough
CT: control target
= control target key end

     0   :  { %13 = vsyncpa [#allocation3], 0  ;;  %s3296_s27 = smov [#allocation2]   ;;  %s4752_s0 = inlined_call_operand.vmem [shape: f32[128,16], index: 0, kind: input, shape index: {}]   ;;  %s4753_s1 = inlined_call_operand.vmem [shape: f32[128,16], index: 1, kind: input, shape index: {}]   ;;  %s4754_s2 = inlined_call_operand.vmem [shape: bf16[16,128], index: 2, kind: input, shape index: {}]   ;;  %s4755_s3 = inlined_call_operand.vmem [shape: bf16[16,128], index: 3, kind: input, shape index: {}]   ;;  %s4756_s4 = inlined_call_operand.vmem [shape: bf16[4,128,128], index: 4, kind: input, shape index: {}]   ;;  %s4757_s5 = inlined_call_operand.hbm [shape: bf16[128,128], index: 5, kind: input, shape index: {}]   ;;  %s4758_s6 = inlined_call_operand.vmem [shape: f32[5,128], index: 6, kind: input, shape index: {}]   ;;  %s4759_s7 = inlined_call_operand.vmem [shape: f32[1,128], index: 7, kind: input, shape index: {}]   ;;  %s4760_s8 = inlined_call_operand.vmem [shape: f32[128,128], index: 8, kind: output, shape index: {}]  }
   0x1   :  { %s29_s28 = sshll.u32 %s3296_s27, 4  ;;  %s3272_s9 = scalar_lea.hbm %s4757_s5, 1024  ;;  %s30_s28 = int_to_ptr.vmem [resolvable:$true] %s29_s28 }
   0x2   :  { %p3273_p0 = scmp.ne.s32.totalorder %s4757_s5, %s3272_s9  ;;  %p3276_p1 = scmp.lt.u32.totalorder %s3272_s9, %s4757_s5 }
   0x4   :  { %p3278_p2 = pnand %p3276_p1, %p3273_p0 }
   0x6   :  { %3281 = shalt.err (!%p3278_p2)
}
   0x7   :  { %s3282_s14 = scalar_lea.vmem %s30_s28, 1024  ;;  %p3287_p4 = scmp.lt.s32.totalorder %s30_s28, %s30_s28 }
   0x8   :  { %p3283_p3 = scmp.ne.s32.totalorder %s30_s28, %s3282_s14  ;;  %p3288_p5 = scmp.lt.s32.totalorder %s3282_s14, %s3282_s14 }
   0xa   :  { %p3289_p6 = por %p3288_p5, %p3287_p4 }
   0xc   :  { %p3290_p7 = pnand %p3289_p6, %p3283_p3 }
   0xe   :  { %3293 = shalt.err (!%p3290_p7)
}
   0xf   :  { %s3297_s15 = smov 64   ;;  %s3298_s16 = smov 4  }
  0x10   :  { %35 = dma.hbm_to_vmem [thread:$0]  %s4757_s5, 1024, %s30_s28, [#allocation3], %s3297_s15, %s3297_s15, %s3298_s16  }
  0x11   :  { %3294 = dma.done.wait [#allocation3], 1024  }
  0x12   :  { %3295 = vsyncadd [#allocation3], 4294966272  ;;  %v3060_v0 = vld [vmem:[%s4755_s3] sm:$0xff]   ;;  %v69_v2 = vld [vmem:[%s4753_s1 + $0x8] sm:$0xff]  ;;  %vm102_vm0 = vcmask 130048  }
  0x13   :  { %v68_v1 = vld [vmem:[%s4753_s1] sm:$0xff]  ;;  %v70_v3 = vld [vmem:[%s4753_s1 + $0x10] sm:$0xff]  ;;  %2845 = vmatprep.subr.bf16.mxu0 %v3060_v0  ;;  %v71_v5 = vld [vmem:[%s4753_s1 + $0x18] sm:$0xff] }
  0x14   :  { %v84_v4 = vpack.c.bf16 %v69_v2, %v68_v1  ;;  %2846 = vmatpush3.bf16.msra.mxu0 %v3060_v0  ;;  %v85_v6 = vpack.c.bf16 %v71_v5, %v70_v3  ;;  %v3061_v7 = vld [vmem:[%s4754_s2] sm:$0xff]   ;;  %v73_v9 = vld [vmem:[%s4753_s1 + $0x28] sm:$0xff]  ;;  %v74_v11 = vld [vmem:[%s4753_s1 + $0x30] sm:$0xff] }
  0x15   :  { %v72_v8 = vld [vmem:[%s4753_s1 + $0x20] sm:$0xff]  ;;  %2863 = vmatprep.subr.bf16.mxu0 %v3061_v7  ;;  %v75_v12 = vld [vmem:[%s4753_s1 + $0x38] sm:$0xff]  ;;  %v77_v14 = vld [vmem:[%s4753_s1 + $0x48] sm:$0xff] }
  0x16   :  { %2847 = vmatprep.mubr.msk.bf16.mxu0 %vm102_vm0, %v84_v4  ;;  %v86_v10 = vpack.c.bf16 %v73_v9, %v72_v8  ;;  %v76_v13 = vld [vmem:[%s4753_s1 + $0x40] sm:$0xff]  ;;  %v87_v15 = vpack.c.bf16 %v75_v12, %v74_v11  ;;  %v78_v17 = vld [vmem:[%s4753_s1 + $0x50] sm:$0xff]  ;;  %v79_v18 = vld [vmem:[%s4753_s1 + $0x58] sm:$0xff] }
  0x17   :  { %2848 = vmatmul.mubr.msk.bf16.vlgmr.msra.gmra.mrb[0].mxu0 %vm102_vm0, %v85_v6  ;;  %v88_v16 = vpack.c.bf16 %v77_v14, %v76_v13  ;;  %v80_v19 = vld [vmem:[%s4753_s1 + $0x60] sm:$0xff]  ;;  %v81_v20 = vld [vmem:[%s4753_s1 + $0x68] sm:$0xff]  ;;  %v89_v21 = vpack.c.bf16 %v79_v18, %v78_v17  ;;  %v82_v23 = vld [vmem:[%s4753_s1 + $0x70] sm:$0xff] }
  0x18   :  { %2864 = vmatpush3.bf16.msra.mxu0 %v3061_v7  ;;  %2851 = vmatprep.mubr.msk.bf16.mxu0 %vm102_vm0, %v86_v10  ;;  %v90_v22 = vpack.c.bf16 %v81_v20, %v80_v19  ;;  %v83_v24 = vld [vmem:[%s4753_s1 + $0x78] sm:$0xff]  ;;  %v44_v25 = vld [vmem:[%s4752_s0] sm:$0xff]  ;;  %v45_v26 = vld [vmem:[%s4752_s0 + $0x8] sm:$0xff] }
  0x19   :  { %v91_v27 = vpack.c.bf16 %v83_v24, %v82_v23  ;;  %v60_v28 = vpack.c.bf16 %v45_v26, %v44_v25  ;;  %v46_v29 = vld [vmem:[%s4752_s0 + $0x10] sm:$0xff]  ;;  %v47_v30 = vld [vmem:[%s4752_s0 + $0x18] sm:$0xff]  ;;  %v48_v31 = vld [vmem:[%s4752_s0 + $0x20] sm:$0xff] }
  0x1a   :  { %v49_v32 = vld [vmem:[%s4752_s0 + $0x28] sm:$0xff]  ;;  %v61_v33 = vpack.c.bf16 %v47_v30, %v46_v29  ;;  %v50_v35 = vld [vmem:[%s4752_s0 + $0x30] sm:$0xff]  ;;  %v51_v36 = vld [vmem:[%s4752_s0 + $0x38] sm:$0xff] }
  0x1b   :  { %v62_v34 = vpack.c.bf16 %v49_v32, %v48_v31  ;;  %v52_v37 = vld [vmem:[%s4752_s0 + $0x40] sm:$0xff]  ;;  %v53_v38 = vld [vmem:[%s4752_s0 + $0x48] sm:$0xff]  ;;  %v63_v39 = vpack.c.bf16 %v51_v36, %v50_v35  ;;  %v54_v41 = vld [vmem:[%s4752_s0 + $0x50] sm:$0xff] }
  0x1c   :  { %v64_v40 = vpack.c.bf16 %v53_v38, %v52_v37  ;;  %v55_v42 = vld [vmem:[%s4752_s0 + $0x58] sm:$0xff]  ;;  %v56_v43 = vld [vmem:[%s4752_s0 + $0x60] sm:$0xff]  ;;  %v57_v44 = vld [vmem:[%s4752_s0 + $0x68] sm:$0xff] }
  0x1d   :  { %v65_v45 = vpack.c.bf16 %v55_v42, %v54_v41  ;;  %v66_v46 = vpack.c.bf16 %v57_v44, %v56_v43  ;;  %v58_v47 = vld [vmem:[%s4752_s0 + $0x70] sm:$0xff]  ;;  %v59_v48 = vld [vmem:[%s4752_s0 + $0x78] sm:$0xff] }
  0x1e   :  { %v67_v49 = vpack.c.bf16 %v59_v48, %v58_v47 }
  0x1f   :  { %2852 = vmatmul.mubr.msk.bf16.gmra.mrb[4].mxu0 %vm102_vm0, %v87_v15 }
  0x20   :  { %2855 = vmatprep.mubr.msk.bf16.mxu0 %vm102_vm0, %v88_v16 }
  0x27   :  { %2856 = vmatmul.mubr.msk.bf16.gmra.mrb[8].mxu0 %vm102_vm0, %v89_v21 }
  0x28   :  { %2859 = vmatprep.mubr.msk.bf16.mxu0 %vm102_vm0, %v90_v22 }
  0x2f   :  { %2860 = vmatmul.mubr.msk.bf16.gmra.mrb[12].mxu0 %vm102_vm0, %v91_v27 }
  0x30   :  { %2865 = vmatprep.mubr.msk.bf16.mxu0 %vm102_vm0, %v60_v28 }
  0x37   :  { %2866 = vmatmul.mubr.msk.bf16.vlgmr.msra.gmra.mrb[0].mxu0 %vm102_vm0, %v61_v33 }
  0x38   :  { %2869 = vmatprep.mubr.msk.bf16.mxu0 %vm102_vm0, %v62_v34 }
  0x3f   :  { %2870 = vmatmul.mubr.msk.bf16.gmra.mrb[4].mxu0 %vm102_vm0, %v63_v39 }
  0x40   :  { %2873 = vmatprep.mubr.msk.bf16.mxu0 %vm102_vm0, %v64_v40 }
  0x47   :  { %2874 = vmatmul.mubr.msk.bf16.gmra.mrb[8].mxu0 %vm102_vm0, %v65_v45 }
  0x48   :  { %2877 = vmatprep.mubr.msk.bf16.mxu0 %vm102_vm0, %v66_v46 }
  0x4f   :  { %2878 = vmatmul.mubr.msk.bf16.gmra.mrb[12].mxu0 %vm102_vm0, %v67_v49 }
 0x10a   :  { %v2867_v50 = vpop.f32.mrb[0].mxu0 }
 0x10b   :  { %v288_v51 = vpop.f32.mrb[1].mxu0 }
 0x10c   :  { %v2868_v52 = vpop.f32.mrb[2].mxu0 }
 0x10d   :  { %v291_v53 = vpop.f32.mrb[3].mxu0 }
 0x10e   :  { %v351_v54 = vadd.f32 %v291_v53, %v288_v51 }
 0x110   :  { %v352_v55 = vadd.f32 %v2867_v50, %v351_v54 }
 0x112   :  { %v2871_v56 = vpop.f32.mrb[4].mxu0  ;;  %v353_v57 = vadd.f32 %v2868_v52, %v352_v55 }
 0x113   :  { %v304_v58 = vpop.f32.mrb[5].mxu0 }
 0x114   :  { %v354_v59 = vadd.f32 %v353_v57, %v304_v58  ;;  %v2872_v60 = vpop.f32.mrb[6].mxu0 }
 0x115   :  { %v307_v61 = vpop.f32.mrb[7].mxu0 }
 0x116   :  { %v355_v62 = vadd.f32 %v354_v59, %v307_v61 }
 0x118   :  { %v356_v63 = vadd.f32 %v2871_v56, %v355_v62 }
 0x11a   :  { %v2875_v0 = vpop.f32.mrb[8].mxu0  ;;  %v357_v1 = vadd.f32 %v2872_v60, %v356_v63 }
 0x11b   :  { %v320_v2 = vpop.f32.mrb[9].mxu0 }
 0x11c   :  { %v358_v3 = vadd.f32 %v357_v1, %v320_v2  ;;  %v2876_v4 = vpop.f32.mrb[10].mxu0 }
 0x11d   :  { %v323_v5 = vpop.f32.mrb[11].mxu0 }
 0x11e   :  { %v359_v6 = vadd.f32 %v358_v3, %v323_v5 }
 0x120   :  { %v360_v7 = vadd.f32 %v2875_v0, %v359_v6 }
 0x122   :  { %v2879_v8 = vpop.f32.mrb[12].mxu0  ;;  %v361_v9 = vadd.f32 %v2876_v4, %v360_v7 }
 0x123   :  { %v336_v10 = vpop.f32.mrb[13].mxu0 }
 0x124   :  { %v362_v11 = vadd.f32 %v361_v9, %v336_v10  ;;  %v2880_v12 = vpop.f32.mrb[14].mxu0 }
 0x125   :  { %v339_v13 = vpop.f32.mrb[15].mxu0 }
 0x126   :  { %v363_v14 = vadd.f32 %v362_v11, %v339_v13 }
 0x128   :  { %v364_v15 = vadd.f32 %v2879_v8, %v363_v14 }
 0x12a   :  { %v365_v16 = vadd.f32 %v2880_v12, %v364_v15  ;;  %v3062_v15 = vld [vmem:[%s4756_s4] sm:$0xff]  }
 0x12b   :  { %2881 = vmatprep.subr.bf16.mxu1 %v3062_v15 }
 0x12c   :  { %v366_v17 = vrot.slane %v365_v16, 4  ;;  %2882 = vmatpush3.bf16.msra.mxu1 %v3062_v15  ;;  %v3641_v15 = vld [vmem:[%s4758_s6] ss:$0 sm:$0xff] }
 0x12e   :  { %v367_v18 = vadd.f32 %v366_v17, %v365_v16  ;;  %v3063_v17 = vld [vmem:[%s4756_s4 + $0x8] sm:$0xff]  }
 0x12f   :  { %2883 = vmatprep.subr.bf16.mxu1 %v3063_v17 }
 0x130   :  { %v368_v19 = vrot.slane %v367_v18, 2  ;;  %2884 = vmatpush3.bf16.msra.mxu1 %v3063_v17 }
 0x132   :  { %v369_v20 = vadd.f32 %v368_v19, %v367_v18 }
 0x134   :  { %v370_v21 = vrot.slane %v369_v20, 1 }
 0x136   :  { %v371_v22 = vadd.f32 %v370_v21, %v369_v20 }
 0x138   :  { %v373_v23 = vmul.f32 0.0078125, %v371_v22 }
 0x13a   :  { %v3476_v24 = vsub.f32 %v339_v13, %v373_v23  ;;  %v374_v25 = vsub.f32 %v288_v51, %v373_v23  ;;  %v375_v26 = vsub.f32 %v291_v53, %v373_v23  ;;  %v376_v27 = vsub.f32 %v2867_v50, %v373_v23 }
 0x13b   :  { %v377_v28 = vsub.f32 %v2868_v52, %v373_v23  ;;  %v378_v29 = vsub.f32 %v304_v58, %v373_v23  ;;  %v379_v30 = vsub.f32 %v307_v61, %v373_v23  ;;  %v380_v31 = vsub.f32 %v2871_v56, %v373_v23 }
 0x13c   :  { %v381_v32 = vsub.f32 %v2872_v60, %v373_v23  ;;  %v3478_v33 = vsub.f32 %v320_v2, %v373_v23  ;;  %v3480_v34 = vsub.f32 %v323_v5, %v373_v23  ;;  %v3482_v35 = vsub.f32 %v2875_v0, %v373_v23 }
 0x13d   :  { %v3484_v36 = vsub.f32 %v2876_v4, %v373_v23  ;;  %v3486_v37 = vsub.f32 %v336_v10, %v373_v23  ;;  %v3488_v38 = vsub.f32 %v2879_v8, %v373_v23  ;;  %v3490_v39 = vsub.f32 %v2880_v12, %v373_v23 }
 0x13e   :  { %v390_v40 = vmul.f32 %v374_v25, %v374_v25  ;;  %v391_v41 = vmul.f32 %v375_v26, %v375_v26  ;;  %v392_v42 = vmul.f32 %v376_v27, %v376_v27  ;;  %v393_v44 = vmul.f32 %v377_v28, %v377_v28 }
 0x13f   :  { %v394_v46 = vmul.f32 %v378_v29, %v378_v29  ;;  %v395_v48 = vmul.f32 %v379_v30, %v379_v30  ;;  %v396_v50 = vmul.f32 %v380_v31, %v380_v31  ;;  %v397_v52 = vmul.f32 %v381_v32, %v381_v32 }
 0x140   :  { %v406_v43 = vadd.f32 %v391_v41, %v390_v40  ;;  %v398_v54 = vmul.f32 %v3478_v33, %v3478_v33  ;;  %v399_v56 = vmul.f32 %v3480_v34, %v3480_v34  ;;  %v400_v58 = vmul.f32 %v3482_v35, %v3482_v35 }
 0x141   :  { %v401_v60 = vmul.f32 %v3484_v36, %v3484_v36  ;;  %v402_v62 = vmul.f32 %v3486_v37, %v3486_v37  ;;  %v403_v0 = vmul.f32 %v3476_v24, %v3476_v24  ;;  %v404_v2 = vmul.f32 %v3488_v38, %v3488_v38 }
 0x142   :  { %v407_v45 = vadd.f32 %v406_v43, %v392_v42  ;;  %v405_v4 = vmul.f32 %v3490_v39, %v3490_v39 }
 0x144   :  { %v408_v47 = vadd.f32 %v407_v45, %v393_v44  ;;  %v3067_v45 = vld [vmem:[%s4756_s4 + $0x28] sm:$0xff]  }
 0x146   :  { %v409_v49 = vadd.f32 %v408_v47, %v394_v46 }
 0x148   :  { %v410_v51 = vadd.f32 %v409_v49, %v395_v48  ;;  %v3068_v48 = vld [vmem:[%s4756_s4 + $0x30] sm:$0xff]  }
 0x14a   :  { %v411_v53 = vadd.f32 %v410_v51, %v396_v50  ;;  %v3069_v51 = vld [vmem:[%s4756_s4 + $0x38] sm:$0xff]  }
 0x14c   :  { %v412_v55 = vadd.f32 %v411_v53, %v397_v52 }
 0x14e   :  { %v413_v57 = vadd.f32 %v412_v55, %v398_v54 }
 0x150   :  { %v414_v59 = vadd.f32 %v413_v57, %v399_v56 }
 0x152   :  { %v415_v61 = vadd.f32 %v414_v59, %v400_v58 }
 0x154   :  { %v416_v63 = vadd.f32 %v415_v61, %v401_v60 }
 0x156   :  { %v417_v1 = vadd.f32 %v416_v63, %v402_v62 }
 0x158   :  { %v418_v3 = vadd.f32 %v417_v1, %v403_v0 }
 0x15a   :  { %v419_v5 = vadd.f32 %v418_v3, %v404_v2 }
 0x15c   :  { %v420_v6 = vadd.f32 %v419_v5, %v405_v4 }
 0x15e   :  { %v421_v7 = vrot.slane %v420_v6, 4 }
 0x160   :  { %v422_v8 = vadd.f32 %v421_v7, %v420_v6 }
 0x162   :  { %v423_v9 = vrot.slane %v422_v8, 2 }
 0x164   :  { %v424_v10 = vadd.f32 %v423_v9, %v422_v8 }
 0x166   :  { %v425_v11 = vrot.slane %v424_v10, 1 }
 0x168   :  { %v426_v12 = vadd.f32 %v425_v11, %v424_v10 }
 0x16a   :  { %v427_v13 = vmul.f32 0.0078125, %v426_v12 }
 0x16c   :  { %v428_v14 = vadd.f32 1e-05, %v427_v13 }
 0x16e   :  { %3102 = vrsqrt.f32 %v428_v14 }
 0x178   :  { %v3103_v16 = vpop.eup %3102 }
 0x179   :  { %v3514_v18 = vmul.f32 %v3103_v16, %v376_v27  ;;  %v3516_v19 = vmul.f32 %v3103_v16, %v374_v25  ;;  %v3518_v20 = vmul.f32 %v3103_v16, %v377_v28  ;;  %v3520_v21 = vmul.f32 %v3103_v16, %v375_v26  ;;  %v3064_v26 = vld [vmem:[%s4756_s4 + $0x10] sm:$0xff]  }
 0x17a   :  { %v3522_v22 = vmul.f32 %v3103_v16, %v379_v30  ;;  %v3524_v23 = vmul.f32 %v3103_v16, %v378_v29  ;;  %v3526_v40 = vmul.f32 %v3103_v16, %v381_v32  ;;  %v3528_v41 = vmul.f32 %v3103_v16, %v380_v31  ;;  %2885 = vmatprep.subr.bf16.mxu1 %v3064_v26 }
 0x17b   :  { %v449_v42 = vmul.f32 %v3514_v18, %v3514_v18  ;;  %v447_v25 = vmul.f32 %v3516_v19, %v3516_v19  ;;  %v3540_v27 = vmul.f32 %v3103_v16, %v3480_v34  ;;  %v3543_v28 = vmul.f32 %v3103_v16, %v3478_v33  ;;  %2886 = vmatpush3.bf16.msra.mxu1 %v3064_v26 }
 0x17c   :  { %v3546_v29 = vmul.f32 %v3103_v16, %v3484_v36  ;;  %v3549_v30 = vmul.f32 %v3103_v16, %v3482_v35  ;;  %v3552_v31 = vmul.f32 %v3103_v16, %v3476_v24  ;;  %v3555_v32 = vmul.f32 %v3103_v16, %v3486_v37  ;;  %v3065_v24 = vld [vmem:[%s4756_s4 + $0x18] sm:$0xff]  }
 0x17d   :  { %467 = vrot.lane.b32.xlu1 %v449_v42, %s3297_s15  ;;  %463 = vrot.lane.b32.xlu0 %v447_v25, %s3297_s15  ;;  %v3558_v43 = vmul.f32 %v3103_v16, %v3490_v39  ;;  %v450_v33 = vmul.f32 %v3518_v20, %v3518_v20  ;;  %v448_v34 = vmul.f32 %v3520_v21, %v3520_v21 }
 0x17e   :  { %v3565_v36 = vmul.f32 %v3103_v16, %v3488_v38  ;;  %2887 = vmatprep.subr.bf16.mxu1 %v3065_v24  ;;  %v452_v35 = vmul.f32 %v3522_v22, %v3522_v22  ;;  %v451_v37 = vmul.f32 %v3524_v23, %v3524_v23  ;;  %v3066_v38 = vld [vmem:[%s4756_s4 + $0x20] sm:$0xff]   ;;  %v454_v39 = vmul.f32 %v3526_v40, %v3526_v40 }
 0x17f   :  { %2888 = vmatpush3.bf16.msra.mxu1 %v3065_v24  ;;  %v453_v44 = vmul.f32 %v3528_v41, %v3528_v41  ;;  %v456_v46 = vmul.f32 %v3540_v27, %v3540_v27  ;;  %v455_v47 = vmul.f32 %v3543_v28, %v3543_v28  ;;  %v3601_v49 = vmul.f32 %v3546_v29, %v3546_v29 }
 0x180   :  { %2889 = vmatprep.subr.bf16.mxu1 %v3066_v38  ;;  %v3605_v50 = vmul.f32 %v3549_v30, %v3549_v30  ;;  %v3616_v52 = vmul.f32 %v3552_v31, %v3552_v31  ;;  %v3620_v53 = vmul.f32 %v3555_v32, %v3555_v32  ;;  %v3628_v54 = vmul.f32 %v3558_v43, %v3558_v43 }
 0x181   :  { %469 = vrot.lane.b32.xlu1 %v450_v33, %s3297_s15  ;;  %465 = vrot.lane.b32.xlu0 %v448_v34, %s3297_s15  ;;  %v3632_v55 = vmul.f32 %v3565_v36, %v3565_v36 }
 0x183   :  { %2890 = vmatpush3.bf16.msra.mxu1 %v3066_v38 }
 0x184   :  { %2891 = vmatprep.subr.bf16.mxu1 %v3067_v45 }
 0x185   :  { %473 = vrot.lane.b32.xlu1 %v452_v35, %s3297_s15  ;;  %471 = vrot.lane.b32.xlu0 %v451_v37, %s3297_s15 }
 0x187   :  { %2892 = vmatpush3.bf16.msra.mxu1 %v3067_v45 }
 0x188   :  { %2893 = vmatprep.subr.bf16.mxu1 %v3068_v48 }
 0x189   :  { %477 = vrot.lane.b32.xlu1 %v454_v39, %s3297_s15  ;;  %475 = vrot.lane.b32.xlu0 %v453_v44, %s3297_s15 }
 0x18b   :  { %2894 = vmatpush3.bf16.msra.mxu1 %v3068_v48 }
 0x18c   :  { %2895 = vmatprep.subr.bf16.mxu1 %v3069_v51 }
 0x18d   :  { %481 = vrot.lane.b32.xlu1 %v456_v46, %s3297_s15  ;;  %479 = vrot.lane.b32.xlu0 %v455_v47, %s3297_s15 }
 0x18f   :  { %2896 = vmatpush3.bf16.msra.mxu1 %v3069_v51 }
 0x191   :  { %485 = vrot.lane.b32.xlu1 %v3601_v49, %s3297_s15  ;;  %483 = vrot.lane.b32.xlu0 %v3605_v50, %s3297_s15 }
 0x195   :  { %489 = vrot.lane.b32.xlu1 %v3616_v52, %s3297_s15  ;;  %487 = vrot.lane.b32.xlu0 %v3620_v53, %s3297_s15 }
 0x199   :  { %493 = vrot.lane.b32.xlu1 %v3628_v54, %s3297_s15  ;;  %491 = vrot.lane.b32.xlu0 %v3632_v55, %s3297_s15 }
 0x1ef   :  { %v468_v56 = vpop.permute.xlu1 %467  ;;  %v464_v57 = vpop.permute.xlu0 %463 }
 0x1f0   :  { %v497_v58 = vadd.f32 %v468_v56, %v449_v42  ;;  %v495_v59 = vadd.f32 %v464_v57, %v447_v25 }
 0x1f2   :  { %v513_v60 = vadd.f32 1e-09, %v497_v58  ;;  %v511_v61 = vadd.f32 1e-09, %v495_v59 }
 0x1f3   :  { %v470_v62 = vpop.permute.xlu1 %469  ;;  %v466_v63 = vpop.permute.xlu0 %465 }
 0x1f4   :  { %3104 = vrsqrt.f32 %v513_v60  ;;  %v498_v0 = vadd.f32 %v470_v62, %v450_v33  ;;  %v496_v1 = vadd.f32 %v466_v63, %v448_v34 }
 0x1f5   :  { %3106 = vrsqrt.f32 %v511_v61 }
 0x1f6   :  { %v514_v2 = vadd.f32 1e-09, %v498_v0  ;;  %v512_v3 = vadd.f32 1e-09, %v496_v1 }
 0x1f7   :  { %v474_v4 = vpop.permute.xlu1 %473  ;;  %v472_v5 = vpop.permute.xlu0 %471 }
 0x1f8   :  { %3108 = vrsqrt.f32 %v514_v2  ;;  %v500_v6 = vadd.f32 %v474_v4, %v452_v35  ;;  %v499_v7 = vadd.f32 %v472_v5, %v451_v37 }
 0x1f9   :  { %3110 = vrsqrt.f32 %v512_v3 }
 0x1fa   :  { %v516_v8 = vadd.f32 1e-09, %v500_v6  ;;  %v515_v9 = vadd.f32 1e-09, %v499_v7 }
 0x1fb   :  { %v478_v10 = vpop.permute.xlu1 %477  ;;  %v476_v11 = vpop.permute.xlu0 %475 }
 0x1fc   :  { %3112 = vrsqrt.f32 %v516_v8  ;;  %v502_v12 = vadd.f32 %v478_v10, %v454_v39  ;;  %v501_v13 = vadd.f32 %v476_v11, %v453_v44 }
 0x1fd   :  { %3114 = vrsqrt.f32 %v515_v9 }
 0x1fe   :  { %v3105_v14 = vpop.eup %3104  ;;  %v518_v16 = vadd.f32 1e-09, %v502_v12  ;;  %v517_v17 = vadd.f32 1e-09, %v501_v13 }
 0x1ff   :  { %v3107_v42 = vpop.eup %3106  ;;  %v545_v25 = vmul.f32 %v3105_v14, %v513_v60  ;;  %v482_v26 = vpop.permute.xlu1 %481 }
 0x200   :  { %v480_v33 = vpop.permute.xlu0 %479  ;;  %v543_v34 = vmul.f32 %v3107_v42, %v511_v61  ;;  %3116 = vrsqrt.f32 %v518_v16  ;;  %v504_v24 = vadd.f32 %v482_v26, %v456_v46 }
 0x201   :  { %v503_v35 = vadd.f32 %v480_v33, %v455_v47  ;;  %v565_v37 = vadd.f32 %v3641_v15, %v545_v25  ;;  %3118 = vrsqrt.f32 %v517_v17 }
 0x202   :  { %v3109_v38 = vpop.eup %3108  ;;  %v563_v39 = vadd.f32 %v3641_v15, %v543_v34  ;;  %v520_v44 = vadd.f32 1e-09, %v504_v24 }
 0x203   :  { %v3645_v45 = vadd.f32 1e-09, %v503_v35  ;;  %v3111_v48 = vpop.eup %3110  ;;  %v581_v51 = vmax.f32 %v565_v37, 0.0  ;;  %v546_v56 = vmul.f32 %v3109_v38, %v514_v2  ;;  %v486_v57 = vpop.permute.xlu1 %485 }
 0x204   :  { %v484_v58 = vpop.permute.xlu0 %483  ;;  %v579_v59 = vmax.f32 %v563_v39, 0.0  ;;  %v544_v60 = vmul.f32 %v3111_v48, %v512_v3  ;;  %3120 = vrsqrt.f32 %v520_v44  ;;  %v506_v46 = vadd.f32 %v486_v57, %v3601_v49 }
 0x205   :  { %v597_v47 = vmul.f32 %v3105_v14, %v581_v51  ;;  %v566_v61 = vadd.f32 %v3641_v15, %v546_v56  ;;  %3122 = vrsqrt.f32 %v3645_v45  ;;  %v505_v62 = vadd.f32 %v484_v58, %v3605_v50 }
 0x206   :  { %v3113_v63 = vpop.eup %3112  ;;  %v564_v0 = vadd.f32 %v3641_v15, %v544_v60  ;;  %v522_v1 = vadd.f32 1e-09, %v506_v46  ;;  %v595_v4 = vmul.f32 %v3107_v42, %v579_v59 }
 0x207   :  { %v3115_v2 = vpop.eup %3114  ;;  %v582_v5 = vmax.f32 %v566_v61, 0.0  ;;  %v548_v6 = vmul.f32 %v3113_v63, %v516_v8  ;;  %v521_v7 = vadd.f32 1e-09, %v505_v62  ;;  %v490_v3 = vpop.permute.xlu1 %489  ;;  %v3653_v49 = vmul.f32 %v597_v47, %v3514_v18 }
 0x208   :  { %v488_v10 = vpop.permute.xlu0 %487  ;;  %v580_v11 = vmax.f32 %v564_v0, 0.0  ;;  %v547_v12 = vmul.f32 %v3115_v2, %v515_v9  ;;  %3124 = vrsqrt.f32 %v522_v1  ;;  %v508_v13 = vadd.f32 %v490_v3, %v3616_v52 }
 0x209   :  { %v598_v50 = vmul.f32 %v3109_v38, %v582_v5  ;;  %v568_v14 = vadd.f32 %v3641_v15, %v548_v6  ;;  %3126 = vrsqrt.f32 %v521_v7  ;;  %v507_v42 = vadd.f32 %v488_v10, %v3620_v53 }
 0x20a   :  { %v3117_v25 = vpop.eup %3116  ;;  %v567_v8 = vadd.f32 %v3641_v15, %v547_v12  ;;  %v524_v26 = vadd.f32 1e-09, %v508_v13  ;;  %v596_v33 = vmul.f32 %v3111_v48, %v580_v11  ;;  %v3660_v34 = vmul.f32 %v595_v4, %v3516_v19 }
 0x20b   :  { %v3119_v18 = vpop.eup %3118  ;;  %v584_v24 = vmax.f32 %v568_v14, 0.0  ;;  %v550_v9 = vmul.f32 %v3117_v25, %v518_v16  ;;  %v523_v35 = vadd.f32 1e-09, %v507_v42  ;;  %v494_v37 = vpop.permute.xlu1 %493  ;;  %v3663_v38 = vmul.f32 %v598_v50, %v3518_v20 }
 0x20c   :  { %v492_v52 = vpop.permute.xlu0 %491  ;;  %v583_v39 = vmax.f32 %v567_v8, 0.0  ;;  %v549_v51 = vmul.f32 %v3119_v18, %v517_v17  ;;  %3128 = vrsqrt.f32 %v524_v26  ;;  %v510_v53 = vadd.f32 %v494_v37, %v3628_v54 }
 0x20d   :  { %v600_v56 = vmul.f32 %v3113_v63, %v584_v24  ;;  %v570_v48 = vadd.f32 %v3641_v15, %v550_v9  ;;  %3130 = vrsqrt.f32 %v523_v35  ;;  %v509_v19 = vadd.f32 %v492_v52, %v3632_v55 }
 0x20e   :  { %v3121_v57 = vpop.eup %3120  ;;  %v599_v58 = vmul.f32 %v3115_v2, %v583_v39  ;;  %v569_v16 = vadd.f32 %v3641_v15, %v549_v51  ;;  %v526_v59 = vadd.f32 1e-09, %v510_v53  ;;  %v3670_v60 = vmul.f32 %v596_v33, %v3520_v21 }
 0x20f   :  { %v3123_v20 = vpop.eup %3122  ;;  %v586_v46 = vmax.f32 %v570_v48, 0.0  ;;  %v552_v17 = vmul.f32 %v3121_v57, %v520_v44  ;;  %v525_v47 = vadd.f32 1e-09, %v509_v19  ;;  %v628_v54 = vpack.c.bf16 %v3663_v38, %v3653_v49 }
 0x210   :  { %v585_v61 = vmax.f32 %v569_v16, 0.0  ;;  %v551_v62 = vmul.f32 %v3123_v20, %v3645_v45  ;;  %3132 = vrsqrt.f32 %v526_v59  ;;  %v627_v55 = vpack.c.bf16 %v3670_v60, %v3660_v34 }
 0x211   :  { %v602_v63 = vmul.f32 %v3117_v25, %v586_v46  ;;  %v572_v0 = vadd.f32 %v3641_v15, %v552_v17  ;;  %3134 = vrsqrt.f32 %v525_v47  ;;  %v3679_v21 = vmul.f32 %v599_v58, %v3524_v23 }
 0x212   :  { %v3125_v4 = vpop.eup %3124  ;;  %v601_v44 = vmul.f32 %v3119_v18, %v585_v61  ;;  %v571_v2 = vadd.f32 %v3641_v15, %v551_v62  ;;  %2897 = vmatprep.mubr.bf16.mxu1 %v627_v55  ;;  %v3683_v5 = vmul.f32 %v600_v56, %v3522_v22 }
 0x213   :  { %v3127_v45 = vpop.eup %3126  ;;  %v588_v6 = vmax.f32 %v572_v0, 0.0  ;;  %v554_v3 = vmul.f32 %v3125_v4, %v522_v1  ;;  %2898 = vmatmul.mubr.bf16.vlgmr.msra.gmra.mrb[0].mxu1 %v628_v54  ;;  %v3686_v10 = vmul.f32 %v602_v63, %v3526_v40 }
 0x214   :  { %v587_v11 = vmax.f32 %v571_v2, 0.0  ;;  %v553_v12 = vmul.f32 %v3127_v45, %v521_v7  ;;  %v629_v23 = vpack.c.bf16 %v3683_v5, %v3679_v21  ;;  %v3691_v13 = vmul.f32 %v601_v44, %v3528_v41 }
 0x215   :  { %v604_v50 = vmul.f32 %v3121_v57, %v588_v6  ;;  %v574_v14 = vadd.f32 %v3641_v15, %v554_v3 }
 0x216   :  { %v3129_v22 = vpop.eup %3128  ;;  %v603_v42 = vmul.f32 %v3123_v20, %v587_v11  ;;  %v573_v25 = vadd.f32 %v3641_v15, %v553_v12  ;;  %2901 = vmatprep.mubr.bf16.mxu1 %v629_v23  ;;  %v630_v7 = vpack.c.bf16 %v3686_v10, %v3691_v13 }
 0x217   :  { %v3131_v1 = vpop.eup %3130  ;;  %v590_v8 = vmax.f32 %v574_v14, 0.0  ;;  %v556_v40 = vmul.f32 %v3129_v22, %v524_v26  ;;  %v3698_v33 = vmul.f32 %v604_v50, %v3540_v27 }
 0x218   :  { %v589_v18 = vmax.f32 %v573_v25, 0.0  ;;  %v555_v41 = vmul.f32 %v3131_v1, %v523_v35  ;;  %v3701_v24 = vmul.f32 %v603_v42, %v3543_v28 }
 0x219   :  { %v606_v9 = vmul.f32 %v3125_v4, %v590_v8  ;;  %v576_v37 = vadd.f32 %v3641_v15, %v556_v40 }
 0x21a   :  { %v3133_v52 = vpop.eup %3132  ;;  %v605_v39 = vmul.f32 %v3127_v45, %v589_v18  ;;  %v575_v51 = vadd.f32 %v3641_v15, %v555_v41  ;;  %v631_v26 = vpack.c.bf16 %v3698_v33, %v3701_v24 }
 0x21b   :  { %v3135_v53 = vpop.eup %3134  ;;  %v592_v56 = vmax.f32 %v576_v37, 0.0  ;;  %v558_v48 = vmul.f32 %v3133_v52, %v526_v59  ;;  %2902 = vmatmul.mubr.bf16.gmra.mrb[4].mxu1 %v630_v7  ;;  %v3708_v27 = vmul.f32 %v606_v9, %v3546_v29 }
 0x21c   :  { %v591_v35 = vmax.f32 %v575_v51, 0.0  ;;  %v557_v28 = vmul.f32 %v3135_v53, %v525_v47  ;;  %2905 = vmatprep.mubr.bf16.mxu1 %v631_v26  ;;  %v3711_v19 = vmul.f32 %v605_v39, %v3549_v30 }
 0x21d   :  { %v608_v57 = vmul.f32 %v3129_v22, %v592_v56  ;;  %v578_v58 = vadd.f32 %v3641_v15, %v558_v48  ;;  %v3070_v22 = vld [vmem:[%s4756_s4 + $0x40] sm:$0xff]  }
 0x21e   :  { %4771 = vst [vmem:[#allocation5_spill] sm:$0xff] %v3711_v19  ;;  %v607_v16 = vmul.f32 %v3131_v1, %v591_v35  ;;  %v577_v20 = vadd.f32 %v3641_v15, %v557_v28  ;;  %v632_v59 = vpack.c.bf16 %v3708_v27, %v3711_v19  ;;  %2913 = vmatprep.subr.bf16.mxu1 %v3070_v22 }
 0x21f   :  { %v594_v46 = vmax.f32 %v578_v58, 0.0  ;;  %v3718_v17 = vmul.f32 %v608_v57, %v3552_v31  ;;  %2914 = vmatpush3.bf16.msra.mxu1 %v3070_v22 }
 0x220   :  { %v593_v29 = vmax.f32 %v577_v20, 0.0  ;;  %v3721_v47 = vmul.f32 %v607_v16, %v3555_v32 }
 0x221   :  { %4772 = vst [vmem:[#allocation6_spill] sm:$0xff] %v3718_v17  ;;  %v610_v54 = vmul.f32 %v3133_v52, %v594_v46 }
 0x222   :  { %4773 = vst [vmem:[#allocation7_spill] sm:$0xff] %v3721_v47  ;;  %v609_v30 = vmul.f32 %v3135_v53, %v593_v29  ;;  %v633_v61 = vpack.c.bf16 %v3718_v17, %v3721_v47 }
 0x223   :  { %2906 = vmatmul.mubr.bf16.gmra.mrb[8].mxu1 %v632_v59  ;;  %v3726_v62 = vmul.f32 %v610_v54, %v3558_v43 }
 0x224   :  { %2909 = vmatprep.mubr.bf16.mxu1 %v633_v61  ;;  %v3729_v15 = vmul.f32 %v609_v30, %v3565_v36 }
 0x225   :  { %4774 = vst [vmem:[#allocation8_spill] sm:$0xff] %v3726_v62 }
 0x226   :  { %4775 = vst [vmem:[#allocation9_spill] sm:$0xff] %v3729_v15  ;;  %v634_v31 = vpack.c.bf16 %v3726_v62, %v3729_v15 }
 0x22b   :  { %2910 = vmatmul.mubr.bf16.gmra.mrb[12].mxu1 %v634_v31 }
 0x2e6   :  { %v2899_v55 = vpop.f32.mrb[0].mxu1 }
 0x2e7   :  { %v733_v32 = vpop.f32.mrb[1].mxu1 }
 0x2e8   :  { %v2900_v63 = vpop.f32.mrb[2].mxu1 }
 0x2e9   :  { %v736_v0 = vpop.f32.mrb[3].mxu1 }
 0x2ea   :  { %v796_v4 = vadd.f32 %v736_v0, %v733_v32 }
 0x2ec   :  { %v797_v44 = vadd.f32 %v2899_v55, %v796_v4 }
 0x2ee   :  { %v2903_v2 = vpop.f32.mrb[4].mxu1  ;;  %v798_v45 = vadd.f32 %v2900_v63, %v797_v44 }
 0x2ef   :  { %v749_v6 = vpop.f32.mrb[5].mxu1 }
 0x2f0   :  { %v799_v3 = vadd.f32 %v798_v45, %v749_v6  ;;  %v2904_v43 = vpop.f32.mrb[6].mxu1 }
 0x2f1   :  { %v752_v11 = vpop.f32.mrb[7].mxu1 }
 0x2f2   :  { %v800_v12 = vadd.f32 %v799_v3, %v752_v11 }
 0x2f4   :  { %v801_v23 = vadd.f32 %v2903_v2, %v800_v12 }
 0x2f6   :  { %v2907_v36 = vpop.f32.mrb[8].mxu1  ;;  %v802_v50 = vadd.f32 %v2904_v43, %v801_v23 }
 0x2f7   :  { %v765_v14 = vpop.f32.mrb[9].mxu1 }
 0x2f8   :  { %v803_v42 = vadd.f32 %v802_v50, %v765_v14  ;;  %v2908_v25 = vpop.f32.mrb[10].mxu1 }
 0x2f9   :  { %v768_v1 = vpop.f32.mrb[11].mxu1 }
 0x2fa   :  { %v804_v8 = vadd.f32 %v803_v42, %v768_v1 }
 0x2fc   :  { %v805_v40 = vadd.f32 %v2907_v36, %v804_v8 }
 0x2fe   :  { %v2911_v7 = vpop.f32.mrb[12].mxu1  ;;  %v806_v18 = vadd.f32 %v2908_v25, %v805_v40 }
 0x2ff   :  { %v781_v41 = vpop.f32.mrb[13].mxu1 }
 0x300   :  { %v807_v9 = vadd.f32 %v806_v18, %v781_v41  ;;  %v2912_v37 = vpop.f32.mrb[14].mxu1 }
 0x301   :  { %v784_v52 = vpop.f32.mrb[15].mxu1 }
 0x302   :  { %v808_v39 = vadd.f32 %v807_v9, %v784_v52 }
 0x304   :  { %v809_v51 = vadd.f32 %v2911_v7, %v808_v39 }
 0x306   :  { %v810_v26 = vadd.f32 %v2912_v37, %v809_v51 }
 0x308   :  { %v811_v53 = vrot.slane %v810_v26, 4 }
 0x30a   :  { %v812_v56 = vadd.f32 %v811_v53, %v810_v26 }
 0x30c   :  { %v813_v48 = vrot.slane %v812_v56, 2 }
 0x30e   :  { %v814_v35 = vadd.f32 %v813_v48, %v812_v56 }
 0x310   :  { %v815_v28 = vrot.slane %v814_v35, 1 }
 0x312   :  { %v816_v57 = vadd.f32 %v815_v28, %v814_v35 }
 0x314   :  { %v817_v58 = vmul.f32 0.0078125, %v816_v57 }
 0x316   :  { %v3736_v16 = vsub.f32 %v784_v52, %v817_v58  ;;  %v818_v20 = vsub.f32 %v733_v32, %v817_v58  ;;  %v819_v46 = vsub.f32 %v736_v0, %v817_v58  ;;  %v820_v59 = vsub.f32 %v2899_v55, %v817_v58 }
 0x317   :  { %v821_v29 = vsub.f32 %v2900_v63, %v817_v58  ;;  %v822_v54 = vsub.f32 %v749_v6, %v817_v58  ;;  %v823_v30 = vsub.f32 %v752_v11, %v817_v58  ;;  %v824_v61 = vsub.f32 %v2903_v2, %v817_v58 }
 0x318   :  { %v825_v31 = vsub.f32 %v2904_v43, %v817_v58  ;;  %v3738_v4 = vsub.f32 %v765_v14, %v817_v58  ;;  %v3740_v44 = vsub.f32 %v768_v1, %v817_v58  ;;  %v3742_v45 = vsub.f32 %v2907_v36, %v817_v58 }
 0x319   :  { %v3744_v3 = vsub.f32 %v2908_v25, %v817_v58  ;;  %v3746_v12 = vsub.f32 %v781_v41, %v817_v58  ;;  %v3748_v23 = vsub.f32 %v2911_v7, %v817_v58  ;;  %v3750_v32 = vsub.f32 %v2912_v37, %v817_v58 }
 0x31a   :  { %v834_v55 = vmul.f32 %v818_v20, %v818_v20  ;;  %v835_v63 = vmul.f32 %v819_v46, %v819_v46  ;;  %v836_v0 = vmul.f32 %v820_v59, %v820_v59  ;;  %v837_v2 = vmul.f32 %v821_v29, %v821_v29 }
 0x31b   :  { %v838_v11 = vmul.f32 %v822_v54, %v822_v54  ;;  %v839_v14 = vmul.f32 %v823_v30, %v823_v30  ;;  %v840_v36 = vmul.f32 %v824_v61, %v824_v61  ;;  %v841_v25 = vmul.f32 %v825_v31, %v825_v31 }
 0x31c   :  { %v850_v6 = vadd.f32 %v835_v63, %v834_v55  ;;  %v842_v8 = vmul.f32 %v3738_v4, %v3738_v4  ;;  %v843_v7 = vmul.f32 %v3740_v44, %v3740_v44  ;;  %v844_v41 = vmul.f32 %v3742_v45, %v3742_v45 }
 0x31d   :  { %v845_v37 = vmul.f32 %v3744_v3, %v3744_v3  ;;  %v846_v39 = vmul.f32 %v3746_v12, %v3746_v12  ;;  %v847_v26 = vmul.f32 %v3736_v16, %v3736_v16  ;;  %v848_v56 = vmul.f32 %v3748_v23, %v3748_v23 }
 0x31e   :  { %v851_v43 = vadd.f32 %v850_v6, %v836_v0  ;;  %v849_v35 = vmul.f32 %v3750_v32, %v3750_v32 }
 0x320   :  { %v852_v50 = vadd.f32 %v851_v43, %v837_v2 }
 0x322   :  { %v853_v22 = vadd.f32 %v852_v50, %v838_v11  ;;  %v3071_v50 = vld [vmem:[%s4756_s4 + $0x48] sm:$0xff]  }
 0x323   :  { %2915 = vmatprep.subr.bf16.mxu1 %v3071_v50 }
 0x324   :  { %v854_v42 = vadd.f32 %v853_v22, %v839_v14  ;;  %2916 = vmatpush3.bf16.msra.mxu1 %v3071_v50 }
 0x326   :  { %v855_v1 = vadd.f32 %v854_v42, %v840_v36 }
 0x328   :  { %v856_v40 = vadd.f32 %v855_v1, %v841_v25 }
 0x32a   :  { %v857_v18 = vadd.f32 %v856_v40, %v842_v8 }
 0x32c   :  { %v858_v9 = vadd.f32 %v857_v18, %v843_v7 }
 0x32e   :  { %v859_v52 = vadd.f32 %v858_v9, %v844_v41 }
 0x330   :  { %v860_v51 = vadd.f32 %v859_v52, %v845_v37  ;;  %v3075_v37 = vld [vmem:[%s4756_s4 + $0x68] sm:$0xff]  }
 0x332   :  { %v861_v53 = vadd.f32 %v860_v51, %v846_v39  ;;  %v3076_v51 = vld [vmem:[%s4756_s4 + $0x70] sm:$0xff]  }
 0x334   :  { %v862_v48 = vadd.f32 %v861_v53, %v847_v26 }
 0x336   :  { %v863_v28 = vadd.f32 %v862_v48, %v848_v56  ;;  %v3077_v56 = vld [vmem:[%s4756_s4 + $0x78] sm:$0xff]  }
 0x338   :  { %v864_v57 = vadd.f32 %v863_v28, %v849_v35 }
 0x33a   :  { %v865_v58 = vrot.slane %v864_v57, 4 }
 0x33c   :  { %v866_v55 = vadd.f32 %v865_v58, %v864_v57 }
 0x33e   :  { %v867_v63 = vrot.slane %v866_v55, 2 }
 0x340   :  { %v868_v0 = vadd.f32 %v867_v63, %v866_v55 }
 0x342   :  { %v869_v6 = vrot.slane %v868_v0, 1 }
 0x344   :  { %v870_v2 = vadd.f32 %v869_v6, %v868_v0 }
 0x346   :  { %v871_v43 = vmul.f32 0.0078125, %v870_v2 }
 0x348   :  { %v872_v11 = vadd.f32 1e-05, %v871_v43 }
 0x34a   :  { %3136 = vrsqrt.f32 %v872_v11 }
 0x354   :  { %v3137_v14 = vpop.eup %3136 }
 0x355   :  { %v3771_v22 = vmul.f32 %v3137_v14, %v819_v46  ;;  %v3773_v36 = vmul.f32 %v3137_v14, %v818_v20  ;;  %v3775_v42 = vmul.f32 %v3137_v14, %v821_v29  ;;  %v3777_v25 = vmul.f32 %v3137_v14, %v820_v59  ;;  %v3072_v59 = vld [vmem:[%s4756_s4 + $0x50] sm:$0xff]  }
 0x356   :  { %v3779_v1 = vmul.f32 %v3137_v14, %v823_v30  ;;  %v3781_v8 = vmul.f32 %v3137_v14, %v822_v54  ;;  %v3783_v40 = vmul.f32 %v3137_v14, %v825_v31  ;;  %v3785_v7 = vmul.f32 %v3137_v14, %v824_v61  ;;  %2917 = vmatprep.subr.bf16.mxu1 %v3072_v59 }
 0x357   :  { %v892_v46 = vmul.f32 %v3771_v22, %v3771_v22  ;;  %v891_v20 = vmul.f32 %v3773_v36, %v3773_v36  ;;  %v3797_v29 = vmul.f32 %v3137_v14, %v3740_v44  ;;  %v3800_v54 = vmul.f32 %v3137_v14, %v3738_v4  ;;  %2918 = vmatpush3.bf16.msra.mxu1 %v3072_v59 }
 0x358   :  { %v3803_v30 = vmul.f32 %v3137_v14, %v3744_v3  ;;  %v3806_v61 = vmul.f32 %v3137_v14, %v3742_v45  ;;  %v3809_v31 = vmul.f32 %v3137_v14, %v3736_v16  ;;  %v3812_v18 = vmul.f32 %v3137_v14, %v3746_v12  ;;  %v3073_v16 = vld [vmem:[%s4756_s4 + $0x58] sm:$0xff]  }
 0x359   :  { %909 = vrot.lane.b32.xlu1 %v892_v46, %s3297_s15  ;;  %907 = vrot.lane.b32.xlu0 %v891_v20, %s3297_s15  ;;  %v3815_v41 = vmul.f32 %v3137_v14, %v3750_v32  ;;  %v894_v4 = vmul.f32 %v3775_v42, %v3775_v42  ;;  %v893_v44 = vmul.f32 %v3777_v25, %v3777_v25 }
 0x35a   :  { %v3822_v3 = vmul.f32 %v3137_v14, %v3748_v23  ;;  %2919 = vmatprep.subr.bf16.mxu1 %v3073_v16  ;;  %v896_v45 = vmul.f32 %v3779_v1, %v3779_v1  ;;  %v895_v12 = vmul.f32 %v3781_v8, %v3781_v8  ;;  %v3074_v23 = vld [vmem:[%s4756_s4 + $0x60] sm:$0xff]   ;;  %v898_v32 = vmul.f32 %v3783_v40, %v3783_v40 }
 0x35b   :  { %2920 = vmatpush3.bf16.msra.mxu1 %v3073_v16  ;;  %v897_v9 = vmul.f32 %v3785_v7, %v3785_v7  ;;  %v900_v52 = vmul.f32 %v3797_v29, %v3797_v29  ;;  %v899_v39 = vmul.f32 %v3800_v54, %v3800_v54  ;;  %v3858_v26 = vmul.f32 %v3803_v30, %v3803_v30 }
 0x35c   :  { %2921 = vmatprep.subr.bf16.mxu1 %v3074_v23  ;;  %v3862_v53 = vmul.f32 %v3806_v61, %v3806_v61  ;;  %v3873_v48 = vmul.f32 %v3809_v31, %v3809_v31  ;;  %v3877_v35 = vmul.f32 %v3812_v18, %v3812_v18  ;;  %v3885_v28 = vmul.f32 %v3815_v41, %v3815_v41 }
 0x35d   :  { %913 = vrot.lane.b32.xlu1 %v894_v4, %s3297_s15  ;;  %911 = vrot.lane.b32.xlu0 %v893_v44, %s3297_s15  ;;  %v3889_v57 = vmul.f32 %v3822_v3, %v3822_v3 }
 0x35f   :  { %2922 = vmatpush3.bf16.msra.mxu1 %v3074_v23 }
 0x360   :  { %2923 = vmatprep.subr.bf16.mxu1 %v3075_v37 }
 0x361   :  { %917 = vrot.lane.b32.xlu1 %v896_v45, %s3297_s15  ;;  %915 = vrot.lane.b32.xlu0 %v895_v12, %s3297_s15 }
 0x363   :  { %2924 = vmatpush3.bf16.msra.mxu1 %v3075_v37 }
 0x364   :  { %2925 = vmatprep.subr.bf16.mxu1 %v3076_v51 }
 0x365   :  { %921 = vrot.lane.b32.xlu1 %v898_v32, %s3297_s15  ;;  %919 = vrot.lane.b32.xlu0 %v897_v9, %s3297_s15 }
 0x367   :  { %2926 = vmatpush3.bf16.msra.mxu1 %v3076_v51 }
 0x368   :  { %2927 = vmatprep.subr.bf16.mxu1 %v3077_v56 }
 0x369   :  { %925 = vrot.lane.b32.xlu1 %v900_v52, %s3297_s15  ;;  %923 = vrot.lane.b32.xlu0 %v899_v39, %s3297_s15 }
 0x36b   :  { %2928 = vmatpush3.bf16.msra.mxu1 %v3077_v56 }
 0x36d   :  { %929 = vrot.lane.b32.xlu1 %v3858_v26, %s3297_s15  ;;  %927 = vrot.lane.b32.xlu0 %v3862_v53, %s3297_s15 }
 0x371   :  { %933 = vrot.lane.b32.xlu1 %v3873_v48, %s3297_s15  ;;  %931 = vrot.lane.b32.xlu0 %v3877_v35, %s3297_s15 }
 0x375   :  { %937 = vrot.lane.b32.xlu1 %v3885_v28, %s3297_s15  ;;  %935 = vrot.lane.b32.xlu0 %v3889_v57, %s3297_s15 }
 0x3cb   :  { %v910_v58 = vpop.permute.xlu1 %909  ;;  %v908_v55 = vpop.permute.xlu0 %907 }
 0x3cc   :  { %v940_v63 = vadd.f32 %v910_v58, %v892_v46  ;;  %v939_v0 = vadd.f32 %v908_v55, %v891_v20 }
 0x3ce   :  { %v956_v6 = vadd.f32 1e-09, %v940_v63  ;;  %v955_v2 = vadd.f32 1e-09, %v939_v0 }
 0x3cf   :  { %v914_v43 = vpop.permute.xlu1 %913  ;;  %v912_v11 = vpop.permute.xlu0 %911 }
 0x3d0   :  { %3138 = vrsqrt.f32 %v956_v6  ;;  %v942_v50 = vadd.f32 %v914_v43, %v894_v4  ;;  %v941_v14 = vadd.f32 %v912_v11, %v893_v44  ;;  %v3898_v4 = vld [vmem:[%s4758_s6 + $0x1] ss:$0 sm:$0xff] }
 0x3d1   :  { %3140 = vrsqrt.f32 %v955_v2 }
 0x3d2   :  { %v958_v59 = vadd.f32 1e-09, %v942_v50  ;;  %v957_v16 = vadd.f32 1e-09, %v941_v14 }
 0x3d3   :  { %v918_v23 = vpop.permute.xlu1 %917  ;;  %v916_v37 = vpop.permute.xlu0 %915 }
 0x3d4   :  { %3142 = vrsqrt.f32 %v958_v59  ;;  %v944_v51 = vadd.f32 %v918_v23, %v896_v45  ;;  %v943_v56 = vadd.f32 %v916_v37, %v895_v12 }
 0x3d5   :  { %3144 = vrsqrt.f32 %v957_v16 }
 0x3d6   :  { %v960_v15 = vadd.f32 1e-09, %v944_v51  ;;  %v959_v62 = vadd.f32 1e-09, %v943_v56 }
 0x3d7   :  { %v922_v46 = vpop.permute.xlu1 %921  ;;  %v920_v20 = vpop.permute.xlu0 %919 }
 0x3d8   :  { %3146 = vrsqrt.f32 %v960_v15  ;;  %v946_v58 = vadd.f32 %v922_v46, %v898_v32  ;;  %v945_v55 = vadd.f32 %v920_v20, %v897_v9 }
 0x3d9   :  { %3148 = vrsqrt.f32 %v959_v62 }
 0x3da   :  { %v3139_v63 = vpop.eup %3138  ;;  %v962_v44 = vadd.f32 1e-09, %v946_v58  ;;  %v961_v0 = vadd.f32 1e-09, %v945_v55 }
 0x3db   :  { %v3141_v43 = vpop.eup %3140  ;;  %v988_v45 = vmul.f32 %v3139_v63, %v956_v6  ;;  %v926_v12 = vpop.permute.xlu1 %925 }
 0x3dc   :  { %v924_v11 = vpop.permute.xlu0 %923  ;;  %v987_v50 = vmul.f32 %v3141_v43, %v955_v2  ;;  %3150 = vrsqrt.f32 %v962_v44  ;;  %v948_v14 = vadd.f32 %v926_v12, %v900_v52 }
 0x3dd   :  { %v947_v23 = vadd.f32 %v924_v11, %v899_v39  ;;  %v1008_v32 = vadd.f32 %v3898_v4, %v988_v45  ;;  %3152 = vrsqrt.f32 %v961_v0 }
 0x3de   :  { %v3143_v9 = vpop.eup %3142  ;;  %v1007_v37 = vadd.f32 %v3898_v4, %v987_v50  ;;  %v964_v51 = vadd.f32 1e-09, %v948_v14 }
 0x3df   :  { %v3902_v56 = vadd.f32 1e-09, %v947_v23  ;;  %v3145_v46 = vpop.eup %3144  ;;  %v1024_v20 = vmax.f32 %v1008_v32, 0.0  ;;  %v990_v58 = vmul.f32 %v3143_v9, %v958_v59  ;;  %v930_v55 = vpop.permute.xlu1 %929 }
 0x3e0   :  { %v928_v6 = vpop.permute.xlu0 %927  ;;  %v1023_v47 = vmax.f32 %v1007_v37, 0.0  ;;  %v989_v17 = vmul.f32 %v3145_v46, %v957_v16  ;;  %3154 = vrsqrt.f32 %v964_v51  ;;  %v950_v52 = vadd.f32 %v930_v55, %v3858_v26 }
 0x3e1   :  { %v1040_v39 = vmul.f32 %v3139_v63, %v1024_v20  ;;  %v1010_v2 = vadd.f32 %v3898_v4, %v990_v58  ;;  %3156 = vrsqrt.f32 %v3902_v56  ;;  %v949_v45 = vadd.f32 %v928_v6, %v3862_v53 }
 0x3e2   :  { %v3147_v12 = vpop.eup %3146  ;;  %v1039_v11 = vmul.f32 %v3141_v43, %v1023_v47  ;;  %v1009_v50 = vadd.f32 %v3898_v4, %v989_v17  ;;  %v966_v14 = vadd.f32 1e-09, %v950_v52 }
 0x3e3   :  { %v3149_v59 = vpop.eup %3148  ;;  %v1026_v23 = vmax.f32 %v1010_v2, 0.0  ;;  %v992_v32 = vmul.f32 %v3147_v12, %v960_v15  ;;  %v965_v37 = vadd.f32 1e-09, %v949_v45  ;;  %v934_v16 = vpop.permute.xlu1 %933  ;;  %v1056_v26 = vmul.f32 %v1040_v39, %v3771_v22 }
 0x3e4   :  { %v932_v19 = vpop.permute.xlu0 %931  ;;  %v1025_v63 = vmax.f32 %v1009_v50, 0.0  ;;  %v991_v20 = vmul.f32 %v3149_v59, %v959_v62  ;;  %3158 = vrsqrt.f32 %v966_v14  ;;  %v952_v58 = vadd.f32 %v934_v16, %v3873_v48 }
 0x3e5   :  { %v1042_v55 = vmul.f32 %v3143_v9, %v1026_v23  ;;  %v1012_v53 = vadd.f32 %v3898_v4, %v992_v32  ;;  %3160 = vrsqrt.f32 %v965_v37  ;;  %v951_v17 = vadd.f32 %v932_v19, %v3877_v35 }
 0x3e6   :  { %v3151_v47 = vpop.eup %3150  ;;  %v1041_v43 = vmul.f32 %v3145_v46, %v1025_v63  ;;  %v1011_v15 = vadd.f32 %v3898_v4, %v991_v20  ;;  %v968_v6 = vadd.f32 1e-09, %v952_v58  ;;  %v1055_v52 = vmul.f32 %v1039_v11, %v3773_v36 }
 0x3e7   :  { %v3153_v2 = vpop.eup %3152  ;;  %v1058_v22 = vmul.f32 %v1042_v55, %v3775_v42  ;;  %v1028_v62 = vmax.f32 %v1012_v53, 0.0  ;;  %v994_v39 = vmul.f32 %v3151_v47, %v962_v44  ;;  %v967_v45 = vadd.f32 1e-09, %v951_v17  ;;  %v938_v48 = vpop.permute.xlu1 %937 }
 0x3e8   :  { %v1057_v9 = vmul.f32 %v1041_v43, %v3777_v25  ;;  %v1027_v50 = vmax.f32 %v1011_v15, 0.0  ;;  %v993_v23 = vmul.f32 %v3153_v2, %v961_v0  ;;  %3162 = vrsqrt.f32 %v968_v6  ;;  %v936_v19 = vpop.permute.xlu0 %935 }
 0x3e9   :  { %v1044_v35 = vmul.f32 %v3147_v12, %v1028_v62  ;;  %v1014_v46 = vadd.f32 %v3898_v4, %v994_v39  ;;  %3164 = vrsqrt.f32 %v967_v45  ;;  %v954_v32 = vadd.f32 %v938_v48, %v3885_v28 }
 0x3ea   :  { %v3155_v36 = vpop.eup %3154  ;;  %v1072_v11 = vpack.c.bf16 %v1058_v22, %v1057_v9  ;;  %v1043_v16 = vmul.f32 %v3149_v59, %v1027_v50  ;;  %v1013_v42 = vadd.f32 %v3898_v4, %v993_v23  ;;  %v1071_v44 = vpack.c.bf16 %v1056_v26, %v1055_v52 }
 0x3eb   :  { %v3157_v63 = vpop.eup %3156  ;;  %v1030_v20 = vmax.f32 %v1014_v46, 0.0  ;;  %v996_v58 = vmul.f32 %v3155_v36, %v964_v51  ;;  %v970_v25 = vadd.f32 1e-09, %v954_v32  ;;  %v953_v0 = vadd.f32 %v936_v19, %v3889_v57 }
 0x3ec   :  { %v1029_v55 = vmax.f32 %v1013_v42, 0.0  ;;  %v995_v12 = vmul.f32 %v3157_v63, %v3902_v56  ;;  %2929 = vmatprep.mubr.bf16.mxu1 %v1071_v44  ;;  %v1059_v53 = vmul.f32 %v1043_v16, %v3781_v8  ;;  %v1060_v28 = vmul.f32 %v1044_v35, %v3779_v1 }
 0x3ed   :  { %v1046_v17 = vmul.f32 %v3151_v47, %v1030_v20  ;;  %v1016_v59 = vadd.f32 %v3898_v4, %v996_v58  ;;  %3166 = vrsqrt.f32 %v970_v25  ;;  %v969_v43 = vadd.f32 1e-09, %v953_v0  ;;  %2930 = vmatmul.mubr.bf16.vlgmr.msra.gmra.mrb[16].mxu1 %v1072_v11 }
 0x3ee   :  { %v3159_v26 = vpop.eup %3158  ;;  %v1045_v15 = vmul.f32 %v3153_v2, %v1029_v55  ;;  %v1015_v51 = vadd.f32 %v3898_v4, %v995_v12  ;;  %v1073_v52 = vpack.c.bf16 %v1060_v28, %v1059_v53 }
 0x3ef   :  { %v3161_v57 = vpop.eup %3160  ;;  %v1032_v22 = vmax.f32 %v1016_v59, 0.0  ;;  %v998_v62 = vmul.f32 %v3159_v26, %v966_v14  ;;  %3168 = vrsqrt.f32 %v969_v43  ;;  %v1062_v56 = vmul.f32 %v1046_v17, %v3783_v40 }
 0x3f0   :  { %v1031_v8 = vmax.f32 %v1015_v51, 0.0  ;;  %v997_v39 = vmul.f32 %v3161_v57, %v965_v37  ;;  %2933 = vmatprep.mubr.bf16.mxu1 %v1073_v52  ;;  %v1061_v1 = vmul.f32 %v1045_v15, %v3785_v7 }
 0x3f1   :  { %v1048_v47 = vmul.f32 %v3155_v36, %v1032_v22  ;;  %v1018_v48 = vadd.f32 %v3898_v4, %v998_v62 }
 0x3f2   :  { %v3163_v9 = vpop.eup %3162  ;;  %v1047_v50 = vmul.f32 %v3157_v63, %v1031_v8  ;;  %v1017_v2 = vadd.f32 %v3898_v4, %v997_v39  ;;  %v1074_v23 = vpack.c.bf16 %v1062_v56, %v1061_v1 }
 0x3f3   :  { %v3165_v19 = vpop.eup %3164  ;;  %v1034_v35 = vmax.f32 %v1018_v48, 0.0  ;;  %v1000_v46 = vmul.f32 %v3163_v9, %v968_v6  ;;  %v1064_v14 = vmul.f32 %v1048_v47, %v3797_v29 }
 0x3f4   :  { %v1033_v32 = vmax.f32 %v1017_v2, 0.0  ;;  %v999_v40 = vmul.f32 %v3165_v19, %v967_v45  ;;  %v1063_v37 = vmul.f32 %v1047_v50, %v3800_v54 }
 0x3f5   :  { %v1050_v11 = vmul.f32 %v3159_v26, %v1034_v35  ;;  %v1020_v7 = vadd.f32 %v3898_v4, %v1000_v46  ;;  %2934 = vmatmul.mubr.bf16.gmra.mrb[20].mxu1 %v1074_v23 }
 0x3f6   :  { %v1049_v36 = vmul.f32 %v3161_v57, %v1033_v32  ;;  %v1019_v16 = vadd.f32 %v3898_v4, %v999_v40  ;;  %v1075_v42 = vpack.c.bf16 %v1064_v14, %v1063_v37  ;;  %v3078_v14 = vld [vmem:[%s4756_s4 + $0x80] sm:$0xff]  }
 0x3f7   :  { %v3167_v44 = vpop.eup %3166  ;;  %v1036_v63 = vmax.f32 %v1020_v7, 0.0  ;;  %v1066_v20 = vmul.f32 %v1050_v11, %v3803_v30  ;;  %2945 = vmatprep.subr.bf16.mxu0 %v3078_v14 }
 0x3f8   :  { %v1035_v58 = vmax.f32 %v1019_v16, 0.0  ;;  %v1002_v6 = vmul.f32 %v3167_v44, %v970_v25  ;;  %2937 = vmatprep.mubr.bf16.mxu1 %v1075_v42  ;;  %v1065_v29 = vmul.f32 %v1049_v36, %v3806_v61  ;;  %2946 = vmatpush3.bf16.msra.mxu0 %v3078_v14 }
 0x3f9   :  { %v3169_v45 = vpop.eup %3168  ;;  %v1052_v0 = vmul.f32 %v3163_v9, %v1036_v63 }
 0x3fa   :  { %v1051_v54 = vmul.f32 %v3165_v19, %v1035_v58  ;;  %v1022_v55 = vadd.f32 %v3898_v4, %v1002_v6  ;;  %v1001_v12 = vmul.f32 %v3169_v45, %v969_v43  ;;  %v1076_v53 = vpack.c.bf16 %v1066_v20, %v1065_v29 }
 0x3fb   :  { %v1068_v28 = vmul.f32 %v1052_v0, %v3809_v31 }
 0x3fc   :  { %v1038_v17 = vmax.f32 %v1022_v55, 0.0  ;;  %v1021_v59 = vadd.f32 %v3898_v4, %v1001_v12  ;;  %v1067_v26 = vmul.f32 %v1051_v54, %v3812_v18 }
 0x3fd   :  { %2938 = vmatmul.mubr.bf16.gmra.mrb[24].mxu1 %v1076_v53 }
 0x3fe   :  { %v1054_v30 = vmul.f32 %v3167_v44, %v1038_v17  ;;  %v1037_v25 = vmax.f32 %v1021_v59, 0.0  ;;  %v1077_v15 = vpack.c.bf16 %v1068_v28, %v1067_v26 }
 0x400   :  { %v1053_v51 = vmul.f32 %v3169_v45, %v1037_v25  ;;  %2941 = vmatprep.mubr.bf16.mxu1 %v1077_v15  ;;  %v1070_v61 = vmul.f32 %v1054_v30, %v3815_v41 }
 0x402   :  { %v1069_v52 = vmul.f32 %v1053_v51, %v3822_v3 }
 0x404   :  { %v1078_v57 = vpack.c.bf16 %v1070_v61, %v1069_v52 }
 0x406   :  { %2942 = vmatmul.mubr.bf16.gmra.mrb[28].mxu1 %v1078_v57 }
 0x4c0   :  { %v2931_v43 = vpop.f32.mrb[16].mxu1 }
 0x4c1   :  { %v1178_v22 = vpop.f32.mrb[17].mxu1 }
 0x4c2   :  { %v2932_v31 = vpop.f32.mrb[18].mxu1 }
 0x4c3   :  { %v1181_v62 = vpop.f32.mrb[19].mxu1 }
 0x4c4   :  { %v1241_v56 = vadd.f32 %v1181_v62, %v1178_v22 }
 0x4c6   :  { %v1242_v4 = vadd.f32 %v2931_v43, %v1241_v56 }
 0x4c8   :  { %v2935_v8 = vpop.f32.mrb[20].mxu1  ;;  %v1243_v18 = vadd.f32 %v2932_v31, %v1242_v4 }
 0x4c9   :  { %v1194_v39 = vpop.f32.mrb[21].mxu1 }
 0x4ca   :  { %v1244_v1 = vadd.f32 %v1243_v18, %v1194_v39  ;;  %v2936_v47 = vpop.f32.mrb[22].mxu1 }
 0x4cb   :  { %v1197_v48 = vpop.f32.mrb[23].mxu1 }
 0x4cc   :  { %v1245_v9 = vadd.f32 %v1244_v1, %v1197_v48 }
 0x4ce   :  { %v1246_v50 = vadd.f32 %v2935_v8, %v1245_v9 }
 0x4d0   :  { %v2939_v2 = vpop.f32.mrb[24].mxu1  ;;  %v1247_v41 = vadd.f32 %v2936_v47, %v1246_v50 }
 0x4d1   :  { %v1210_v23 = vpop.f32.mrb[25].mxu1 }
 0x4d2   :  { %v1248_v3 = vadd.f32 %v1247_v41, %v1210_v23  ;;  %v2940_v19 = vpop.f32.mrb[26].mxu1 }
 0x4d3   :  { %v1213_v35 = vpop.f32.mrb[27].mxu1 }
 0x4d4   :  { %v1249_v46 = vadd.f32 %v1248_v3, %v1213_v35 }
 0x4d6   :  { %v1250_v32 = vadd.f32 %v2939_v2, %v1249_v46 }
 0x4d8   :  { %v1251_v40 = vadd.f32 %v2940_v19, %v1250_v32 }
 0x4d9   :  { %v2943_v37 = vpop.f32.mrb[28].mxu1 }
 0x4da   :  { %v1226_v11 = vpop.f32.mrb[29].mxu1 }
 0x4db   :  { %v1252_v7 = vadd.f32 %v1251_v40, %v1226_v11  ;;  %v2944_v36 = vpop.f32.mrb[30].mxu1 }
 0x4dc   :  { %v1229_v16 = vpop.f32.mrb[31].mxu1 }
 0x4dd   :  { %v1253_v42 = vadd.f32 %v1252_v7, %v1229_v16 }
 0x4df   :  { %v1254_v44 = vadd.f32 %v2943_v37, %v1253_v42 }
 0x4e1   :  { %v1255_v63 = vadd.f32 %v2944_v36, %v1254_v44 }
 0x4e3   :  { %v1256_v20 = vrot.slane %v1255_v63, 4 }
 0x4e5   :  { %v1257_v58 = vadd.f32 %v1256_v20, %v1255_v63 }
 0x4e7   :  { %v1258_v6 = vrot.slane %v1257_v58, 2 }
 0x4e9   :  { %v1259_v29 = vadd.f32 %v1258_v6, %v1257_v58 }
 0x4eb   :  { %v1260_v45 = vrot.slane %v1259_v29, 1 }
 0x4ed   :  { %v1261_v0 = vadd.f32 %v1260_v45, %v1259_v29 }
 0x4ef   :  { %v1262_v54 = vmul.f32 0.0078125, %v1261_v0 }
 0x4f1   :  { %v1263_v55 = vsub.f32 %v1178_v22, %v1262_v54  ;;  %v1264_v12 = vsub.f32 %v1181_v62, %v1262_v54  ;;  %v1265_v53 = vsub.f32 %v2931_v43, %v1262_v54  ;;  %v1266_v28 = vsub.f32 %v2932_v31, %v1262_v54 }
 0x4f2   :  { %v1267_v17 = vsub.f32 %v1194_v39, %v1262_v54  ;;  %v1268_v59 = vsub.f32 %v1197_v48, %v1262_v54  ;;  %v1269_v26 = vsub.f32 %v2935_v8, %v1262_v54  ;;  %v1270_v30 = vsub.f32 %v2936_v47, %v1262_v54 }
 0x4f3   :  { %v3945_v25 = vsub.f32 %v1210_v23, %v1262_v54  ;;  %v3947_v15 = vsub.f32 %v1213_v35, %v1262_v54  ;;  %v3949_v51 = vsub.f32 %v2939_v2, %v1262_v54  ;;  %v3951_v61 = vsub.f32 %v2940_v19, %v1262_v54 }
 0x4f4   :  { %v3953_v52 = vsub.f32 %v1226_v11, %v1262_v54  ;;  %v1276_v57 = vsub.f32 %v1229_v16, %v1262_v54  ;;  %v3955_v56 = vsub.f32 %v2943_v37, %v1262_v54  ;;  %v3957_v22 = vsub.f32 %v2944_v36, %v1262_v54 }
 0x4f5   :  { %v1279_v43 = vmul.f32 %v1263_v55, %v1263_v55  ;;  %v1280_v31 = vmul.f32 %v1264_v12, %v1264_v12  ;;  %v1281_v62 = vmul.f32 %v1265_v53, %v1265_v53  ;;  %v1282_v8 = vmul.f32 %v1266_v28, %v1266_v28 }
 0x4f6   :  { %v1283_v39 = vmul.f32 %v1267_v17, %v1267_v17  ;;  %v1284_v47 = vmul.f32 %v1268_v59, %v1268_v59  ;;  %v1285_v9 = vmul.f32 %v1269_v26, %v1269_v26  ;;  %v1286_v2 = vmul.f32 %v1270_v30, %v1270_v30 }
 0x4f7   :  { %v1295_v4 = vadd.f32 %v1280_v31, %v1279_v43  ;;  %v1287_v23 = vmul.f32 %v3945_v25, %v3945_v25  ;;  %v1288_v19 = vmul.f32 %v3947_v15, %v3947_v15  ;;  %v1289_v46 = vmul.f32 %v3949_v51, %v3949_v51 }
 0x4f8   :  { %v1290_v32 = vmul.f32 %v3951_v61, %v3951_v61  ;;  %v1291_v37 = vmul.f32 %v3953_v52, %v3953_v52  ;;  %v1292_v7 = vmul.f32 %v1276_v57, %v1276_v57  ;;  %v1293_v16 = vmul.f32 %v3955_v56, %v3955_v56 }
 0x4f9   :  { %v1296_v18 = vadd.f32 %v1295_v4, %v1281_v62  ;;  %v1294_v44 = vmul.f32 %v3957_v22, %v3957_v22 }
 0x4fb   :  { %v1297_v1 = vadd.f32 %v1296_v18, %v1282_v8 }
 0x4fd   :  { %v1298_v48 = vadd.f32 %v1297_v1, %v1283_v39 }
 0x4ff   :  { %v1299_v50 = vadd.f32 %v1298_v48, %v1284_v47 }
 0x501   :  { %v1300_v41 = vadd.f32 %v1299_v50, %v1285_v9 }
 0x503   :  { %v1301_v3 = vadd.f32 %v1300_v41, %v1286_v2 }
 0x505   :  { %v1302_v35 = vadd.f32 %v1301_v3, %v1287_v23  ;;  %v3079_v23 = vld [vmem:[%s4756_s4 + $0x88] sm:$0xff]  }
 0x506   :  { %2947 = vmatprep.subr.bf16.mxu0 %v3079_v23 }
 0x507   :  { %v1303_v14 = vadd.f32 %v1302_v35, %v1288_v19  ;;  %2948 = vmatpush3.bf16.msra.mxu0 %v3079_v23  ;;  %v3083_v35 = vld [vmem:[%s4756_s4 + $0xa8] sm:$0xff]  }
 0x509   :  { %v1304_v40 = vadd.f32 %v1303_v14, %v1289_v46  ;;  %v4776_v14 = vld [vmem:[#allocation5_spill] sm:$0xff] }
 0x50b   :  { %v1305_v11 = vadd.f32 %v1304_v40, %v1290_v32  ;;  %v3084_v40 = vld [vmem:[%s4756_s4 + $0xb0] sm:$0xff]  }
 0x50d   :  { %v1306_v36 = vadd.f32 %v1305_v11, %v1291_v37  ;;  %v4777_v11 = vld [vmem:[#allocation6_spill] sm:$0xff] }
 0x50f   :  { %v1307_v42 = vadd.f32 %v1306_v36, %v1292_v7  ;;  %v4778_v36 = vld [vmem:[#allocation7_spill] sm:$0xff] }
 0x511   :  { %v1308_v63 = vadd.f32 %v1307_v42, %v1293_v16  ;;  %v3085_v42 = vld [vmem:[%s4756_s4 + $0xb8] sm:$0xff]  }
 0x513   :  { %v1309_v20 = vadd.f32 %v1308_v63, %v1294_v44 }
 0x515   :  { %v1310_v58 = vrot.slane %v1309_v20, 4 }
 0x517   :  { %v1311_v6 = vadd.f32 %v1310_v58, %v1309_v20  ;;  %v4779_v20 = vld [vmem:[#allocation8_spill] sm:$0xff] }
 0x519   :  { %v1312_v29 = vrot.slane %v1311_v6, 2 }
 0x51b   :  { %v1313_v45 = vadd.f32 %v1312_v29, %v1311_v6  ;;  %v4780_v6 = vld [vmem:[#allocation9_spill] sm:$0xff] }
 0x51d   :  { %v1314_v0 = vrot.slane %v1313_v45, 1 }
 0x51f   :  { %v1315_v54 = vadd.f32 %v1314_v0, %v1313_v45 }
 0x521   :  { %v1316_v43 = vmul.f32 0.0078125, %v1315_v54 }
 0x523   :  { %v1317_v31 = vadd.f32 1e-05, %v1316_v43 }
 0x525   :  { %3170 = vrsqrt.f32 %v1317_v31 }
 0x52f   :  { %v3171_v62 = vpop.eup %3170 }
 0x530   :  { %v3973_v4 = vmul.f32 %v3171_v62, %v1276_v57  ;;  %v1320_v8 = vmul.f32 %v3171_v62, %v1264_v12  ;;  %v1319_v18 = vmul.f32 %v3171_v62, %v1263_v55  ;;  %v1322_v39 = vmul.f32 %v3171_v62, %v1266_v28 }
 0x531   :  { %v1321_v1 = vmul.f32 %v3171_v62, %v1265_v53  ;;  %v1324_v47 = vmul.f32 %v3171_v62, %v1268_v59  ;;  %v1323_v48 = vmul.f32 %v3171_v62, %v1267_v17  ;;  %v1326_v9 = vmul.f32 %v3171_v62, %v1270_v30  ;;  %v3080_v30 = vld [vmem:[%s4756_s4 + $0x90] sm:$0xff]  }
 0x532   :  { %v3976_v50 = vadd.f32 %v1320_v8, %v3670_v60  ;;  %v3979_v2 = vadd.f32 %v1319_v18, %v3660_v34  ;;  %v1325_v41 = vmul.f32 %v3171_v62, %v1269_v26  ;;  %v3993_v53 = vadd.f32 %v1322_v39, %v3663_v38  ;;  %2949 = vmatprep.subr.bf16.mxu0 %v3080_v30 }
 0x533   :  { %v3996_v60 = vadd.f32 %v1321_v1, %v3653_v49  ;;  %v4003_v34 = vadd.f32 %v1324_v47, %v3683_v5  ;;  %v1328_v28 = vmul.f32 %v3171_v62, %v3947_v15  ;;  %v1327_v17 = vmul.f32 %v3171_v62, %v3945_v25  ;;  %2950 = vmatpush3.bf16.msra.mxu0 %v3080_v30 }
 0x534   :  { %v3986_v12 = vmul.f32 %v3976_v50, %v3976_v50  ;;  %v3990_v55 = vmul.f32 %v3979_v2, %v3979_v2  ;;  %v4008_v38 = vadd.f32 %v1323_v48, %v3679_v21  ;;  %v1330_v49 = vmul.f32 %v3171_v62, %v3951_v61 }
 0x535   :  { %v1329_v59 = vmul.f32 %v3171_v62, %v3949_v51  ;;  %v1331_v26 = vmul.f32 %v3171_v62, %v3953_v52  ;;  %v4018_v5 = vmul.f32 %v3993_v53, %v3993_v53  ;;  %v4022_v25 = vmul.f32 %v3996_v60, %v3996_v60  ;;  %v3081_v51 = vld [vmem:[%s4756_s4 + $0x98] sm:$0xff]  }
 0x536   :  { %1370 = vrot.lane.b32.xlu1 %v3986_v12, %s3297_s15  ;;  %1368 = vrot.lane.b32.xlu0 %v3990_v55, %s3297_s15  ;;  %v1334_v21 = vmul.f32 %v3171_v62, %v3957_v22  ;;  %v1333_v15 = vmul.f32 %v3171_v62, %v3955_v56  ;;  %v4035_v61 = vmul.f32 %v4003_v34, %v4003_v34  ;;  %v3082_v22 = vld [vmem:[%s4756_s4 + $0xa0] sm:$0xff]  }
 0x537   :  { %v4039_v52 = vmul.f32 %v4008_v38, %v4008_v38  ;;  %v4042_v57 = vadd.f32 %v1326_v9, %v3686_v10  ;;  %v4045_v56 = vadd.f32 %v1325_v41, %v3691_v13  ;;  %2951 = vmatprep.subr.bf16.mxu0 %v3081_v51  ;;  %v4063_v13 = vadd.f32 %v1328_v28, %v3698_v33 }
 0x538   :  { %2952 = vmatpush3.bf16.msra.mxu0 %v3081_v51  ;;  %v4066_v19 = vadd.f32 %v1327_v17, %v3701_v24  ;;  %v4084_v24 = vadd.f32 %v1330_v49, %v3708_v27  ;;  %v4087_v32 = vadd.f32 %v1329_v59, %v4776_v14  ;;  %v4106_v7 = vadd.f32 %v3973_v4, %v4777_v11 }
 0x539   :  { %v4056_v3 = vmul.f32 %v4042_v57, %v4042_v57  ;;  %v4060_v10 = vmul.f32 %v4045_v56, %v4045_v56  ;;  %2953 = vmatprep.subr.bf16.mxu0 %v3082_v22  ;;  %v4077_v46 = vmul.f32 %v4063_v13, %v4063_v13  ;;  %v4109_v16 = vadd.f32 %v1331_v26, %v4778_v36 }
 0x53a   :  { %1374 = vrot.lane.b32.xlu1 %v4018_v5, %s3297_s15  ;;  %1372 = vrot.lane.b32.xlu0 %v4022_v25, %s3297_s15  ;;  %v4081_v33 = vmul.f32 %v4066_v19, %v4066_v19  ;;  %v4098_v37 = vmul.f32 %v4084_v24, %v4084_v24  ;;  %v4102_v27 = vmul.f32 %v4087_v32, %v4087_v32 }
 0x53b   :  { %v4120_v44 = vmul.f32 %v4106_v7, %v4106_v7  ;;  %v4124_v63 = vmul.f32 %v4109_v16, %v4109_v16  ;;  %v4127_v58 = vadd.f32 %v1334_v21, %v4779_v20  ;;  %v4130_v29 = vadd.f32 %v1333_v15, %v4780_v6 }
 0x53c   :  { %2954 = vmatpush3.bf16.msra.mxu0 %v3082_v22 }
 0x53d   :  { %2955 = vmatprep.subr.bf16.mxu0 %v3083_v35  ;;  %v4138_v45 = vmul.f32 %v4127_v58, %v4127_v58  ;;  %v4142_v0 = vmul.f32 %v4130_v29, %v4130_v29 }
 0x53e   :  { %1378 = vrot.lane.b32.xlu1 %v4035_v61, %s3297_s15  ;;  %1376 = vrot.lane.b32.xlu0 %v4039_v52, %s3297_s15 }
 0x540   :  { %2956 = vmatpush3.bf16.msra.mxu0 %v3083_v35 }
 0x541   :  { %2957 = vmatprep.subr.bf16.mxu0 %v3084_v40 }
 0x542   :  { %1382 = vrot.lane.b32.xlu1 %v4056_v3, %s3297_s15  ;;  %1380 = vrot.lane.b32.xlu0 %v4060_v10, %s3297_s15 }
 0x544   :  { %2958 = vmatpush3.bf16.msra.mxu0 %v3084_v40 }
 0x545   :  { %2959 = vmatprep.subr.bf16.mxu0 %v3085_v42 }
 0x546   :  { %1386 = vrot.lane.b32.xlu1 %v4077_v46, %s3297_s15  ;;  %1384 = vrot.lane.b32.xlu0 %v4081_v33, %s3297_s15 }
 0x548   :  { %2960 = vmatpush3.bf16.msra.mxu0 %v3085_v42 }
 0x54a   :  { %1390 = vrot.lane.b32.xlu1 %v4098_v37, %s3297_s15  ;;  %1388 = vrot.lane.b32.xlu0 %v4102_v27, %s3297_s15 }
 0x54e   :  { %1394 = vrot.lane.b32.xlu1 %v4120_v44, %s3297_s15  ;;  %1392 = vrot.lane.b32.xlu0 %v4124_v63, %s3297_s15 }
 0x552   :  { %1398 = vrot.lane.b32.xlu1 %v4138_v45, %s3297_s15  ;;  %1396 = vrot.lane.b32.xlu0 %v4142_v0, %s3297_s15 }
 0x5a8   :  { %v1371_v54 = vpop.permute.xlu1 %1370  ;;  %v1369_v43 = vpop.permute.xlu0 %1368 }
 0x5a9   :  { %v1401_v31 = vadd.f32 %v1371_v54, %v3986_v12  ;;  %v1400_v62 = vadd.f32 %v1369_v43, %v3990_v55 }
 0x5ab   :  { %v1417_v4 = vadd.f32 1e-09, %v1401_v31  ;;  %v1416_v8 = vadd.f32 1e-09, %v1400_v62 }
 0x5ac   :  { %v1375_v18 = vpop.permute.xlu1 %1374  ;;  %v1373_v39 = vpop.permute.xlu0 %1372 }
 0x5ad   :  { %3172 = vrsqrt.f32 %v1417_v4  ;;  %v1403_v1 = vadd.f32 %v1375_v18, %v4018_v5  ;;  %v1402_v47 = vadd.f32 %v1373_v39, %v4022_v25  ;;  %v4159_v25 = vld [vmem:[%s4758_s6 + $0x2] ss:$0 sm:$0xff] }
 0x5ae   :  { %3174 = vrsqrt.f32 %v1416_v8 }
 0x5af   :  { %v1419_v48 = vadd.f32 1e-09, %v1403_v1  ;;  %v1418_v9 = vadd.f32 1e-09, %v1402_v47 }
 0x5b0   :  { %v1379_v41 = vpop.permute.xlu1 %1378  ;;  %v1377_v23 = vpop.permute.xlu0 %1376 }
 0x5b1   :  { %3176 = vrsqrt.f32 %v1419_v48  ;;  %v1405_v28 = vadd.f32 %v1379_v41, %v4035_v61  ;;  %v1404_v12 = vadd.f32 %v1377_v23, %v4039_v52 }
 0x5b2   :  { %3178 = vrsqrt.f32 %v1418_v9 }
 0x5b3   :  { %v1421_v55 = vadd.f32 1e-09, %v1405_v28  ;;  %v1420_v17 = vadd.f32 1e-09, %v1404_v12 }
 0x5b4   :  { %v1383_v49 = vpop.permute.xlu1 %1382  ;;  %v1381_v59 = vpop.permute.xlu0 %1380 }
 0x5b5   :  { %3180 = vrsqrt.f32 %v1421_v55  ;;  %v1407_v26 = vadd.f32 %v1383_v49, %v4056_v3  ;;  %v1406_v30 = vadd.f32 %v1381_v59, %v4060_v10 }
 0x5b6   :  { %3182 = vrsqrt.f32 %v1420_v17 }
 0x5b7   :  { %v3173_v5 = vpop.eup %3172  ;;  %v1423_v21 = vadd.f32 1e-09, %v1407_v26  ;;  %v1422_v15 = vadd.f32 1e-09, %v1406_v30 }
 0x5b8   :  { %v3175_v51 = vpop.eup %3174  ;;  %v1449_v61 = vmul.f32 %v3173_v5, %v1417_v4  ;;  %v1387_v52 = vpop.permute.xlu1 %1386 }
 0x5b9   :  { %v1385_v22 = vpop.permute.xlu0 %1384  ;;  %v1448_v35 = vmul.f32 %v3175_v51, %v1416_v8  ;;  %3184 = vrsqrt.f32 %v1423_v21  ;;  %v1409_v14 = vadd.f32 %v1387_v52, %v4077_v46 }
 0x5ba   :  { %v1408_v3 = vadd.f32 %v1385_v22, %v4081_v33  ;;  %v1469_v10 = vadd.f32 %v4159_v25, %v1449_v61  ;;  %3186 = vrsqrt.f32 %v1422_v15 }
 0x5bb   :  { %v3177_v40 = vpop.eup %3176  ;;  %v1468_v11 = vadd.f32 %v4159_v25, %v1448_v35  ;;  %v1425_v36 = vadd.f32 1e-09, %v1409_v14 }
 0x5bc   :  { %v4165_v42 = vadd.f32 1e-09, %v1408_v3  ;;  %v3179_v20 = vpop.eup %3178  ;;  %v1485_v6 = vmax.f32 %v1469_v10, 0.0  ;;  %v1451_v54 = vmul.f32 %v3177_v40, %v1419_v48  ;;  %v1391_v43 = vpop.permute.xlu1 %1390 }
 0x5bd   :  { %v1389_v31 = vpop.permute.xlu0 %1388  ;;  %v1484_v62 = vmax.f32 %v1468_v11, 0.0  ;;  %v1450_v4 = vmul.f32 %v3179_v20, %v1418_v9  ;;  %3188 = vrsqrt.f32 %v1425_v36  ;;  %v1411_v46 = vadd.f32 %v1391_v43, %v4098_v37 }
 0x5be   :  { %v1501_v33 = vmul.f32 %v3173_v5, %v1485_v6  ;;  %v1471_v8 = vadd.f32 %v4159_v25, %v1451_v54  ;;  %3190 = vrsqrt.f32 %v4165_v42  ;;  %v1410_v18 = vadd.f32 %v1389_v31, %v4102_v27 }
 0x5bf   :  { %v3181_v39 = vpop.eup %3180  ;;  %v1500_v1 = vmul.f32 %v3175_v51, %v1484_v62  ;;  %v1470_v47 = vadd.f32 %v4159_v25, %v1450_v4  ;;  %v1427_v41 = vadd.f32 1e-09, %v1411_v46 }
 0x5c0   :  { %v3183_v48 = vpop.eup %3182  ;;  %v1487_v23 = vmax.f32 %v1471_v8, 0.0  ;;  %v1453_v28 = vmul.f32 %v3181_v39, %v1421_v55  ;;  %v1426_v12 = vadd.f32 1e-09, %v1410_v18  ;;  %v1395_v9 = vpop.permute.xlu1 %1394  ;;  %v4173_v37 = vmul.f32 %v1501_v33, %v3976_v50 }
 0x5c1   :  { %v1393_v49 = vpop.permute.xlu0 %1392  ;;  %v1486_v59 = vmax.f32 %v1470_v47, 0.0  ;;  %v1452_v26 = vmul.f32 %v3183_v48, %v1420_v17  ;;  %3192 = vrsqrt.f32 %v1427_v41  ;;  %v1413_v30 = vadd.f32 %v1395_v9, %v4120_v44 }
 0x5c2   :  { %v1503_v27 = vmul.f32 %v3177_v40, %v1487_v23  ;;  %v1473_v5 = vadd.f32 %v4159_v25, %v1453_v28  ;;  %3194 = vrsqrt.f32 %v1426_v12  ;;  %v1412_v51 = vadd.f32 %v1393_v49, %v4124_v63 }
 0x5c3   :  { %v3185_v61 = vpop.eup %3184  ;;  %v1502_v52 = vmul.f32 %v3179_v20, %v1486_v59  ;;  %v1472_v55 = vadd.f32 %v4159_v25, %v1452_v26  ;;  %v1429_v22 = vadd.f32 1e-09, %v1413_v30  ;;  %v4180_v35 = vmul.f32 %v1500_v1, %v3979_v2 }
 0x5c4   :  { %v3187_v50 = vpop.eup %3186  ;;  %v4183_v17 = vmul.f32 %v1503_v27, %v3993_v53  ;;  %v1489_v14 = vmax.f32 %v1473_v5, 0.0  ;;  %v1455_v44 = vmul.f32 %v3185_v61, %v1423_v21  ;;  %v1428_v3 = vadd.f32 1e-09, %v1412_v51  ;;  %v1399_v10 = vpop.permute.xlu1 %1398 }
 0x5c5   :  { %v4186_v40 = vmul.f32 %v1502_v52, %v3996_v60  ;;  %v1488_v63 = vmax.f32 %v1472_v55, 0.0  ;;  %v1454_v11 = vmul.f32 %v3187_v50, %v1422_v15  ;;  %3196 = vrsqrt.f32 %v1429_v22  ;;  %v1397_v20 = vpop.permute.xlu0 %1396 }
 0x5c6   :  { %v1505_v6 = vmul.f32 %v3181_v39, %v1489_v14  ;;  %v1475_v54 = vadd.f32 %v4159_v25, %v1455_v44  ;;  %3198 = vrsqrt.f32 %v1428_v3  ;;  %v1415_v2 = vadd.f32 %v1399_v10, %v4138_v45 }
 0x5c7   :  { %v3189_v43 = vpop.eup %3188  ;;  %v1533_v53 = vpack.c.bf16 %v4183_v17, %v4186_v40  ;;  %v1504_v21 = vmul.f32 %v3183_v48, %v1488_v63  ;;  %v1474_v31 = vadd.f32 %v4159_v25, %v1454_v11  ;;  %v1532_v60 = vpack.c.bf16 %v4173_v37, %v4180_v35 }
 0x5c8   :  { %v3191_v62 = vpop.eup %3190  ;;  %v1491_v15 = vmax.f32 %v1475_v54, 0.0  ;;  %v1457_v4 = vmul.f32 %v3189_v43, %v1425_v36  ;;  %v1431_v46 = vadd.f32 1e-09, %v1415_v2  ;;  %v1414_v33 = vadd.f32 %v1397_v20, %v4142_v0 }
 0x5c9   :  { %v1490_v8 = vmax.f32 %v1474_v31, 0.0  ;;  %v1456_v18 = vmul.f32 %v3191_v62, %v4165_v42  ;;  %2961 = vmatprep.mubr.bf16.mxu0 %v1532_v60  ;;  %v4198_v45 = vmul.f32 %v1504_v21, %v4008_v38  ;;  %v4201_v39 = vmul.f32 %v1505_v6, %v4003_v34 }
 0x5ca   :  { %v1507_v1 = vmul.f32 %v3185_v61, %v1491_v15  ;;  %v1477_v47 = vadd.f32 %v4159_v25, %v1457_v4  ;;  %3200 = vrsqrt.f32 %v1431_v46  ;;  %v1430_v48 = vadd.f32 1e-09, %v1414_v33  ;;  %2962 = vmatmul.mubr.bf16.vlgmr.msra.gmra.mrb[16].mxu0 %v1533_v53 }
 0x5cb   :  { %v3193_v36 = vpop.eup %3192  ;;  %v1506_v23 = vmul.f32 %v3187_v50, %v1490_v8  ;;  %v1476_v0 = vadd.f32 %v4159_v25, %v1456_v18  ;;  %v1534_v42 = vpack.c.bf16 %v4201_v39, %v4198_v45 }
 0x5cc   :  { %v3195_v28 = vpop.eup %3194  ;;  %v1493_v9 = vmax.f32 %v1477_v47, 0.0  ;;  %v1459_v38 = vmul.f32 %v3193_v36, %v1427_v41  ;;  %3202 = vrsqrt.f32 %v1430_v48  ;;  %v4208_v34 = vmul.f32 %v1507_v1, %v4042_v57 }
 0x5cd   :  { %v1492_v49 = vmax.f32 %v1476_v0, 0.0  ;;  %v1458_v59 = vmul.f32 %v3195_v28, %v1426_v12  ;;  %2965 = vmatprep.mubr.bf16.mxu0 %v1534_v42  ;;  %v4211_v26 = vmul.f32 %v1506_v23, %v4045_v56 }
 0x5ce   :  { %v1509_v30 = vmul.f32 %v3189_v43, %v1493_v9  ;;  %v1479_v27 = vadd.f32 %v4159_v25, %v1459_v38 }
 0x5cf   :  { %v3197_v5 = vpop.eup %3196  ;;  %v1508_v51 = vmul.f32 %v3191_v62, %v1492_v49  ;;  %v1478_v61 = vadd.f32 %v4159_v25, %v1458_v59  ;;  %v1535_v41 = vpack.c.bf16 %v4208_v34, %v4211_v26 }
 0x5d0   :  { %v3199_v52 = vpop.eup %3198  ;;  %v1495_v55 = vmax.f32 %v1479_v27, 0.0  ;;  %v1461_v57 = vmul.f32 %v3197_v5, %v1429_v22  ;;  %v4218_v50 = vmul.f32 %v1509_v30, %v4063_v13 }
 0x5d1   :  { %v1494_v12 = vmax.f32 %v1478_v61, 0.0  ;;  %v1460_v14 = vmul.f32 %v3199_v52, %v1428_v3  ;;  %v4221_v56 = vmul.f32 %v1508_v51, %v4066_v19  ;;  %v3086_v61 = vld [vmem:[%s4756_s4 + $0xc0] sm:$0xff]  }
 0x5d2   :  { %v1511_v44 = vmul.f32 %v3193_v36, %v1495_v55  ;;  %v1481_v10 = vadd.f32 %v4159_v25, %v1461_v57  ;;  %2966 = vmatmul.mubr.bf16.gmra.mrb[20].mxu0 %v1535_v41  ;;  %2977 = vmatprep.subr.bf16.mxu1 %v3086_v61 }
 0x5d3   :  { %v1510_v63 = vmul.f32 %v3195_v28, %v1494_v12  ;;  %v1480_v11 = vadd.f32 %v4159_v25, %v1460_v14  ;;  %v1536_v20 = vpack.c.bf16 %v4218_v50, %v4221_v56  ;;  %2978 = vmatpush3.bf16.msra.mxu1 %v3086_v61 }
 0x5d4   :  { %v3201_v6 = vpop.eup %3200  ;;  %v1497_v22 = vmax.f32 %v1481_v10, 0.0  ;;  %v4228_v13 = vmul.f32 %v1511_v44, %v4084_v24 }
 0x5d5   :  { %v1496_v54 = vmax.f32 %v1480_v11, 0.0  ;;  %v1463_v3 = vmul.f32 %v3201_v6, %v1431_v46  ;;  %2969 = vmatprep.mubr.bf16.mxu0 %v1536_v20  ;;  %v4231_v19 = vmul.f32 %v1510_v63, %v4087_v32 }
 0x5d6   :  { %v3203_v2 = vpop.eup %3202  ;;  %v1513_v43 = vmul.f32 %v3197_v5, %v1497_v22 }
 0x5d7   :  { %4781 = vst [vmem:[#allocation5_spill] sm:$0xff] %v4231_v19  ;;  %v1512_v53 = vmul.f32 %v3199_v52, %v1496_v54  ;;  %v1483_v21 = vadd.f32 %v4159_v25, %v1463_v3  ;;  %v1462_v31 = vmul.f32 %v3203_v2, %v1430_v48  ;;  %v1537_v60 = vpack.c.bf16 %v4228_v13, %v4231_v19 }
 0x5d8   :  { %v4237_v62 = vmul.f32 %v1513_v43, %v4106_v7 }
 0x5d9   :  { %v1499_v24 = vmax.f32 %v1483_v21, 0.0  ;;  %v1482_v15 = vadd.f32 %v4159_v25, %v1462_v31  ;;  %v4241_v4 = vmul.f32 %v1512_v53, %v4109_v16 }
 0x5da   :  { %4782 = vst [vmem:[#allocation6_spill] sm:$0xff] %v4237_v62  ;;  %2970 = vmatmul.mubr.bf16.gmra.mrb[24].mxu0 %v1537_v60 }
 0x5db   :  { %4783 = vst [vmem:[#allocation7_spill] sm:$0xff] %v4241_v4  ;;  %v1515_v32 = vmul.f32 %v3201_v6, %v1499_v24  ;;  %v1498_v46 = vmax.f32 %v1482_v15, 0.0  ;;  %v1538_v33 = vpack.c.bf16 %v4237_v62, %v4241_v4 }
 0x5dd   :  { %v1514_v8 = vmul.f32 %v3203_v2, %v1498_v46  ;;  %2973 = vmatprep.mubr.bf16.mxu0 %v1538_v33  ;;  %v4246_v18 = vmul.f32 %v1515_v32, %v4127_v58 }
 0x5df   :  { %4784 = vst [vmem:[#allocation8_spill] sm:$0xff] %v4246_v18  ;;  %v4249_v7 = vmul.f32 %v1514_v8, %v4130_v29 }
 0x5e1   :  { %4785 = vst [vmem:[#allocation9_spill] sm:$0xff] %v4249_v7  ;;  %v1539_v25 = vpack.c.bf16 %v4246_v18, %v4249_v7 }
 0x5e3   :  { %2974 = vmatmul.mubr.bf16.gmra.mrb[28].mxu0 %v1539_v25 }
 0x69d   :  { %v2963_v16 = vpop.f32.mrb[16].mxu0 }
 0x69e   :  { %v1639_v1 = vpop.f32.mrb[17].mxu0 }
 0x69f   :  { %v2964_v47 = vpop.f32.mrb[18].mxu0 }
 0x6a0   :  { %v1642_v48 = vpop.f32.mrb[19].mxu0 }
 0x6a1   :  { %v1702_v36 = vadd.f32 %v1642_v48, %v1639_v1 }
 0x6a3   :  { %v1703_v23 = vadd.f32 %v2963_v16, %v1702_v36 }
 0x6a5   :  { %v2967_v0 = vpop.f32.mrb[20].mxu0  ;;  %v1704_v42 = vadd.f32 %v2964_v47, %v1703_v23 }
 0x6a6   :  { %v1655_v28 = vpop.f32.mrb[21].mxu0 }
 0x6a7   :  { %v1705_v9 = vadd.f32 %v1704_v42, %v1655_v28  ;;  %v2968_v38 = vpop.f32.mrb[22].mxu0 }
 0x6a8   :  { %v1658_v58 = vpop.f32.mrb[23].mxu0 }
 0x6a9   :  { %v1706_v49 = vadd.f32 %v1705_v9, %v1658_v58 }
 0x6ab   :  { %v1707_v59 = vadd.f32 %v2967_v0, %v1706_v49 }
 0x6ad   :  { %v2971_v29 = vpop.f32.mrb[24].mxu0  ;;  %v1708_v30 = vadd.f32 %v2968_v38, %v1707_v59 }
 0x6ae   :  { %v1671_v27 = vpop.f32.mrb[25].mxu0 }
 0x6af   :  { %v1709_v5 = vadd.f32 %v1708_v30, %v1671_v27  ;;  %v2972_v51 = vpop.f32.mrb[26].mxu0 }
 0x6b0   :  { %v1674_v41 = vpop.f32.mrb[27].mxu0 }
 0x6b1   :  { %v1710_v52 = vadd.f32 %v1709_v5, %v1674_v41 }
 0x6b3   :  { %v1711_v55 = vadd.f32 %v2971_v29, %v1710_v52 }
 0x6b5   :  { %v1712_v57 = vadd.f32 %v2972_v51, %v1711_v55 }
 0x6b6   :  { %v2975_v12 = vpop.f32.mrb[28].mxu0 }
 0x6b7   :  { %v1687_v14 = vpop.f32.mrb[29].mxu0 }
 0x6b8   :  { %v1713_v44 = vadd.f32 %v1712_v57, %v1687_v14  ;;  %v2976_v10 = vpop.f32.mrb[30].mxu0 }
 0x6b9   :  { %v1690_v63 = vpop.f32.mrb[31].mxu0 }
 0x6ba   :  { %v1714_v11 = vadd.f32 %v1713_v44, %v1690_v63 }
 0x6bc   :  { %v1715_v20 = vadd.f32 %v2975_v12, %v1714_v11 }
 0x6be   :  { %v1716_v6 = vadd.f32 %v2976_v10, %v1715_v20 }
 0x6c0   :  { %v1717_v22 = vrot.slane %v1716_v6, 4 }
 0x6c2   :  { %v1718_v54 = vadd.f32 %v1717_v22, %v1716_v6 }
 0x6c4   :  { %v1719_v3 = vrot.slane %v1718_v54, 2 }
 0x6c6   :  { %v1720_v2 = vadd.f32 %v1719_v3, %v1718_v54 }
 0x6c8   :  { %v1721_v43 = vrot.slane %v1720_v2, 1 }
 0x6ca   :  { %v1722_v53 = vadd.f32 %v1721_v43, %v1720_v2 }
 0x6cc   :  { %v1723_v21 = vmul.f32 0.0078125, %v1722_v53 }
 0x6ce   :  { %v4256_v31 = vsub.f32 %v1690_v63, %v1723_v21  ;;  %v1724_v60 = vsub.f32 %v1639_v1, %v1723_v21  ;;  %v1725_v24 = vsub.f32 %v1642_v48, %v1723_v21  ;;  %v1726_v15 = vsub.f32 %v2963_v16, %v1723_v21 }
 0x6cf   :  { %v1727_v32 = vsub.f32 %v2964_v47, %v1723_v21  ;;  %v1728_v46 = vsub.f32 %v1655_v28, %v1723_v21  ;;  %v1729_v33 = vsub.f32 %v1658_v58, %v1723_v21  ;;  %v1730_v8 = vsub.f32 %v2967_v0, %v1723_v21 }
 0x6d0   :  { %v1731_v25 = vsub.f32 %v2968_v38, %v1723_v21  ;;  %v4258_v36 = vsub.f32 %v1671_v27, %v1723_v21  ;;  %v4260_v23 = vsub.f32 %v1674_v41, %v1723_v21  ;;  %v4262_v42 = vsub.f32 %v2971_v29, %v1723_v21 }
 0x6d1   :  { %v4264_v9 = vsub.f32 %v2972_v51, %v1723_v21  ;;  %v4266_v49 = vsub.f32 %v1687_v14, %v1723_v21  ;;  %v4268_v59 = vsub.f32 %v2975_v12, %v1723_v21  ;;  %v4270_v1 = vsub.f32 %v2976_v10, %v1723_v21 }
 0x6d2   :  { %v1740_v16 = vmul.f32 %v1724_v60, %v1724_v60  ;;  %v1741_v47 = vmul.f32 %v1725_v24, %v1725_v24  ;;  %v1742_v48 = vmul.f32 %v1726_v15, %v1726_v15  ;;  %v1743_v0 = vmul.f32 %v1727_v32, %v1727_v32 }
 0x6d3   :  { %v1744_v58 = vmul.f32 %v1728_v46, %v1728_v46  ;;  %v1745_v27 = vmul.f32 %v1729_v33, %v1729_v33  ;;  %v1746_v29 = vmul.f32 %v1730_v8, %v1730_v8  ;;  %v1747_v51 = vmul.f32 %v1731_v25, %v1731_v25 }
 0x6d4   :  { %v1756_v28 = vadd.f32 %v1741_v47, %v1740_v16  ;;  %v1748_v52 = vmul.f32 %v4258_v36, %v4258_v36  ;;  %v1749_v57 = vmul.f32 %v4260_v23, %v4260_v23  ;;  %v1750_v14 = vmul.f32 %v4262_v42, %v4262_v42 }
 0x6d5   :  { %v1751_v10 = vmul.f32 %v4264_v9, %v4264_v9  ;;  %v1752_v11 = vmul.f32 %v4266_v49, %v4266_v49  ;;  %v1753_v6 = vmul.f32 %v4256_v31, %v4256_v31  ;;  %v1754_v54 = vmul.f32 %v4268_v59, %v4268_v59 }
 0x6d6   :  { %v1757_v38 = vadd.f32 %v1756_v28, %v1742_v48  ;;  %v1755_v2 = vmul.f32 %v4270_v1, %v4270_v1 }
 0x6d8   :  { %v1758_v30 = vadd.f32 %v1757_v38, %v1743_v0 }
 0x6da   :  { %v1759_v5 = vadd.f32 %v1758_v30, %v1744_v58  ;;  %v3087_v30 = vld [vmem:[%s4756_s4 + $0xc8] sm:$0xff]  }
 0x6db   :  { %2979 = vmatprep.subr.bf16.mxu1 %v3087_v30 }
 0x6dc   :  { %v1760_v61 = vadd.f32 %v1759_v5, %v1745_v27  ;;  %2980 = vmatpush3.bf16.msra.mxu1 %v3087_v30 }
 0x6de   :  { %v1761_v41 = vadd.f32 %v1760_v61, %v1746_v29 }
 0x6e0   :  { %v1762_v55 = vadd.f32 %v1761_v41, %v1747_v51 }
 0x6e2   :  { %v1763_v12 = vadd.f32 %v1762_v55, %v1748_v52 }
 0x6e4   :  { %v1764_v44 = vadd.f32 %v1763_v12, %v1749_v57 }
 0x6e6   :  { %v1765_v63 = vadd.f32 %v1764_v44, %v1750_v14 }
 0x6e8   :  { %v1766_v20 = vadd.f32 %v1765_v63, %v1751_v10  ;;  %v3091_v10 = vld [vmem:[%s4756_s4 + $0xe8] sm:$0xff]  }
 0x6ea   :  { %v1767_v22 = vadd.f32 %v1766_v20, %v1752_v11  ;;  %v3092_v20 = vld [vmem:[%s4756_s4 + $0xf0] sm:$0xff]  }
 0x6ec   :  { %v1768_v3 = vadd.f32 %v1767_v22, %v1753_v6 }
 0x6ee   :  { %v1769_v43 = vadd.f32 %v1768_v3, %v1754_v54  ;;  %v3093_v54 = vld [vmem:[%s4756_s4 + $0xf8] sm:$0xff]  }
 0x6f0   :  { %v1770_v53 = vadd.f32 %v1769_v43, %v1755_v2 }
 0x6f2   :  { %v1771_v21 = vrot.slane %v1770_v53, 4 }
 0x6f4   :  { %v1772_v16 = vadd.f32 %v1771_v21, %v1770_v53 }
 0x6f6   :  { %v1773_v47 = vrot.slane %v1772_v16, 2 }
 0x6f8   :  { %v1774_v48 = vadd.f32 %v1773_v47, %v1772_v16 }
 0x6fa   :  { %v1775_v28 = vrot.slane %v1774_v48, 1 }
 0x6fc   :  { %v1776_v0 = vadd.f32 %v1775_v28, %v1774_v48 }
 0x6fe   :  { %v1777_v38 = vmul.f32 0.0078125, %v1776_v0 }
 0x700   :  { %v1778_v58 = vadd.f32 1e-05, %v1777_v38 }
 0x702   :  { %3204 = vrsqrt.f32 %v1778_v58 }
 0x70c   :  { %v3205_v27 = vpop.eup %3204 }
 0x70d   :  { %v4291_v5 = vmul.f32 %v3205_v27, %v1725_v24  ;;  %v4293_v29 = vmul.f32 %v3205_v27, %v1724_v60  ;;  %v4295_v61 = vmul.f32 %v3205_v27, %v1727_v32  ;;  %v4297_v51 = vmul.f32 %v3205_v27, %v1726_v15  ;;  %v3088_v15 = vld [vmem:[%s4756_s4 + $0xd0] sm:$0xff]  }
 0x70e   :  { %v4299_v41 = vmul.f32 %v3205_v27, %v1729_v33  ;;  %v4301_v52 = vmul.f32 %v3205_v27, %v1728_v46  ;;  %v4303_v55 = vmul.f32 %v3205_v27, %v1731_v25  ;;  %v4305_v57 = vmul.f32 %v3205_v27, %v1730_v8  ;;  %2981 = vmatprep.subr.bf16.mxu1 %v3088_v15 }
 0x70f   :  { %v1798_v24 = vmul.f32 %v4291_v5, %v4291_v5  ;;  %v1797_v60 = vmul.f32 %v4293_v29, %v4293_v29  ;;  %v4317_v32 = vmul.f32 %v3205_v27, %v4260_v23  ;;  %v4320_v46 = vmul.f32 %v3205_v27, %v4258_v36  ;;  %2982 = vmatpush3.bf16.msra.mxu1 %v3088_v15 }
 0x710   :  { %v4323_v33 = vmul.f32 %v3205_v27, %v4264_v9  ;;  %v4326_v8 = vmul.f32 %v3205_v27, %v4262_v42  ;;  %v4329_v25 = vmul.f32 %v3205_v27, %v4256_v31  ;;  %v4332_v12 = vmul.f32 %v3205_v27, %v4266_v49  ;;  %v3089_v31 = vld [vmem:[%s4756_s4 + $0xd8] sm:$0xff]  }
 0x711   :  { %1815 = vrot.lane.b32.xlu1 %v1798_v24, %s3297_s15  ;;  %1813 = vrot.lane.b32.xlu0 %v1797_v60, %s3297_s15  ;;  %v4335_v14 = vmul.f32 %v3205_v27, %v4270_v1  ;;  %v1800_v36 = vmul.f32 %v4295_v61, %v4295_v61  ;;  %v1799_v23 = vmul.f32 %v4297_v51, %v4297_v51 }
 0x712   :  { %v4342_v9 = vmul.f32 %v3205_v27, %v4268_v59  ;;  %2983 = vmatprep.subr.bf16.mxu1 %v3089_v31  ;;  %v1802_v42 = vmul.f32 %v4299_v41, %v4299_v41  ;;  %v1801_v49 = vmul.f32 %v4301_v52, %v4301_v52  ;;  %v3090_v59 = vld [vmem:[%s4756_s4 + $0xe0] sm:$0xff]   ;;  %v1804_v1 = vmul.f32 %v4303_v55, %v4303_v55 }
 0x713   :  { %2984 = vmatpush3.bf16.msra.mxu1 %v3089_v31  ;;  %v1803_v44 = vmul.f32 %v4305_v57, %v4305_v57  ;;  %v1806_v63 = vmul.f32 %v4317_v32, %v4317_v32  ;;  %v1805_v11 = vmul.f32 %v4320_v46, %v4320_v46  ;;  %v4378_v6 = vmul.f32 %v4323_v33, %v4323_v33 }
 0x714   :  { %2985 = vmatprep.subr.bf16.mxu1 %v3090_v59  ;;  %v4382_v22 = vmul.f32 %v4326_v8, %v4326_v8  ;;  %v4393_v3 = vmul.f32 %v4329_v25, %v4329_v25  ;;  %v4397_v2 = vmul.f32 %v4332_v12, %v4332_v12  ;;  %v4405_v43 = vmul.f32 %v4335_v14, %v4335_v14 }
 0x715   :  { %1819 = vrot.lane.b32.xlu1 %v1800_v36, %s3297_s15  ;;  %1817 = vrot.lane.b32.xlu0 %v1799_v23, %s3297_s15  ;;  %v4409_v53 = vmul.f32 %v4342_v9, %v4342_v9 }
 0x717   :  { %2986 = vmatpush3.bf16.msra.mxu1 %v3090_v59 }
 0x718   :  { %2987 = vmatprep.subr.bf16.mxu1 %v3091_v10 }
 0x719   :  { %1823 = vrot.lane.b32.xlu1 %v1802_v42, %s3297_s15  ;;  %1821 = vrot.lane.b32.xlu0 %v1801_v49, %s3297_s15 }
 0x71b   :  { %2988 = vmatpush3.bf16.msra.mxu1 %v3091_v10 }
 0x71c   :  { %2989 = vmatprep.subr.bf16.mxu1 %v3092_v20 }
 0x71d   :  { %1827 = vrot.lane.b32.xlu1 %v1804_v1, %s3297_s15  ;;  %1825 = vrot.lane.b32.xlu0 %v1803_v44, %s3297_s15 }
 0x71f   :  { %2990 = vmatpush3.bf16.msra.mxu1 %v3092_v20 }
 0x720   :  { %2991 = vmatprep.subr.bf16.mxu1 %v3093_v54 }
 0x721   :  { %1831 = vrot.lane.b32.xlu1 %v1806_v63, %s3297_s15  ;;  %1829 = vrot.lane.b32.xlu0 %v1805_v11, %s3297_s15 }
 0x723   :  { %2992 = vmatpush3.bf16.msra.mxu1 %v3093_v54 }
 0x725   :  { %1835 = vrot.lane.b32.xlu1 %v4378_v6, %s3297_s15  ;;  %1833 = vrot.lane.b32.xlu0 %v4382_v22, %s3297_s15 }
 0x729   :  { %1839 = vrot.lane.b32.xlu1 %v4393_v3, %s3297_s15  ;;  %1837 = vrot.lane.b32.xlu0 %v4397_v2, %s3297_s15 }
 0x72d   :  { %1843 = vrot.lane.b32.xlu1 %v4405_v43, %s3297_s15  ;;  %1841 = vrot.lane.b32.xlu0 %v4409_v53, %s3297_s15 }
 0x783   :  { %v1816_v21 = vpop.permute.xlu1 %1815  ;;  %v1814_v16 = vpop.permute.xlu0 %1813 }
 0x784   :  { %v1846_v47 = vadd.f32 %v1816_v21, %v1798_v24  ;;  %v1845_v48 = vadd.f32 %v1814_v16, %v1797_v60 }
 0x786   :  { %v1862_v28 = vadd.f32 1e-09, %v1846_v47  ;;  %v1861_v0 = vadd.f32 1e-09, %v1845_v48 }
 0x787   :  { %v1820_v38 = vpop.permute.xlu1 %1819  ;;  %v1818_v58 = vpop.permute.xlu0 %1817 }
 0x788   :  { %3206 = vrsqrt.f32 %v1862_v28  ;;  %v1848_v30 = vadd.f32 %v1820_v38, %v1800_v36  ;;  %v1847_v27 = vadd.f32 %v1818_v58, %v1799_v23  ;;  %v4418_v36 = vld [vmem:[%s4758_s6 + $0x3] ss:$0 sm:$0xff] }
 0x789   :  { %3208 = vrsqrt.f32 %v1861_v0 }
 0x78a   :  { %v1864_v15 = vadd.f32 1e-09, %v1848_v30  ;;  %v1863_v31 = vadd.f32 1e-09, %v1847_v27 }
 0x78b   :  { %v1824_v59 = vpop.permute.xlu1 %1823  ;;  %v1822_v10 = vpop.permute.xlu0 %1821 }
 0x78c   :  { %3210 = vrsqrt.f32 %v1864_v15  ;;  %v1850_v20 = vadd.f32 %v1824_v59, %v1802_v42  ;;  %v1849_v54 = vadd.f32 %v1822_v10, %v1801_v49 }
 0x78d   :  { %3212 = vrsqrt.f32 %v1863_v31 }
 0x78e   :  { %v1866_v7 = vadd.f32 1e-09, %v1850_v20  ;;  %v1865_v18 = vadd.f32 1e-09, %v1849_v54 }
 0x78f   :  { %v1828_v24 = vpop.permute.xlu1 %1827  ;;  %v1826_v60 = vpop.permute.xlu0 %1825 }
 0x790   :  { %3214 = vrsqrt.f32 %v1866_v7  ;;  %v1852_v21 = vadd.f32 %v1828_v24, %v1804_v1  ;;  %v1851_v16 = vadd.f32 %v1826_v60, %v1803_v44 }
 0x791   :  { %3216 = vrsqrt.f32 %v1865_v18 }
 0x792   :  { %v3207_v47 = vpop.eup %3206  ;;  %v1868_v23 = vadd.f32 1e-09, %v1852_v21  ;;  %v1867_v48 = vadd.f32 1e-09, %v1851_v16 }
 0x793   :  { %v3209_v38 = vpop.eup %3208  ;;  %v1894_v42 = vmul.f32 %v3207_v47, %v1862_v28  ;;  %v1832_v49 = vpop.permute.xlu1 %1831 }
 0x794   :  { %v1830_v58 = vpop.permute.xlu0 %1829  ;;  %v1893_v30 = vmul.f32 %v3209_v38, %v1861_v0  ;;  %3218 = vrsqrt.f32 %v1868_v23  ;;  %v1854_v27 = vadd.f32 %v1832_v49, %v1806_v63 }
 0x795   :  { %v1853_v59 = vadd.f32 %v1830_v58, %v1805_v11  ;;  %v1914_v1 = vadd.f32 %v4418_v36, %v1894_v42  ;;  %3220 = vrsqrt.f32 %v1867_v48 }
 0x796   :  { %v3211_v44 = vpop.eup %3210  ;;  %v1913_v10 = vadd.f32 %v4418_v36, %v1893_v30  ;;  %v1870_v20 = vadd.f32 1e-09, %v1854_v27 }
 0x797   :  { %v4422_v54 = vadd.f32 1e-09, %v1853_v59  ;;  %v3213_v24 = vpop.eup %3212  ;;  %v1930_v60 = vmax.f32 %v1914_v1, 0.0  ;;  %v1896_v21 = vmul.f32 %v3211_v44, %v1864_v15  ;;  %v1836_v16 = vpop.permute.xlu1 %1835 }
 0x798   :  { %v1834_v28 = vpop.permute.xlu0 %1833  ;;  %v1929_v4 = vmax.f32 %v1913_v10, 0.0  ;;  %v1895_v62 = vmul.f32 %v3213_v24, %v1863_v31  ;;  %3222 = vrsqrt.f32 %v1870_v20  ;;  %v1856_v63 = vadd.f32 %v1836_v16, %v4378_v6 }
 0x799   :  { %v1946_v11 = vmul.f32 %v3207_v47, %v1930_v60  ;;  %v1916_v0 = vadd.f32 %v4418_v36, %v1896_v21  ;;  %3224 = vrsqrt.f32 %v4422_v54  ;;  %v1855_v42 = vadd.f32 %v1834_v28, %v4382_v22 }
 0x79a   :  { %v3215_v49 = vpop.eup %3214  ;;  %v1945_v58 = vmul.f32 %v3209_v38, %v1929_v4  ;;  %v1915_v30 = vadd.f32 %v4418_v36, %v1895_v62  ;;  %v1872_v27 = vadd.f32 1e-09, %v1856_v63 }
 0x79b   :  { %v3217_v15 = vpop.eup %3216  ;;  %v1932_v59 = vmax.f32 %v1916_v0, 0.0  ;;  %v1898_v1 = vmul.f32 %v3215_v49, %v1866_v7  ;;  %v1871_v10 = vadd.f32 1e-09, %v1855_v42  ;;  %v1840_v31 = vpop.permute.xlu1 %1839  ;;  %v1962_v6 = vmul.f32 %v1946_v11, %v4291_v5 }
 0x79c   :  { %v1838_v19 = vpop.permute.xlu0 %1837  ;;  %v1931_v47 = vmax.f32 %v1915_v30, 0.0  ;;  %v1897_v60 = vmul.f32 %v3217_v15, %v1865_v18  ;;  %3226 = vrsqrt.f32 %v1872_v27  ;;  %v1858_v21 = vadd.f32 %v1840_v31, %v4393_v3 }
 0x79d   :  { %v1948_v16 = vmul.f32 %v3211_v44, %v1932_v59  ;;  %v1918_v22 = vadd.f32 %v4418_v36, %v1898_v1  ;;  %3228 = vrsqrt.f32 %v1871_v10  ;;  %v1857_v62 = vadd.f32 %v1838_v19, %v4397_v2 }
 0x79e   :  { %v3219_v4 = vpop.eup %3218  ;;  %v1947_v38 = vmul.f32 %v3213_v24, %v1931_v47  ;;  %v1917_v7 = vadd.f32 %v4418_v36, %v1897_v60  ;;  %v1874_v28 = vadd.f32 1e-09, %v1858_v21  ;;  %v1961_v63 = vmul.f32 %v1945_v58, %v4293_v29 }
 0x79f   :  { %v3221_v0 = vpop.eup %3220  ;;  %v1964_v5 = vmul.f32 %v1948_v16, %v4295_v61  ;;  %v1934_v18 = vmax.f32 %v1918_v22, 0.0  ;;  %v1900_v11 = vmul.f32 %v3219_v4, %v1868_v23  ;;  %v1873_v42 = vadd.f32 1e-09, %v1857_v62  ;;  %v1844_v3 = vpop.permute.xlu1 %1843 }
 0x7a0   :  { %v1963_v44 = vmul.f32 %v1947_v38, %v4297_v51  ;;  %v1933_v30 = vmax.f32 %v1917_v7, 0.0  ;;  %v1899_v59 = vmul.f32 %v3221_v0, %v1867_v48  ;;  %3230 = vrsqrt.f32 %v1874_v28  ;;  %v1842_v19 = vpop.permute.xlu0 %1841 }
 0x7a1   :  { %v1950_v2 = vmul.f32 %v3215_v49, %v1934_v18  ;;  %v1920_v24 = vadd.f32 %v4418_v36, %v1900_v11  ;;  %3232 = vrsqrt.f32 %v1873_v42  ;;  %v1860_v1 = vadd.f32 %v1844_v3, %v4405_v43 }
 0x7a2   :  { %v3223_v29 = vpop.eup %3222  ;;  %v1978_v58 = vpack.c.bf16 %v1964_v5, %v1963_v44  ;;  %v1949_v31 = vmul.f32 %v3217_v15, %v1933_v30  ;;  %v1919_v61 = vadd.f32 %v4418_v36, %v1899_v59  ;;  %v1977_v23 = vpack.c.bf16 %v1962_v6, %v1961_v63 }
 0x7a3   :  { %v3225_v47 = vpop.eup %3224  ;;  %v1936_v60 = vmax.f32 %v1920_v24, 0.0  ;;  %v1902_v21 = vmul.f32 %v3223_v29, %v1870_v20  ;;  %v1876_v51 = vadd.f32 1e-09, %v1860_v1  ;;  %v1859_v48 = vadd.f32 %v1842_v19, %v4409_v53 }
 0x7a4   :  { %v1935_v16 = vmax.f32 %v1919_v61, 0.0  ;;  %v1901_v49 = vmul.f32 %v3225_v47, %v4422_v54  ;;  %2993 = vmatprep.mubr.bf16.mxu1 %v1977_v23  ;;  %v1965_v22 = vmul.f32 %v1949_v31, %v4301_v52  ;;  %v1966_v43 = vmul.f32 %v1950_v2, %v4299_v41 }
 0x7a5   :  { %v1952_v62 = vmul.f32 %v3219_v4, %v1936_v60  ;;  %v1922_v15 = vadd.f32 %v4418_v36, %v1902_v21  ;;  %3234 = vrsqrt.f32 %v1876_v51  ;;  %v1875_v38 = vadd.f32 1e-09, %v1859_v48  ;;  %2994 = vmatmul.mubr.bf16.vlgmr.msra.gmra.mrb[32].mxu1 %v1978_v58 }
 0x7a6   :  { %v3227_v6 = vpop.eup %3226  ;;  %v1951_v7 = vmul.f32 %v3221_v0, %v1935_v16  ;;  %v1921_v20 = vadd.f32 %v4418_v36, %v1901_v49  ;;  %v1979_v63 = vpack.c.bf16 %v1966_v43, %v1965_v22 }
 0x7a7   :  { %v3229_v53 = vpop.eup %3228  ;;  %v1938_v5 = vmax.f32 %v1922_v15, 0.0  ;;  %v1904_v18 = vmul.f32 %v3227_v6, %v1872_v27  ;;  %3236 = vrsqrt.f32 %v1875_v38  ;;  %v1968_v54 = vmul.f32 %v1952_v62, %v4303_v55 }
 0x7a8   :  { %v1937_v52 = vmax.f32 %v1921_v20, 0.0  ;;  %v1903_v11 = vmul.f32 %v3229_v53, %v1871_v10  ;;  %2997 = vmatprep.mubr.bf16.mxu1 %v1979_v63  ;;  %v1967_v41 = vmul.f32 %v1951_v7, %v4305_v57 }
 0x7a9   :  { %v1954_v4 = vmul.f32 %v3223_v29, %v1938_v5  ;;  %v1924_v3 = vadd.f32 %v4418_v36, %v1904_v18 }
 0x7aa   :  { %v3231_v44 = vpop.eup %3230  ;;  %v1953_v30 = vmul.f32 %v3225_v47, %v1937_v52  ;;  %v1923_v0 = vadd.f32 %v4418_v36, %v1903_v11  ;;  %v1980_v59 = vpack.c.bf16 %v1968_v54, %v1967_v41 }
 0x7ab   :  { %v3233_v19 = vpop.eup %3232  ;;  %v1940_v2 = vmax.f32 %v1924_v3, 0.0  ;;  %v1906_v24 = vmul.f32 %v3231_v44, %v1874_v28  ;;  %v1970_v27 = vmul.f32 %v1954_v4, %v4317_v32 }
 0x7ac   :  { %v1939_v1 = vmax.f32 %v1923_v0, 0.0  ;;  %v1905_v55 = vmul.f32 %v3233_v19, %v1873_v42  ;;  %v1969_v10 = vmul.f32 %v1953_v30, %v4320_v46 }
 0x7ad   :  { %v1956_v58 = vmul.f32 %v3227_v6, %v1940_v2  ;;  %v1926_v57 = vadd.f32 %v4418_v36, %v1906_v24  ;;  %2998 = vmatmul.mubr.bf16.gmra.mrb[36].mxu1 %v1980_v59 }
 0x7ae   :  { %v1955_v29 = vmul.f32 %v3229_v53, %v1939_v1  ;;  %v1925_v31 = vadd.f32 %v4418_v36, %v1905_v55  ;;  %v1981_v61 = vpack.c.bf16 %v1970_v27, %v1969_v10  ;;  %v3094_v27 = vld [vmem:[#allocation2] sm:$0xff]  }
 0x7af   :  { %v3235_v23 = vpop.eup %3234  ;;  %v1942_v47 = vmax.f32 %v1926_v57, 0.0  ;;  %v1972_v60 = vmul.f32 %v1956_v58, %v4323_v33  ;;  %3009 = vmatprep.subr.bf16.mxu0 %v3094_v27 }
 0x7b0   :  { %v1941_v21 = vmax.f32 %v1925_v31, 0.0  ;;  %v1908_v28 = vmul.f32 %v3235_v23, %v1876_v51  ;;  %3001 = vmatprep.mubr.bf16.mxu1 %v1981_v61  ;;  %v1971_v32 = vmul.f32 %v1955_v29, %v4326_v8  ;;  %3010 = vmatpush3.bf16.msra.mxu0 %v3094_v27 }
 0x7b1   :  { %v3237_v42 = vpop.eup %3236  ;;  %v1958_v48 = vmul.f32 %v3231_v44, %v1942_v47 }
 0x7b2   :  { %v1957_v46 = vmul.f32 %v3233_v19, %v1941_v21  ;;  %v1928_v16 = vadd.f32 %v4418_v36, %v1908_v28  ;;  %v1907_v49 = vmul.f32 %v3237_v42, %v1875_v38  ;;  %v1982_v22 = vpack.c.bf16 %v1972_v60, %v1971_v32 }
 0x7b3   :  { %v1974_v43 = vmul.f32 %v1958_v48, %v4329_v25 }
 0x7b4   :  { %v1944_v62 = vmax.f32 %v1928_v16, 0.0  ;;  %v1927_v15 = vadd.f32 %v4418_v36, %v1907_v49  ;;  %v1973_v6 = vmul.f32 %v1957_v46, %v4332_v12 }
 0x7b5   :  { %3002 = vmatmul.mubr.bf16.gmra.mrb[40].mxu1 %v1982_v22 }
 0x7b6   :  { %v1960_v33 = vmul.f32 %v3235_v23, %v1944_v62  ;;  %v1943_v51 = vmax.f32 %v1927_v15, 0.0  ;;  %v1983_v7 = vpack.c.bf16 %v1974_v43, %v1973_v6 }
 0x7b8   :  { %v1959_v20 = vmul.f32 %v3237_v42, %v1943_v51  ;;  %3005 = vmatprep.mubr.bf16.mxu1 %v1983_v7  ;;  %v1976_v8 = vmul.f32 %v1960_v33, %v4335_v14 }
 0x7ba   :  { %v1975_v63 = vmul.f32 %v1959_v20, %v4342_v9 }
 0x7bc   :  { %v1984_v53 = vpack.c.bf16 %v1976_v8, %v1975_v63 }
 0x7be   :  { %3006 = vmatmul.mubr.bf16.gmra.mrb[44].mxu1 %v1984_v53 }
 0x878   :  { %v2995_v38 = vpop.f32.mrb[32].mxu1 }
 0x879   :  { %v2084_v5 = vpop.f32.mrb[33].mxu1 }
 0x87a   :  { %v2996_v25 = vpop.f32.mrb[34].mxu1 }
 0x87b   :  { %v2087_v18 = vpop.f32.mrb[35].mxu1 }
 0x87c   :  { %v2147_v54 = vadd.f32 %v2087_v18, %v2084_v5 }
 0x87e   :  { %v2148_v36 = vadd.f32 %v2995_v38, %v2147_v54 }
 0x880   :  { %v2999_v52 = vpop.f32.mrb[36].mxu1  ;;  %v2149_v12 = vadd.f32 %v2996_v25, %v2148_v36 }
 0x881   :  { %v2100_v11 = vpop.f32.mrb[37].mxu1 }
 0x882   :  { %v2150_v41 = vadd.f32 %v2149_v12, %v2100_v11  ;;  %v3000_v4 = vpop.f32.mrb[38].mxu1 }
 0x883   :  { %v2103_v3 = vpop.f32.mrb[39].mxu1 }
 0x884   :  { %v2151_v44 = vadd.f32 %v2150_v41, %v2103_v3 }
 0x886   :  { %v2152_v30 = vadd.f32 %v2999_v52, %v2151_v44 }
 0x888   :  { %v3003_v0 = vpop.f32.mrb[40].mxu1  ;;  %v2153_v14 = vadd.f32 %v3000_v4, %v2152_v30 }
 0x889   :  { %v2116_v59 = vpop.f32.mrb[41].mxu1 }
 0x88a   :  { %v2154_v9 = vadd.f32 %v2153_v14, %v2116_v59  ;;  %v3004_v19 = vpop.f32.mrb[42].mxu1 }
 0x88b   :  { %v2119_v2 = vpop.f32.mrb[43].mxu1 }
 0x88c   :  { %v2155_v24 = vadd.f32 %v2154_v9, %v2119_v2 }
 0x88e   :  { %v2156_v1 = vadd.f32 %v3003_v0, %v2155_v24 }
 0x890   :  { %v2157_v55 = vadd.f32 %v3004_v19, %v2156_v1 }
 0x891   :  { %v3007_v10 = vpop.f32.mrb[44].mxu1 }
 0x892   :  { %v2132_v58 = vpop.f32.mrb[45].mxu1 }
 0x893   :  { %v2158_v57 = vadd.f32 %v2157_v55, %v2132_v58  ;;  %v3008_v29 = vpop.f32.mrb[46].mxu1 }
 0x894   :  { %v2135_v31 = vpop.f32.mrb[47].mxu1 }
 0x895   :  { %v2159_v61 = vadd.f32 %v2158_v57, %v2135_v31 }
 0x897   :  { %v2160_v23 = vadd.f32 %v3007_v10, %v2159_v61 }
 0x899   :  { %v2161_v47 = vadd.f32 %v3008_v29, %v2160_v23 }
 0x89b   :  { %v2162_v60 = vrot.slane %v2161_v47, 4 }
 0x89d   :  { %v2163_v21 = vadd.f32 %v2162_v60, %v2161_v47 }
 0x89f   :  { %v2164_v28 = vrot.slane %v2163_v21, 2 }
 0x8a1   :  { %v2165_v32 = vadd.f32 %v2164_v28, %v2163_v21 }
 0x8a3   :  { %v2166_v42 = vrot.slane %v2165_v32, 1 }
 0x8a5   :  { %v2167_v48 = vadd.f32 %v2166_v42, %v2165_v32 }
 0x8a7   :  { %v2168_v46 = vmul.f32 0.0078125, %v2167_v48 }
 0x8a9   :  { %v2169_v16 = vsub.f32 %v2084_v5, %v2168_v46  ;;  %v2170_v49 = vsub.f32 %v2087_v18, %v2168_v46  ;;  %v2171_v22 = vsub.f32 %v2995_v38, %v2168_v46  ;;  %v2172_v43 = vsub.f32 %v2996_v25, %v2168_v46 }
 0x8aa   :  { %v2173_v62 = vsub.f32 %v2100_v11, %v2168_v46  ;;  %v2174_v15 = vsub.f32 %v2103_v3, %v2168_v46  ;;  %v2175_v6 = vsub.f32 %v2999_v52, %v2168_v46  ;;  %v2176_v33 = vsub.f32 %v3000_v4, %v2168_v46 }
 0x8ab   :  { %v4462_v51 = vsub.f32 %v2116_v59, %v2168_v46  ;;  %v4464_v7 = vsub.f32 %v2119_v2, %v2168_v46  ;;  %v4466_v20 = vsub.f32 %v3003_v0, %v2168_v46  ;;  %v4468_v8 = vsub.f32 %v3004_v19, %v2168_v46 }
 0x8ac   :  { %v4470_v63 = vsub.f32 %v2132_v58, %v2168_v46  ;;  %v2182_v53 = vsub.f32 %v2135_v31, %v2168_v46  ;;  %v4472_v54 = vsub.f32 %v3007_v10, %v2168_v46  ;;  %v4474_v5 = vsub.f32 %v3008_v29, %v2168_v46 }
 0x8ad   :  { %v2185_v38 = vmul.f32 %v2169_v16, %v2169_v16  ;;  %v2186_v25 = vmul.f32 %v2170_v49, %v2170_v49  ;;  %v2187_v18 = vmul.f32 %v2171_v22, %v2171_v22  ;;  %v2188_v52 = vmul.f32 %v2172_v43, %v2172_v43 }
 0x8ae   :  { %v2189_v11 = vmul.f32 %v2173_v62, %v2173_v62  ;;  %v2190_v4 = vmul.f32 %v2174_v15, %v2174_v15  ;;  %v2191_v44 = vmul.f32 %v2175_v6, %v2175_v6  ;;  %v2192_v0 = vmul.f32 %v2176_v33, %v2176_v33 }
 0x8af   :  { %v2201_v36 = vadd.f32 %v2186_v25, %v2185_v38  ;;  %v2193_v59 = vmul.f32 %v4462_v51, %v4462_v51  ;;  %v2194_v19 = vmul.f32 %v4464_v7, %v4464_v7  ;;  %v2195_v24 = vmul.f32 %v4466_v20, %v4466_v20 }
 0x8b0   :  { %v2196_v1 = vmul.f32 %v4468_v8, %v4468_v8  ;;  %v2197_v10 = vmul.f32 %v4470_v63, %v4470_v63  ;;  %v2198_v57 = vmul.f32 %v2182_v53, %v2182_v53  ;;  %v2199_v31 = vmul.f32 %v4472_v54, %v4472_v54 }
 0x8b1   :  { %v2202_v12 = vadd.f32 %v2201_v36, %v2187_v18  ;;  %v2200_v23 = vmul.f32 %v4474_v5, %v4474_v5 }
 0x8b3   :  { %v2203_v41 = vadd.f32 %v2202_v12, %v2188_v52 }
 0x8b5   :  { %v2204_v3 = vadd.f32 %v2203_v41, %v2189_v11 }
 0x8b7   :  { %v2205_v30 = vadd.f32 %v2204_v3, %v2190_v4 }
 0x8b9   :  { %v2206_v14 = vadd.f32 %v2205_v30, %v2191_v44 }
 0x8bb   :  { %v2207_v9 = vadd.f32 %v2206_v14, %v2192_v0 }
 0x8bd   :  { %v2208_v2 = vadd.f32 %v2207_v9, %v2193_v59  ;;  %v3095_v59 = vld [vmem:[#allocation2 + $0x8] sm:$0xff]  }
 0x8be   :  { %3011 = vmatprep.subr.bf16.mxu0 %v3095_v59 }
 0x8bf   :  { %v2209_v27 = vadd.f32 %v2208_v2, %v2194_v19  ;;  %3012 = vmatpush3.bf16.msra.mxu0 %v3095_v59  ;;  %v3099_v2 = vld [vmem:[#allocation2 + $0x28] sm:$0xff]  }
 0x8c1   :  { %v2210_v55 = vadd.f32 %v2209_v27, %v2195_v24  ;;  %v4786_v27 = vld [vmem:[#allocation5_spill] sm:$0xff] }
 0x8c3   :  { %v2211_v58 = vadd.f32 %v2210_v55, %v2196_v1  ;;  %v3100_v55 = vld [vmem:[#allocation2 + $0x30] sm:$0xff]  }
 0x8c5   :  { %v2212_v29 = vadd.f32 %v2211_v58, %v2197_v10  ;;  %v4787_v58 = vld [vmem:[#allocation6_spill] sm:$0xff] }
 0x8c7   :  { %v2213_v61 = vadd.f32 %v2212_v29, %v2198_v57  ;;  %v4788_v29 = vld [vmem:[#allocation7_spill] sm:$0xff] }
 0x8c9   :  { %v2214_v47 = vadd.f32 %v2213_v61, %v2199_v31  ;;  %v3101_v61 = vld [vmem:[#allocation2 + $0x38] sm:$0xff]  }
 0x8cb   :  { %v2215_v60 = vadd.f32 %v2214_v47, %v2200_v23 }
 0x8cd   :  { %v2216_v21 = vrot.slane %v2215_v60, 4 }
 0x8cf   :  { %v2217_v28 = vadd.f32 %v2216_v21, %v2215_v60  ;;  %v4789_v60 = vld [vmem:[#allocation8_spill] sm:$0xff] }
 0x8d1   :  { %v2218_v32 = vrot.slane %v2217_v28, 2 }
 0x8d3   :  { %v2219_v42 = vadd.f32 %v2218_v32, %v2217_v28  ;;  %v4790_v28 = vld [vmem:[#allocation9_spill] sm:$0xff] }
 0x8d5   :  { %v2220_v48 = vrot.slane %v2219_v42, 1 }
 0x8d7   :  { %v2221_v46 = vadd.f32 %v2220_v48, %v2219_v42 }
 0x8d9   :  { %v2222_v38 = vmul.f32 0.0078125, %v2221_v46 }
 0x8db   :  { %v2223_v25 = vadd.f32 1e-05, %v2222_v38 }
 0x8dd   :  { %3238 = vrsqrt.f32 %v2223_v25 }
 0x8e7   :  { %v3239_v18 = vpop.eup %3238 }
 0x8e8   :  { %v4490_v36 = vmul.f32 %v3239_v18, %v2182_v53  ;;  %v2226_v52 = vmul.f32 %v3239_v18, %v2170_v49  ;;  %v2225_v12 = vmul.f32 %v3239_v18, %v2169_v16  ;;  %v2228_v11 = vmul.f32 %v3239_v18, %v2172_v43 }
 0x8e9   :  { %v2227_v41 = vmul.f32 %v3239_v18, %v2171_v22  ;;  %v2230_v4 = vmul.f32 %v3239_v18, %v2174_v15  ;;  %v2229_v3 = vmul.f32 %v3239_v18, %v2173_v62  ;;  %v2232_v44 = vmul.f32 %v3239_v18, %v2176_v33 }
 0x8ea   :  { %v4493_v30 = vadd.f32 %v2226_v52, %v4173_v37  ;;  %v4496_v0 = vadd.f32 %v2225_v12, %v4180_v35  ;;  %v2231_v14 = vmul.f32 %v3239_v18, %v2175_v6  ;;  %v4507_v49 = vadd.f32 %v2228_v11, %v4183_v17  ;;  %v3096_v6 = vld [vmem:[#allocation2 + $0x10] sm:$0xff]  }
 0x8eb   :  { %v4510_v22 = vadd.f32 %v2227_v41, %v4186_v40  ;;  %v4517_v37 = vadd.f32 %v2230_v4, %v4201_v39  ;;  %v2234_v35 = vmul.f32 %v3239_v18, %v4464_v7  ;;  %v2233_v43 = vmul.f32 %v3239_v18, %v4462_v51  ;;  %3013 = vmatprep.subr.bf16.mxu0 %v3096_v6  ;;  %v3097_v7 = vld [vmem:[#allocation2 + $0x18] sm:$0xff]  }
 0x8ec   :  { %v4500_v9 = vmul.f32 %v4493_v30, %v4493_v30  ;;  %v4504_v16 = vmul.f32 %v4496_v0, %v4496_v0  ;;  %v4522_v17 = vadd.f32 %v2229_v3, %v4198_v45  ;;  %v2236_v40 = vmul.f32 %v3239_v18, %v4468_v8  ;;  %3014 = vmatpush3.bf16.msra.mxu0 %v3096_v6 }
 0x8ed   :  { %v2235_v62 = vmul.f32 %v3239_v18, %v4466_v20  ;;  %v2237_v15 = vmul.f32 %v3239_v18, %v4470_v63  ;;  %v4529_v33 = vmul.f32 %v4507_v49, %v4507_v49  ;;  %v4533_v39 = vmul.f32 %v4510_v22, %v4510_v22  ;;  %3015 = vmatprep.subr.bf16.mxu0 %v3097_v7 }
 0x8ee   :  { %2276 = vrot.lane.b32.xlu1 %v4500_v9, %s3297_s15  ;;  %2274 = vrot.lane.b32.xlu0 %v4504_v16, %s3297_s15  ;;  %v2240_v51 = vmul.f32 %v3239_v18, %v4474_v5  ;;  %v2239_v45 = vmul.f32 %v3239_v18, %v4472_v54  ;;  %v4543_v20 = vmul.f32 %v4517_v37, %v4517_v37  ;;  %v3098_v54 = vld [vmem:[#allocation2 + $0x20] sm:$0xff]  }
 0x8ef   :  { %v4547_v8 = vmul.f32 %v4522_v17, %v4522_v17  ;;  %v4550_v63 = vadd.f32 %v2232_v44, %v4208_v34  ;;  %v4553_v53 = vadd.f32 %v2231_v14, %v4211_v26  ;;  %v4568_v26 = vadd.f32 %v2234_v35, %v4218_v50 }
 0x8f0   :  { %3016 = vmatpush3.bf16.msra.mxu0 %v3097_v7  ;;  %v4571_v19 = vadd.f32 %v2233_v43, %v4221_v56  ;;  %v4586_v56 = vadd.f32 %v2236_v40, %v4228_v13  ;;  %v4589_v1 = vadd.f32 %v2235_v62, %v4786_v27  ;;  %v4605_v57 = vadd.f32 %v4490_v36, %v4787_v58 }
 0x8f1   :  { %v4561_v5 = vmul.f32 %v4550_v63, %v4550_v63  ;;  %v4565_v34 = vmul.f32 %v4553_v53, %v4553_v53  ;;  %3017 = vmatprep.subr.bf16.mxu0 %v3098_v54  ;;  %v4579_v24 = vmul.f32 %v4568_v26, %v4568_v26  ;;  %v4608_v31 = vadd.f32 %v2237_v15, %v4788_v29 }
 0x8f2   :  { %2280 = vrot.lane.b32.xlu1 %v4529_v33, %s3297_s15  ;;  %2278 = vrot.lane.b32.xlu0 %v4533_v39, %s3297_s15  ;;  %v4583_v50 = vmul.f32 %v4571_v19, %v4571_v19  ;;  %v4597_v10 = vmul.f32 %v4586_v56, %v4586_v56  ;;  %v4601_v13 = vmul.f32 %v4589_v1, %v4589_v1 }
 0x8f3   :  { %v4616_v23 = vmul.f32 %v4605_v57, %v4605_v57  ;;  %v4620_v47 = vmul.f32 %v4608_v31, %v4608_v31  ;;  %v4623_v21 = vadd.f32 %v2240_v51, %v4789_v60  ;;  %v4626_v32 = vadd.f32 %v2239_v45, %v4790_v28 }
 0x8f4   :  { %3018 = vmatpush3.bf16.msra.mxu0 %v3098_v54 }
 0x8f5   :  { %3019 = vmatprep.subr.bf16.mxu0 %v3099_v2  ;;  %v4634_v42 = vmul.f32 %v4623_v21, %v4623_v21  ;;  %v4638_v48 = vmul.f32 %v4626_v32, %v4626_v32 }
 0x8f6   :  { %2284 = vrot.lane.b32.xlu1 %v4543_v20, %s3297_s15  ;;  %2282 = vrot.lane.b32.xlu0 %v4547_v8, %s3297_s15 }
 0x8f8   :  { %3020 = vmatpush3.bf16.msra.mxu0 %v3099_v2 }
 0x8f9   :  { %3021 = vmatprep.subr.bf16.mxu0 %v3100_v55 }
 0x8fa   :  { %2288 = vrot.lane.b32.xlu1 %v4561_v5, %s3297_s15  ;;  %2286 = vrot.lane.b32.xlu0 %v4565_v34, %s3297_s15 }
 0x8fc   :  { %3022 = vmatpush3.bf16.msra.mxu0 %v3100_v55 }
 0x8fd   :  { %3023 = vmatprep.subr.bf16.mxu0 %v3101_v61 }
 0x8fe   :  { %2292 = vrot.lane.b32.xlu1 %v4579_v24, %s3297_s15  ;;  %2290 = vrot.lane.b32.xlu0 %v4583_v50, %s3297_s15 }
 0x900   :  { %3024 = vmatpush3.bf16.msra.mxu0 %v3101_v61 }
 0x902   :  { %2296 = vrot.lane.b32.xlu1 %v4597_v10, %s3297_s15  ;;  %2294 = vrot.lane.b32.xlu0 %v4601_v13, %s3297_s15 }
 0x906   :  { %2300 = vrot.lane.b32.xlu1 %v4616_v23, %s3297_s15  ;;  %2298 = vrot.lane.b32.xlu0 %v4620_v47, %s3297_s15 }
 0x90a   :  { %2304 = vrot.lane.b32.xlu1 %v4634_v42, %s3297_s15  ;;  %2302 = vrot.lane.b32.xlu0 %v4638_v48, %s3297_s15 }
 0x960   :  { %v2277_v46 = vpop.permute.xlu1 %2276  ;;  %v2275_v38 = vpop.permute.xlu0 %2274 }
 0x961   :  { %v2307_v25 = vadd.f32 %v2277_v46, %v4500_v9  ;;  %v2306_v18 = vadd.f32 %v2275_v38, %v4504_v16 }
 0x963   :  { %v2323_v36 = vadd.f32 1e-09, %v2307_v25  ;;  %v2322_v52 = vadd.f32 1e-09, %v2306_v18 }
 0x964   :  { %v2281_v12 = vpop.permute.xlu1 %2280  ;;  %v2279_v11 = vpop.permute.xlu0 %2278 }
 0x965   :  { %3240 = vrsqrt.f32 %v2323_v36  ;;  %v2309_v41 = vadd.f32 %v2281_v12, %v4529_v33  ;;  %v2308_v4 = vadd.f32 %v2279_v11, %v4533_v39  ;;  %v4655_v39 = vld [vmem:[%s4758_s6 + $0x4] ss:$0 sm:$0xff] }
 0x966   :  { %3242 = vrsqrt.f32 %v2322_v52 }
 0x967   :  { %v2325_v3 = vadd.f32 1e-09, %v2309_v41  ;;  %v2324_v44 = vadd.f32 1e-09, %v2308_v4 }
 0x968   :  { %v2285_v14 = vpop.permute.xlu1 %2284  ;;  %v2283_v59 = vpop.permute.xlu0 %2282 }
 0x969   :  { %3244 = vrsqrt.f32 %v2325_v3  ;;  %v2311_v35 = vadd.f32 %v2285_v14, %v4543_v20  ;;  %v2310_v9 = vadd.f32 %v2283_v59, %v4547_v8 }
 0x96a   :  { %3246 = vrsqrt.f32 %v2324_v44 }
 0x96b   :  { %v2327_v16 = vadd.f32 1e-09, %v2311_v35  ;;  %v2326_v43 = vadd.f32 1e-09, %v2310_v9 }
 0x96c   :  { %v2289_v40 = vpop.permute.xlu1 %2288  ;;  %v2287_v62 = vpop.permute.xlu0 %2286 }
 0x96d   :  { %3248 = vrsqrt.f32 %v2327_v16  ;;  %v2313_v15 = vadd.f32 %v2289_v40, %v4561_v5  ;;  %v2312_v6 = vadd.f32 %v2287_v62, %v4565_v34 }
 0x96e   :  { %3250 = vrsqrt.f32 %v2326_v43 }
 0x96f   :  { %v3241_v33 = vpop.eup %3240  ;;  %v2329_v51 = vadd.f32 1e-09, %v2313_v15  ;;  %v2328_v45 = vadd.f32 1e-09, %v2312_v6 }
 0x970   :  { %v3243_v7 = vpop.eup %3242  ;;  %v2355_v20 = vmul.f32 %v3241_v33, %v2323_v36  ;;  %v2293_v8 = vpop.permute.xlu1 %2292 }
 0x971   :  { %v2291_v54 = vpop.permute.xlu0 %2290  ;;  %v2354_v2 = vmul.f32 %v3243_v7, %v2322_v52  ;;  %3252 = vrsqrt.f32 %v2329_v51  ;;  %v2315_v27 = vadd.f32 %v2293_v8, %v4579_v24 }
 0x972   :  { %v2314_v5 = vadd.f32 %v2291_v54, %v4583_v50  ;;  %v2375_v34 = vadd.f32 %v4655_v39, %v2355_v20  ;;  %3254 = vrsqrt.f32 %v2328_v45 }
 0x973   :  { %v3245_v55 = vpop.eup %3244  ;;  %v2374_v58 = vadd.f32 %v4655_v39, %v2354_v2  ;;  %v2331_v29 = vadd.f32 1e-09, %v2315_v27 }
 0x974   :  { %v4661_v61 = vadd.f32 1e-09, %v2314_v5  ;;  %v3247_v60 = vpop.eup %3246  ;;  %v2391_v28 = vmax.f32 %v2375_v34, 0.0  ;;  %v2357_v46 = vmul.f32 %v3245_v55, %v2325_v3  ;;  %v2297_v38 = vpop.permute.xlu1 %2296 }
 0x975   :  { %v2295_v25 = vpop.permute.xlu0 %2294  ;;  %v2390_v18 = vmax.f32 %v2374_v58, 0.0  ;;  %v2356_v36 = vmul.f32 %v3247_v60, %v2324_v44  ;;  %3256 = vrsqrt.f32 %v2331_v29  ;;  %v2317_v24 = vadd.f32 %v2297_v38, %v4597_v10 }
 0x976   :  { %v2407_v50 = vmul.f32 %v3241_v33, %v2391_v28  ;;  %v2377_v52 = vadd.f32 %v4655_v39, %v2357_v46  ;;  %3258 = vrsqrt.f32 %v4661_v61  ;;  %v2316_v12 = vadd.f32 %v2295_v25, %v4601_v13 }
 0x977   :  { %v3249_v11 = vpop.eup %3248  ;;  %v2406_v41 = vmul.f32 %v3243_v7, %v2390_v18  ;;  %v2376_v4 = vadd.f32 %v4655_v39, %v2356_v36  ;;  %v2333_v14 = vadd.f32 1e-09, %v2317_v24 }
 0x978   :  { %v3251_v3 = vpop.eup %3250  ;;  %v2393_v59 = vmax.f32 %v2377_v52, 0.0  ;;  %v2359_v35 = vmul.f32 %v3249_v11, %v2327_v16  ;;  %v2332_v9 = vadd.f32 1e-09, %v2316_v12  ;;  %v2301_v44 = vpop.permute.xlu1 %2300  ;;  %v2423_v10 = vmul.f32 %v2407_v50, %v4493_v30 }
 0x979   :  { %v2299_v40 = vpop.permute.xlu0 %2298  ;;  %v2392_v62 = vmax.f32 %v2376_v4, 0.0  ;;  %v2358_v15 = vmul.f32 %v3251_v3, %v2326_v43  ;;  %3260 = vrsqrt.f32 %v2333_v14  ;;  %v2319_v6 = vadd.f32 %v2301_v44, %v4616_v23 }
 0x97a   :  { %v2409_v33 = vmul.f32 %v3245_v55, %v2393_v59  ;;  %v2379_v13 = vadd.f32 %v4655_v39, %v2359_v35  ;;  %3262 = vrsqrt.f32 %v2332_v9  ;;  %v2318_v7 = vadd.f32 %v2299_v40, %v4620_v47 }
 0x97b   :  { %v3253_v20 = vpop.eup %3252  ;;  %v2408_v8 = vmul.f32 %v3247_v60, %v2392_v62  ;;  %v2378_v16 = vadd.f32 %v4655_v39, %v2358_v15  ;;  %v2335_v54 = vadd.f32 1e-09, %v2319_v6  ;;  %v2422_v2 = vmul.f32 %v2406_v41, %v4496_v0 }
 0x97c   :  { %v3255_v27 = vpop.eup %3254  ;;  %v2425_v30 = vmul.f32 %v2409_v33, %v4507_v49  ;;  %v2395_v43 = vmax.f32 %v2379_v13, 0.0  ;;  %v2361_v5 = vmul.f32 %v3253_v20, %v2329_v51  ;;  %v2334_v34 = vadd.f32 1e-09, %v2318_v7  ;;  %v2305_v23 = vpop.permute.xlu1 %2304 }
 0x97d   :  { %v2424_v55 = vmul.f32 %v2408_v8, %v4510_v22  ;;  %v2394_v58 = vmax.f32 %v2378_v16, 0.0  ;;  %v2360_v28 = vmul.f32 %v3255_v27, %v2328_v45  ;;  %3264 = vrsqrt.f32 %v2335_v54  ;;  %v2303_v47 = vpop.permute.xlu0 %2302 }
 0x97e   :  { %v2411_v46 = vmul.f32 %v3249_v11, %v2395_v43  ;;  %v2381_v60 = vadd.f32 %v4655_v39, %v2361_v5  ;;  %3266 = vrsqrt.f32 %v2334_v34  ;;  %v2321_v38 = vadd.f32 %v2305_v23, %v4634_v42 }
 0x97f   :  { %v3257_v0 = vpop.eup %3256  ;;  %v2439_v25 = vpack.c.bf16 %v2425_v30, %v2424_v55  ;;  %v2410_v18 = vmul.f32 %v3251_v3, %v2394_v58  ;;  %v2380_v49 = vadd.f32 %v4655_v39, %v2360_v28  ;;  %v2438_v51 = vpack.c.bf16 %v2423_v10, %v2422_v2 }
 0x980   :  { %v3259_v36 = vpop.eup %3258  ;;  %v2397_v24 = vmax.f32 %v2381_v60, 0.0  ;;  %v2363_v50 = vmul.f32 %v3257_v0, %v2331_v29  ;;  %v2337_v22 = vadd.f32 1e-09, %v2321_v38  ;;  %v2320_v45 = vadd.f32 %v2303_v47, %v4638_v48 }
 0x981   :  { %v2396_v52 = vmax.f32 %v2380_v49, 0.0  ;;  %v2362_v12 = vmul.f32 %v3259_v36, %v4661_v61  ;;  %3025 = vmatprep.mubr.bf16.mxu0 %v2438_v51  ;;  %v2426_v11 = vmul.f32 %v2410_v18, %v4522_v17  ;;  %v2427_v42 = vmul.f32 %v2411_v46, %v4517_v37 }
 0x982   :  { %v2413_v41 = vmul.f32 %v3253_v20, %v2397_v24  ;;  %v2383_v4 = vadd.f32 %v4655_v39, %v2363_v50  ;;  %3268 = vrsqrt.f32 %v2337_v22  ;;  %v2336_v3 = vadd.f32 1e-09, %v2320_v45  ;;  %3026 = vmatmul.mubr.bf16.vlgmr.msra.gmra.mrb[32].mxu0 %v2439_v25 }
 0x983   :  { %v3261_v59 = vpop.eup %3260  ;;  %v2412_v35 = vmul.f32 %v3255_v27, %v2396_v52  ;;  %v2382_v29 = vadd.f32 %v4655_v39, %v2362_v12  ;;  %v2440_v44 = vpack.c.bf16 %v2427_v42, %v2426_v11 }
 0x984   :  { %v3263_v48 = vpop.eup %3262  ;;  %v2399_v40 = vmax.f32 %v2383_v4, 0.0  ;;  %v2365_v10 = vmul.f32 %v3261_v59, %v2333_v14  ;;  %3270 = vrsqrt.f32 %v2336_v3  ;;  %v2429_v61 = vmul.f32 %v2413_v41, %v4550_v63 }
 0x985   :  { %v2398_v17 = vmax.f32 %v2382_v29, 0.0  ;;  %v2364_v62 = vmul.f32 %v3263_v48, %v2332_v9  ;;  %3029 = vmatprep.mubr.bf16.mxu0 %v2440_v44  ;;  %v2428_v37 = vmul.f32 %v2412_v35, %v4553_v53 }
 0x986   :  { %v2415_v15 = vmul.f32 %v3257_v0, %v2399_v40  ;;  %v2385_v6 = vadd.f32 %v4655_v39, %v2365_v10 }
 0x987   :  { %v3265_v33 = vpop.eup %3264  ;;  %v2414_v13 = vmul.f32 %v3259_v36, %v2398_v17  ;;  %v2384_v7 = vadd.f32 %v4655_v39, %v2364_v62  ;;  %v2441_v20 = vpack.c.bf16 %v2429_v61, %v2428_v37 }
 0x988   :  { %v3267_v8 = vpop.eup %3266  ;;  %v2401_v16 = vmax.f32 %v2385_v6, 0.0  ;;  %v2367_v2 = vmul.f32 %v3265_v33, %v2335_v54  ;;  %v2431_v14 = vmul.f32 %v2415_v15, %v4568_v26 }
 0x989   :  { %v2400_v27 = vmax.f32 %v2384_v7, 0.0  ;;  %v2366_v63 = vmul.f32 %v3267_v8, %v2334_v34  ;;  %v2430_v9 = vmul.f32 %v2414_v13, %v4571_v19 }
 0x98a   :  { %v2417_v30 = vmul.f32 %v3261_v59, %v2401_v16  ;;  %v2387_v53 = vadd.f32 %v4655_v39, %v2367_v2  ;;  %3030 = vmatmul.mubr.bf16.gmra.mrb[36].mxu0 %v2441_v20 }
 0x98b   :  { %v2416_v43 = vmul.f32 %v3263_v48, %v2400_v27  ;;  %v2386_v5 = vadd.f32 %v4655_v39, %v2366_v63  ;;  %v2442_v23 = vpack.c.bf16 %v2431_v14, %v2430_v9 }
 0x98c   :  { %v3269_v55 = vpop.eup %3268  ;;  %v2403_v58 = vmax.f32 %v2387_v53, 0.0  ;;  %v2433_v28 = vmul.f32 %v2417_v30, %v4586_v56 }
 0x98d   :  { %v2402_v47 = vmax.f32 %v2386_v5, 0.0  ;;  %v2369_v54 = vmul.f32 %v3269_v55, %v2337_v22  ;;  %3033 = vmatprep.mubr.bf16.mxu0 %v2442_v23  ;;  %v2432_v26 = vmul.f32 %v2416_v43, %v4589_v1 }
 0x98e   :  { %v3271_v34 = vpop.eup %3270  ;;  %v2419_v46 = vmul.f32 %v3265_v33, %v2403_v58 }
 0x98f   :  { %v2418_v19 = vmul.f32 %v3267_v8, %v2402_v47  ;;  %v2389_v60 = vadd.f32 %v4655_v39, %v2369_v54  ;;  %v2368_v38 = vmul.f32 %v3271_v34, %v2336_v3  ;;  %v2443_v0 = vpack.c.bf16 %v2433_v28, %v2432_v26 }
 0x990   :  { %v2435_v25 = vmul.f32 %v2419_v46, %v4605_v57  ;;  %v2738_v57 = vld [vmem:[%s4759_s7] ss:$0 sm:$0xff] }
 0x991   :  { %v2405_v18 = vmax.f32 %v2389_v60, 0.0  ;;  %v2388_v49 = vadd.f32 %v4655_v39, %v2368_v38  ;;  %v2434_v51 = vmul.f32 %v2418_v19, %v4608_v31 }
 0x992   :  { %3034 = vmatmul.mubr.bf16.gmra.mrb[40].mxu0 %v2443_v0 }
 0x993   :  { %v2421_v56 = vmul.f32 %v3269_v55, %v2405_v18  ;;  %v2404_v36 = vmax.f32 %v2388_v49, 0.0  ;;  %v2444_v24 = vpack.c.bf16 %v2435_v25, %v2434_v51 }
 0x995   :  { %v2420_v50 = vmul.f32 %v3271_v34, %v2404_v36  ;;  %3037 = vmatprep.mubr.bf16.mxu0 %v2444_v24  ;;  %v2437_v1 = vmul.f32 %v2421_v56, %v4623_v21 }
 0x997   :  { %v2436_v22 = vmul.f32 %v2420_v50, %v4626_v32 }
 0x999   :  { %v2445_v45 = vpack.c.bf16 %v2437_v1, %v2436_v22 }
 0x99b   :  { %3038 = vmatmul.mubr.bf16.gmra.mrb[44].mxu0 %v2445_v45 }
 0xa55   :  { %v3027_v52 = vpop.f32.mrb[32].mxu0 }
 0xa56   :  { %v2560_v39 = vadd.f32 %v3027_v52, %v2738_v57  ;;  %v2551_v12 = vpop.f32.mrb[33].mxu0 }
 0xa57   :  { %v2552_v31 = vadd.f32 %v2738_v57, %v2551_v12  ;;  %v3028_v11 = vpop.f32.mrb[34].mxu0 }
 0xa58   :  { %2616 = vst [vmem:[%s4760_s8 + $0x10] sm:$0xff] %v2560_v39  ;;  %v2563_v42 = vadd.f32 %v3028_v11, %v2738_v57  ;;  %v2554_v41 = vpop.f32.mrb[35].mxu0 }
 0xa59   :  { %2614 = vst [vmem:[%s4760_s8] sm:$0xff] %v2552_v31  ;;  %v2555_v21 = vadd.f32 %v2738_v57, %v2554_v41 }
 0xa5a   :  { %2617 = vst [vmem:[%s4760_s8 + $0x18] sm:$0xff] %v2563_v42 }
 0xa5b   :  { %2615 = vst [vmem:[%s4760_s8 + $0x8] sm:$0xff] %v2555_v21 }
 0xa5d   :  { %v3031_v32 = vpop.f32.mrb[36].mxu0 }
 0xa5e   :  { %v2576_v4 = vadd.f32 %v3031_v32, %v2738_v57  ;;  %v2567_v3 = vpop.f32.mrb[37].mxu0 }
 0xa5f   :  { %v2568_v59 = vadd.f32 %v2738_v57, %v2567_v3  ;;  %v3032_v35 = vpop.f32.mrb[38].mxu0 }
 0xa60   :  { %2620 = vst [vmem:[%s4760_s8 + $0x30] sm:$0xff] %v2576_v4  ;;  %v2579_v29 = vadd.f32 %v3032_v35, %v2738_v57  ;;  %v2570_v44 = vpop.f32.mrb[39].mxu0 }
 0xa61   :  { %2618 = vst [vmem:[%s4760_s8 + $0x20] sm:$0xff] %v2568_v59  ;;  %v2571_v48 = vadd.f32 %v2738_v57, %v2570_v44 }
 0xa62   :  { %2621 = vst [vmem:[%s4760_s8 + $0x38] sm:$0xff] %v2579_v29 }
 0xa63   :  { %2619 = vst [vmem:[%s4760_s8 + $0x28] sm:$0xff] %v2571_v48 }
 0xa65   :  { %v3035_v40 = vpop.f32.mrb[40].mxu0 }
 0xa66   :  { %v2592_v10 = vadd.f32 %v3035_v40, %v2738_v57  ;;  %v2583_v61 = vpop.f32.mrb[41].mxu0 }
 0xa67   :  { %v2584_v17 = vadd.f32 %v2738_v57, %v2583_v61  ;;  %v3036_v62 = vpop.f32.mrb[42].mxu0 }
 0xa68   :  { %2624 = vst [vmem:[%s4760_s8 + $0x50] sm:$0xff] %v2592_v10  ;;  %v2595_v37 = vadd.f32 %v3036_v62, %v2738_v57  ;;  %v2586_v15 = vpop.f32.mrb[43].mxu0 }
 0xa69   :  { %2622 = vst [vmem:[%s4760_s8 + $0x40] sm:$0xff] %v2584_v17  ;;  %v2587_v6 = vadd.f32 %v2738_v57, %v2586_v15 }
 0xa6a   :  { %2625 = vst [vmem:[%s4760_s8 + $0x58] sm:$0xff] %v2595_v37 }
 0xa6b   :  { %2623 = vst [vmem:[%s4760_s8 + $0x48] sm:$0xff] %v2587_v6 }
 0xa6e   :  { %v3039_v33 = vpop.f32.mrb[44].mxu0 }
 0xa6f   :  { %v2608_v13 = vadd.f32 %v3039_v33, %v2738_v57  ;;  %v2599_v7 = vpop.f32.mrb[45].mxu0 }
 0xa70   :  { %v2600_v20 = vadd.f32 %v2738_v57, %v2599_v7  ;;  %v3040_v8 = vpop.f32.mrb[46].mxu0 }
 0xa71   :  { %2628 = vst [vmem:[%s4760_s8 + $0x70] sm:$0xff] %v2608_v13  ;;  %v2611_v16 = vadd.f32 %v3040_v8, %v2738_v57  ;;  %v2602_v2 = vpop.f32.mrb[47].mxu0 }
 0xa72   :  { %2626 = vst [vmem:[%s4760_s8 + $0x60] sm:$0xff] %v2600_v20  ;;  %v2603_v14 = vadd.f32 %v2738_v57, %v2602_v2 }
 0xa73   :  { %2629 = vst [vmem:[%s4760_s8 + $0x78] sm:$0xff] %v2611_v16 }
 0xa74   :  { %2627 = vst [vmem:[%s4760_s8 + $0x68] sm:$0xff] %v2603_v14 }
 0xa75   :  { %2634 = vsyncpa [#allocation3], 1 }

</bundles_post_ra>
